<compile_context>
chip_gen: v5e
topology: v5e:2x2
jax: 0.10.0
libtpu: 0.0.40
codegen_flags: <defaults>
</compile_context>

<pallas_src>
import jax
import jax.numpy as jnp
from jax.experimental import pallas as pl
from jax.experimental.pallas import tpu as pltpu

SUBLANE_BF16 = 16   # bf16 sublane packing -> batch-tile granularity
MAX_TILE = 4096     # rows per grid step; ~4 MiB double-buffered f32 in+out


def _round_up(n, m):
    return ((n + m - 1) // m) * m


def _cdiv(a, b):
    return -(-a // b)


def _num_tensorcores():
    """Best-effort TensorCore count of the default device (1 if unknown)."""
    try:
        dev = jax.devices()[0]
        return max(1, int(getattr(dev, "num_cores", 1) or 1))
    except Exception:
        return 1


def _choose_batch_tile(batch, num_cores):
    """One large step per TensorCore: grid=(1,) on single-TC parts, an even
    number of steps on 2-TC parts, each step capped at MAX_TILE rows so the
    per-step VMEM footprint stays tiny on every generation."""
    b = _round_up(max(batch, SUBLANE_BF16), SUBLANE_BF16)
    steps = max(num_cores, _cdiv(b, MAX_TILE))
    if num_cores > 1:
        steps = _cdiv(steps, num_cores) * num_cores   # shard evenly across cores
    return _round_up(_cdiv(b, steps), SUBLANE_BF16)


def autoencoder_kernel(x_ref,
                       w1_ref, b1_ref,
                       w2_ref, b2_ref,
                       w3_ref, b3_ref,
                       w4_ref, b4_ref,
                       o_ref):
    """Fused 4-layer MLP autoencoder forward for one batch tile.

    x_ref is f32 (cast to bf16 in-kernel, free VPU filler under the MXU);
    w*_ref are bf16, b*_ref f32.  Each dot accumulates in f32; bias-add /
    ReLU / sigmoid run in f32 on the VPU/EUP.
    """
    x = x_ref[...].astype(jnp.bfloat16)                       # (bt, in)

    # encoder: Linear -> ReLU -> Linear -> ReLU
    h = jnp.dot(x, w1_ref[...], preferred_element_type=jnp.float32) + b1_ref[...]
    h = jnp.maximum(h, 0.0).astype(jnp.bfloat16)
    h = jnp.dot(h, w2_ref[...], preferred_element_type=jnp.float32) + b2_ref[...]
    h = jnp.maximum(h, 0.0).astype(jnp.bfloat16)

    # decoder: Linear -> ReLU -> Linear -> Sigmoid
    h = jnp.dot(h, w3_ref[...], preferred_element_type=jnp.float32) + b3_ref[...]
    h = jnp.maximum(h, 0.0).astype(jnp.bfloat16)
    y = jnp.dot(h, w4_ref[...], preferred_element_type=jnp.float32) + b4_ref[...]
    o_ref[...] = jax.nn.sigmoid(y).astype(o_ref.dtype)


def prepare_params(params):
    """One-time layout/dtype prep (call once, reuse across forward calls):
    weights -> bf16 for the MXU, biases stay f32 for the VPU bias-add."""
    prepared = {}
    for i in range(1, 5):
        prepared[f"w{i}"] = params[f"w{i}"].astype(jnp.bfloat16)
        prepared[f"b{i}"] = params[f"b{i}"].astype(jnp.float32)
    return prepared


def autoencoder_forward(x, prepared, *, batch_tile=None):
    """x: (B, input_size) float32. prepared: output of prepare_params().

    Returns (B, input_size) float32.
    """
    B, input_size = x.shape
    in_f, h2 = prepared["w1"].shape
    h = prepared["w2"].shape[1]
    assert in_f == input_size
    assert prepared["w3"].shape == (h, h2)
    assert prepared["w4"].shape == (h2, input_size)

    if batch_tile is None:
        batch_tile = _choose_batch_tile(B, _num_tensorcores())
    batch_tile = _round_up(batch_tile, SUBLANE_BF16)
    Bp = _round_up(B, batch_tile)

    # Pad the batch dim only (no-op when B is already a tile multiple, as in
    # the demo).  No lane padding: (tile, 64) blocks are legal because the
    # last dim equals the full array dim.
    xp = x if Bp == B else jnp.pad(x, ((0, Bp - B), (0, 0)))

    def resident(shape):
        # Constant block index every grid step -> stays resident in VMEM.
        return pl.BlockSpec(shape, lambda i: (0, 0))

    grid = (Bp // batch_tile,)

    w1, b1 = prepared["w1"], prepared["b1"]
    w2, b2 = prepared["w2"], prepared["b2"]
    w3, b3 = prepared["w3"], prepared["b3"]
    w4, b4 = prepared["w4"], prepared["b4"]

    flops = 2 * Bp * (in_f * h2 + h2 * h + h * h2 + h2 * input_size)
    bytes_accessed = (
        Bp * input_size * 4          # input stream (f32)
        + Bp * input_size * 4        # output stream (f32, unpadded lanes)
        + sum(a.size * a.dtype.itemsize for a in (w1, w2, w3, w4, b1, b2, b3, b4))
    )

    out = pl.pallas_call(
        autoencoder_kernel,
        out_shape=jax.ShapeDtypeStruct((Bp, input_size), jnp.float32),
        grid_spec=pltpu.PrefetchScalarGridSpec(
            num_scalar_prefetch=0,
            grid=grid,
            in_specs=[
                pl.BlockSpec((batch_tile, input_size), lambda i: (i, 0)),
                resident(w1.shape), resident(b1.shape),
                resident(w2.shape), resident(b2.shape),
                resident(w3.shape), resident(b3.shape),
                resident(w4.shape), resident(b4.shape),
            ],
            out_specs=pl.BlockSpec((batch_tile, input_size), lambda i: (i, 0)),
        ),
        compiler_params=pltpu.CompilerParams(
            dimension_semantics=("parallel",)),
        cost_estimate=pl.CostEstimate(
            flops=int(flops),
            transcendentals=int(2 * Bp * input_size),   # sigmoid: exp + recip
            bytes_accessed=int(bytes_accessed)),
    )(xp, w1, b1, w2, b2, w3, b3, w4, b4)

    return out if Bp == B else out[:B]


def init_params(key, input_size, hidden_size):
    """Deterministic init mimicking PyTorch Linear: U(-1/sqrt(fan_in), 1/sqrt(fan_in)).
    Weights are stored as (in_features, out_features) (transposed vs torch)."""
    dims = [
        (input_size, hidden_size * 2),   # encoder L1
        (hidden_size * 2, hidden_size),  # encoder L2
        (hidden_size, hidden_size * 2),  # decoder L1
        (hidden_size * 2, input_size),   # decoder L2
    ]
    params = {}
    for idx, (fan_in, fan_out) in enumerate(dims, start=1):
        key, kw, kb = jax.random.split(key, 3)
        bound = 1.0 / jnp.sqrt(jnp.float32(fan_in))
        params[f"w{idx}"] = jax.random.uniform(
            kw, (fan_in, fan_out), jnp.float32, -bound, bound)
        params[f"b{idx}"] = jax.random.uniform(
            kb, (1, fan_out), jnp.float32, -bound, bound)
    return params


def autoencoder_ref(x, params):
    """Pure-JAX f32 reference matching the PyTorch forward."""
    h = jnp.maximum(x @ params["w1"] + params["b1"], 0.0)
    h = jnp.maximum(h @ params["w2"] + params["b2"], 0.0)
    h = jnp.maximum(h @ params["w3"] + params["b3"], 0.0)
    return jax.nn.sigmoid(h @ params["w4"] + params["b4"])


if __name__ == "__main__":
    input_size = 64
    hidden_size = 32
    batch = 512   # 1-TC chips: one 512-row step; 2-TC chips: two 256-row steps

    key = jax.random.PRNGKey(0)
    key, kx = jax.random.split(key)
    x = jax.random.normal(kx, (batch, input_size), jnp.float32)
    params = init_params(key, input_size, hidden_size)

    prepared = prepare_params(params)          # one-time bf16 cast of weights
    fwd = jax.jit(autoencoder_forward)

    out = fwd(x, prepared)
    out = jax.block_until_ready(out)

    ref = autoencoder_ref(x, params)
    assert out.shape == (batch, input_size)
    err = float(jnp.max(jnp.abs(out - ref)))
    # bf16 matmul inputs (f32 accumulation) -> ~1e-3..1e-2 abs error post-sigmoid.
    assert err < 2e-2, f"mismatch vs JAX reference: max abs err = {err}"

    print("KERNEL_OK")
</pallas_src>

<mosaic_0001>
module attributes {stable_mosaic.version = 11 : i64} {
  func.func @autoencoder_kernel(%arg0: i32, %arg1: memref<512x64xf32, #tpu.memory_space<vmem>>, %arg2: memref<64x64xbf16, #tpu.memory_space<vmem>>, %arg3: memref<1x64xf32, #tpu.memory_space<vmem>>, %arg4: memref<64x32xbf16, #tpu.memory_space<vmem>>, %arg5: memref<1x32xf32, #tpu.memory_space<vmem>>, %arg6: memref<32x64xbf16, #tpu.memory_space<vmem>>, %arg7: memref<1x64xf32, #tpu.memory_space<vmem>>, %arg8: memref<64x64xbf16, #tpu.memory_space<vmem>>, %arg9: memref<1x64xf32, #tpu.memory_space<vmem>>, %arg10: memref<512x64xf32, #tpu.memory_space<vmem>>) attributes {dimension_semantics = [#tpu.dimension_semantics<parallel>], iteration_bounds = array<i64: 1>, scalar_prefetch = 0 : i64, scratch_operands = 0 : i64, tpu.core_type = #tpu.core_type<tc>, window_params = [{transform_indices = @transform_0, window_bounds = array<i64: 512, 64>}, {pipeline_mode = #tpu.pipeline_mode<synchronous>, transform_indices = @transform_1, window_bounds = array<i64: 64, 64>}, {pipeline_mode = #tpu.pipeline_mode<synchronous>, transform_indices = @transform_2, window_bounds = array<i64: 1, 64>}, {pipeline_mode = #tpu.pipeline_mode<synchronous>, transform_indices = @transform_3, window_bounds = array<i64: 64, 32>}, {pipeline_mode = #tpu.pipeline_mode<synchronous>, transform_indices = @transform_4, window_bounds = array<i64: 1, 32>}, {pipeline_mode = #tpu.pipeline_mode<synchronous>, transform_indices = @transform_5, window_bounds = array<i64: 32, 64>}, {pipeline_mode = #tpu.pipeline_mode<synchronous>, transform_indices = @transform_6, window_bounds = array<i64: 1, 64>}, {pipeline_mode = #tpu.pipeline_mode<synchronous>, transform_indices = @transform_7, window_bounds = array<i64: 64, 64>}, {pipeline_mode = #tpu.pipeline_mode<synchronous>, transform_indices = @transform_8, window_bounds = array<i64: 1, 64>}, {transform_indices = @transform_9, window_bounds = array<i64: 512, 64>}]} {
    %c0 = arith.constant 0 : index
    %c0_0 = arith.constant 0 : index
    %0 = vector.load %arg1[%c0, %c0_0] : memref<512x64xf32, #tpu.memory_space<vmem>>, vector<512x64xf32>
    %1 = arith.truncf %0 : vector<512x64xf32> to vector<512x64xbf16>
    %c0_1 = arith.constant 0 : index
    %c0_2 = arith.constant 0 : index
    %2 = vector.load %arg2[%c0_1, %c0_2] : memref<64x64xbf16, #tpu.memory_space<vmem>>, vector<64x64xbf16>
    %cst = arith.constant dense<0.000000e+00> : vector<512x64xf32>
    %3 = tpu.matmul %1, %2, %cst {dimension_numbers = #tpu.dot_dimension_numbers<[1], [0], [0], [1], [0, 0, 1, 1], [], []>} : vector<512x64xbf16>, vector<64x64xbf16>, vector<512x64xf32> -> vector<512x64xf32>
    %c0_3 = arith.constant 0 : index
    %c0_4 = arith.constant 0 : index
    %4 = vector.load %arg3[%c0_3, %c0_4] : memref<1x64xf32, #tpu.memory_space<vmem>>, vector<1x64xf32>
    %5 = vector.broadcast %4 : vector<1x64xf32> to vector<512x64xf32>
    %6 = arith.addf %3, %5 : vector<512x64xf32>
    %cst_5 = arith.constant 0.000000e+00 : f32
    %7 = vector.broadcast %cst_5 : f32 to vector<512x64xf32>
    %8 = arith.maximumf %6, %7 : vector<512x64xf32>
    %9 = arith.truncf %8 : vector<512x64xf32> to vector<512x64xbf16>
    %c0_6 = arith.constant 0 : index
    %c0_7 = arith.constant 0 : index
    %10 = vector.load %arg4[%c0_6, %c0_7] : memref<64x32xbf16, #tpu.memory_space<vmem>>, vector<64x32xbf16>
    %cst_8 = arith.constant dense<0.000000e+00> : vector<512x32xf32>
    %11 = tpu.matmul %9, %10, %cst_8 {dimension_numbers = #tpu.dot_dimension_numbers<[1], [0], [0], [1], [0, 0, 1, 1], [], []>} : vector<512x64xbf16>, vector<64x32xbf16>, vector<512x32xf32> -> vector<512x32xf32>
    %c0_9 = arith.constant 0 : index
    %c0_10 = arith.constant 0 : index
    %12 = vector.load %arg5[%c0_9, %c0_10] : memref<1x32xf32, #tpu.memory_space<vmem>>, vector<1x32xf32>
    %13 = vector.broadcast %12 : vector<1x32xf32> to vector<512x32xf32>
    %14 = arith.addf %11, %13 : vector<512x32xf32>
    %cst_11 = arith.constant 0.000000e+00 : f32
    %15 = vector.broadcast %cst_11 : f32 to vector<512x32xf32>
    %16 = arith.maximumf %14, %15 : vector<512x32xf32>
    %17 = arith.truncf %16 : vector<512x32xf32> to vector<512x32xbf16>
    %c0_12 = arith.constant 0 : index
    %c0_13 = arith.constant 0 : index
    %18 = vector.load %arg6[%c0_12, %c0_13] : memref<32x64xbf16, #tpu.memory_space<vmem>>, vector<32x64xbf16>
    %cst_14 = arith.constant dense<0.000000e+00> : vector<512x64xf32>
    %19 = tpu.matmul %17, %18, %cst_14 {dimension_numbers = #tpu.dot_dimension_numbers<[1], [0], [0], [1], [0, 0, 1, 1], [], []>} : vector<512x32xbf16>, vector<32x64xbf16>, vector<512x64xf32> -> vector<512x64xf32>
    %c0_15 = arith.constant 0 : index
    %c0_16 = arith.constant 0 : index
    %20 = vector.load %arg7[%c0_15, %c0_16] : memref<1x64xf32, #tpu.memory_space<vmem>>, vector<1x64xf32>
    %21 = vector.broadcast %20 : vector<1x64xf32> to vector<512x64xf32>
    %22 = arith.addf %19, %21 : vector<512x64xf32>
    %cst_17 = arith.constant 0.000000e+00 : f32
    %23 = vector.broadcast %cst_17 : f32 to vector<512x64xf32>
    %24 = arith.maximumf %22, %23 : vector<512x64xf32>
    %25 = arith.truncf %24 : vector<512x64xf32> to vector<512x64xbf16>
    %c0_18 = arith.constant 0 : index
    %c0_19 = arith.constant 0 : index
    %26 = vector.load %arg8[%c0_18, %c0_19] : memref<64x64xbf16, #tpu.memory_space<vmem>>, vector<64x64xbf16>
    %cst_20 = arith.constant dense<0.000000e+00> : vector<512x64xf32>
    %27 = tpu.matmul %25, %26, %cst_20 {dimension_numbers = #tpu.dot_dimension_numbers<[1], [0], [0], [1], [0, 0, 1, 1], [], []>} : vector<512x64xbf16>, vector<64x64xbf16>, vector<512x64xf32> -> vector<512x64xf32>
    %c0_21 = arith.constant 0 : index
    %c0_22 = arith.constant 0 : index
    %28 = vector.load %arg9[%c0_21, %c0_22] : memref<1x64xf32, #tpu.memory_space<vmem>>, vector<1x64xf32>
    %29 = vector.broadcast %28 : vector<1x64xf32> to vector<512x64xf32>
    %30 = arith.addf %27, %29 : vector<512x64xf32>
    %31 = arith.negf %30 : vector<512x64xf32>
    %32 = math.exp %31 : vector<512x64xf32>
    %cst_23 = arith.constant 1.000000e+00 : f32
    %33 = vector.broadcast %cst_23 : f32 to vector<512x64xf32>
    %34 = arith.addf %33, %32 : vector<512x64xf32>
    %35 = arith.divf %33, %34 : vector<512x64xf32>
    %c0_24 = arith.constant 0 : index
    %c0_25 = arith.constant 0 : index
    %36 = vector.load %arg10[%c0_24, %c0_25] : memref<512x64xf32, #tpu.memory_space<vmem>>, vector<512x64xf32>
    tpu.vector_store %arg10[%c0_24, %c0_25], %35 {strides = array<i32>} : memref<512x64xf32, #tpu.memory_space<vmem>>, vector<512x64xf32>,
    return
  }
  func.func @transform_0(%arg0: i32) -> (i32, i32) {
    %c0_i32 = arith.constant 0 : i32
    %c0_i32_0 = arith.constant 0 : i32
    return %arg0, %c0_i32 : i32, i32
  }
  func.func @transform_1(%arg0: i32) -> (i32, i32) {
    %c0_i32 = arith.constant 0 : i32
    %c0_i32_0 = arith.constant 0 : i32
    %c0_i32_1 = arith.constant 0 : i32
    return %c0_i32, %c0_i32_0 : i32, i32
  }
  func.func @transform_2(%arg0: i32) -> (i32, i32) {
    %c0_i32 = arith.constant 0 : i32
    %c0_i32_0 = arith.constant 0 : i32
    %c0_i32_1 = arith.constant 0 : i32
    return %c0_i32, %c0_i32_0 : i32, i32
  }
  func.func @transform_3(%arg0: i32) -> (i32, i32) {
    %c0_i32 = arith.constant 0 : i32
    %c0_i32_0 = arith.constant 0 : i32
    %c0_i32_1 = arith.constant 0 : i32
    return %c0_i32, %c0_i32_0 : i32, i32
  }
  func.func @transform_4(%arg0: i32) -> (i32, i32) {
    %c0_i32 = arith.constant 0 : i32
    %c0_i32_0 = arith.constant 0 : i32
    %c0_i32_1 = arith.constant 0 : i32
    return %c0_i32, %c0_i32_0 : i32, i32
  }
  func.func @transform_5(%arg0: i32) -> (i32, i32) {
    %c0_i32 = arith.constant 0 : i32
    %c0_i32_0 = arith.constant 0 : i32
    %c0_i32_1 = arith.constant 0 : i32
    return %c0_i32, %c0_i32_0 : i32, i32
  }
  func.func @transform_6(%arg0: i32) -> (i32, i32) {
    %c0_i32 = arith.constant 0 : i32
    %c0_i32_0 = arith.constant 0 : i32
    %c0_i32_1 = arith.constant 0 : i32
    return %c0_i32, %c0_i32_0 : i32, i32
  }
  func.func @transform_7(%arg0: i32) -> (i32, i32) {
    %c0_i32 = arith.constant 0 : i32
    %c0_i32_0 = arith.constant 0 : i32
    %c0_i32_1 = arith.constant 0 : i32
    return %c0_i32, %c0_i32_0 : i32, i32
  }
  func.func @transform_8(%arg0: i32) -> (i32, i32) {
    %c0_i32 = arith.constant 0 : i32
    %c0_i32_0 = arith.constant 0 : i32
    %c0_i32_1 = arith.constant 0 : i32
    return %c0_i32, %c0_i32_0 : i32, i32
  }
  func.func @transform_9(%arg0: i32) -> (i32, i32) {
    %c0_i32 = arith.constant 0 : i32
    %c0_i32_0 = arith.constant 0 : i32
    return %arg0, %c0_i32 : i32, i32
  }
}

</mosaic_0001>

<bundles_post_ra>
// kernel: autoencoder_forward.1
= control target key start
LH: loop header
LB: loop body
LE: loop exit
PB: predicated region body
PF: predicated region fallthrough
CT: control target
= control target key end

     0   :  { %vm165_vm0 = vcmask 523264   ;;  %vm944_vm1 = vcmask 261120   ;;  %s4530_s1 = inlined_call_operand.vmem [shape: bf16[64,64], index: 1, kind: input, shape index: {}]   ;;  %s4531_s2 = inlined_call_operand.vmem [shape: f32[1,64], index: 2, kind: input, shape index: {}]   ;;  %s4532_s0 = inlined_call_operand.vmem [shape: f32[512,64], index: 0, kind: input, shape index: {}]   ;;  %s4533_s3 = inlined_call_operand.vmem [shape: bf16[64,32], index: 3, kind: input, shape index: {}]   ;;  %s4534_s4 = inlined_call_operand.vmem [shape: f32[1,32], index: 4, kind: input, shape index: {}]   ;;  %s4535_s5 = inlined_call_operand.vmem [shape: bf16[32,64], index: 5, kind: input, shape index: {}]   ;;  %s4536_s6 = inlined_call_operand.vmem [shape: f32[1,64], index: 6, kind: input, shape index: {}]   ;;  %s4537_s7 = inlined_call_operand.vmem [shape: bf16[64,64], index: 7, kind: input, shape index: {}]   ;;  %s4538_s8 = inlined_call_operand.vmem [shape: f32[1,64], index: 8, kind: input, shape index: {}]   ;;  %s4539_s9 = inlined_call_operand.vmem [shape: f32[512,64], index: 9, kind: output, shape index: {}]  }
   0x1   :  { %v3142_v0 = vld [vmem:[%s4530_s1 + $0x18] sm:$0xff]  ;;  %v3141_v1 = vld [vmem:[%s4530_s1 + $0x10] sm:$0xff]  ;;  %v3140_v2 = vld [vmem:[%s4530_s1 + $0x8] sm:$0xff] }
   0x2   :  { %266 = vmatpush.bf16.msra.mxu0 %v3142_v0  ;;  %v3139_v3 = vld [vmem:[%s4530_s1] sm:$0xff]  ;;  %v34_v5 = vld [vmem:[%s4532_s0 + $0x8] sm:$0xff]  ;;  %v35_v7 = vld [vmem:[%s4532_s0 + $0x10] sm:$0xff] }
   0x3   :  { %v33_v4 = vld [vmem:[%s4532_s0] sm:$0xff]  ;;  %v36_v8 = vld [vmem:[%s4532_s0 + $0x18] sm:$0xff]  ;;  %v38_v11 = vld [vmem:[%s4532_s0 + $0x28] sm:$0xff] }
   0x4   :  { %v97_v6 = vpack.c.bf16 %v34_v5, %v33_v4  ;;  %v98_v9 = vpack.c.bf16 %v36_v8, %v35_v7  ;;  %v37_v10 = vld [vmem:[%s4532_s0 + $0x20] sm:$0xff]  ;;  %v39_v13 = vld [vmem:[%s4532_s0 + $0x30] sm:$0xff]  ;;  %v40_v14 = vld [vmem:[%s4532_s0 + $0x38] sm:$0xff] }
   0x5   :  { %v99_v12 = vpack.c.bf16 %v38_v11, %v37_v10  ;;  %v100_v15 = vpack.c.bf16 %v40_v14, %v39_v13  ;;  %v41_v16 = vld [vmem:[%s4532_s0 + $0x40] sm:$0xff]  ;;  %v42_v17 = vld [vmem:[%s4532_s0 + $0x48] sm:$0xff]  ;;  %v43_v19 = vld [vmem:[%s4532_s0 + $0x50] sm:$0xff] }
   0x6   :  { %267 = vmatpush.bf16.msra.mxu0 %v3141_v1  ;;  %v101_v18 = vpack.c.bf16 %v42_v17, %v41_v16  ;;  %v44_v20 = vld [vmem:[%s4532_s0 + $0x58] sm:$0xff]  ;;  %v45_v22 = vld [vmem:[%s4532_s0 + $0x60] sm:$0xff]  ;;  %v46_v23 = vld [vmem:[%s4532_s0 + $0x68] sm:$0xff] }
   0x7   :  { %v102_v21 = vpack.c.bf16 %v44_v20, %v43_v19  ;;  %v3146_v24 = vld [vmem:[%s4533_s3 + $0x18] sm:$0xff]  ;;  %v103_v25 = vpack.c.bf16 %v46_v23, %v45_v22  ;;  %v3145_v26 = vld [vmem:[%s4533_s3 + $0x10] sm:$0xff]  ;;  %v3144_v27 = vld [vmem:[%s4533_s3 + $0x8] sm:$0xff] }
   0x8   :  { %663 = vmatpush.bf16.msra.mxu1 %v3146_v24  ;;  %v3143_v28 = vld [vmem:[%s4533_s3] sm:$0xff]  ;;  %v47_v29 = vld [vmem:[%s4532_s0 + $0x70] sm:$0xff]  ;;  %v48_v30 = vld [vmem:[%s4532_s0 + $0x78] sm:$0xff] }
   0x9   :  { %v104_v31 = vpack.c.bf16 %v48_v30, %v47_v29  ;;  %v49_v32 = vld [vmem:[%s4532_s0 + $0x80] sm:$0xff]  ;;  %v50_v33 = vld [vmem:[%s4532_s0 + $0x88] sm:$0xff]  ;;  %v51_v42 = vld [vmem:[%s4532_s0 + $0x90] sm:$0xff] }
   0xa   :  { %268 = vmatpush.bf16.msra.mxu0 %v3140_v2  ;;  %v105_v34 = vpack.c.bf16 %v50_v33, %v49_v32  ;;  %v3560_v36 = vld [vmem:[%s4531_s2] ss:$0 sm:$0xff]  ;;  %v52_v43 = vld [vmem:[%s4532_s0 + $0x98] sm:$0xff]  ;;  %v54_v53 = vld [vmem:[%s4532_s0 + $0xa8] sm:$0xff] }
   0xb   :  { %v106_v45 = vpack.c.bf16 %v52_v43, %v51_v42  ;;  %v53_v52 = vld [vmem:[%s4532_s0 + $0xa0] sm:$0xff]  ;;  %v55_v62 = vld [vmem:[%s4532_s0 + $0xb0] sm:$0xff]  ;;  %v56_v63 = vld [vmem:[%s4532_s0 + $0xb8] sm:$0xff] }
   0xc   :  { %664 = vmatpush.bf16.msra.mxu1 %v3145_v26  ;;  %v107_v55 = vpack.c.bf16 %v54_v53, %v53_v52  ;;  %v108_v1 = vpack.c.bf16 %v56_v63, %v55_v62  ;;  %v57_v8 = vld [vmem:[%s4532_s0 + $0xc0] sm:$0xff]  ;;  %v60_v19 = vld [vmem:[%s4532_s0 + $0xd8] sm:$0xff]  ;;  %v62_v29 = vld [vmem:[%s4532_s0 + $0xe8] sm:$0xff] }
   0xd   :  { %v66_v52 = vld [vmem:[%s4532_s0 + $0x108] sm:$0xff]  ;;  %v67_v62 = vld [vmem:[%s4532_s0 + $0x110] sm:$0xff]  ;;  %v68_v63 = vld [vmem:[%s4532_s0 + $0x118] sm:$0xff] }
   0xe   :  { %269 = vmatpush.bf16.msra.mxu0 %v3139_v3 }
  0x10   :  { %665 = vmatpush.bf16.msra.mxu1 %v3144_v27 }
  0x11   :  { %2907 = vmatmul.msk.bf16.vlgmr.msra.gmra.mxu0 %vm165_vm0, %v97_v6 }
  0x14   :  { %666 = vmatpush.bf16.msra.mxu1 %v3143_v28  ;;  %v61_v28 = vld [vmem:[%s4532_s0 + $0xe0] sm:$0xff] }
  0x21   :  { %2908 = vmatmul.msk.bf16.gmra.mxu0 %vm165_vm0, %v98_v9  ;;  %v58_v9 = vld [vmem:[%s4532_s0 + $0xc8] sm:$0xff] }
  0x22   :  { %v109_v11 = vpack.c.bf16 %v58_v9, %v57_v8 }
  0x31   :  { %2909 = vmatmul.msk.bf16.gmra.mxu0 %vm165_vm0, %v99_v12 }
  0x41   :  { %2910 = vmatmul.msk.bf16.gmra.mxu0 %vm165_vm0, %v100_v15 }
  0x51   :  { %2911 = vmatmul.msk.bf16.gmra.mxu0 %vm165_vm0, %v101_v18  ;;  %v59_v18 = vld [vmem:[%s4532_s0 + $0xd0] sm:$0xff] }
  0x61   :  { %2912 = vmatmul.msk.bf16.gmra.mxu0 %vm165_vm0, %v102_v21  ;;  %v110_v21 = vpack.c.bf16 %v60_v19, %v59_v18 }
  0x71   :  { %2913 = vmatmul.msk.bf16.gmra.mxu0 %vm165_vm0, %v103_v25 }
  0x81   :  { %2914 = vmatmul.msk.bf16.gmra.mxu0 %vm165_vm0, %v104_v31  ;;  %v111_v31 = vpack.c.bf16 %v62_v29, %v61_v28 }
  0x8e   :  { %v271_v35 = vpop.f32.mrf.mxu0 }
  0x8f   :  { %v272_v37 = vadd.f32 %v3560_v36, %v271_v35 }
  0x91   :  { %2915 = vmatmul.msk.bf16.gmra.mxu0 %vm165_vm0, %v105_v34  ;;  %v431_v40 = vmax.f32 %v272_v37, 0.0 }
  0x96   :  { %v273_v38 = vpop.f32.mrf.mxu0 }
  0x97   :  { %v274_v39 = vadd.f32 %v3560_v36, %v273_v38 }
  0x99   :  { %v432_v41 = vmax.f32 %v274_v39, 0.0  ;;  %v63_v39 = vld [vmem:[%s4532_s0 + $0xf0] sm:$0xff] }
  0x9b   :  { %v495_v44 = vpack.c.bf16 %v432_v41, %v431_v40  ;;  %v64_v40 = vld [vmem:[%s4532_s0 + $0xf8] sm:$0xff] }
  0x9c   :  { %v112_v42 = vpack.c.bf16 %v64_v40, %v63_v39 }
  0x9d   :  { %2955 = vmatmul.msk.bf16.vlgmr.msra.gmra.mxu1 %vm165_vm0, %v495_v44  ;;  %v3148_v44 = vld [vmem:[%s4535_s5 + $0x8] sm:$0xff] }
  0x9e   :  { %v276_v46 = vpop.f32.mrf.mxu0  ;;  %1047 = vmatpush.bf16.msra.mxu2 %v3148_v44 }
  0x9f   :  { %v277_v47 = vadd.f32 %v3560_v36, %v276_v46 }
  0xa1   :  { %2916 = vmatmul.msk.bf16.gmra.mxu0 %vm165_vm0, %v106_v45  ;;  %v433_v50 = vmax.f32 %v277_v47, 0.0  ;;  %v3147_v45 = vld [vmem:[%s4535_s5] sm:$0xff] }
  0xa2   :  { %1048 = vmatpush.bf16.msra.mxu2 %v3147_v45 }
  0xa6   :  { %v278_v48 = vpop.f32.mrf.mxu0 }
  0xa7   :  { %v279_v49 = vadd.f32 %v3560_v36, %v278_v48 }
  0xa9   :  { %v434_v51 = vmax.f32 %v279_v49, 0.0 }
  0xab   :  { %v496_v54 = vpack.c.bf16 %v434_v51, %v433_v50  ;;  %v65_v51 = vld [vmem:[%s4532_s0 + $0x100] sm:$0xff] }
  0xad   :  { %2956 = vmatmul.msk.bf16.gmra.mxu1 %vm165_vm0, %v496_v54  ;;  %v113_v54 = vpack.c.bf16 %v66_v52, %v65_v51  ;;  %v73_v51 = vld [vmem:[%s4532_s0 + $0x140] sm:$0xff]  ;;  %v74_v52 = vld [vmem:[%s4532_s0 + $0x148] sm:$0xff] }
  0xae   :  { %v281_v56 = vpop.f32.mrf.mxu0 }
  0xaf   :  { %v282_v57 = vadd.f32 %v3560_v36, %v281_v56 }
  0xb1   :  { %2917 = vmatmul.msk.bf16.gmra.mxu0 %vm165_vm0, %v107_v55  ;;  %v435_v60 = vmax.f32 %v282_v57, 0.0 }
  0xb6   :  { %v283_v58 = vpop.f32.mrf.mxu0 }
  0xb7   :  { %v284_v59 = vadd.f32 %v3560_v36, %v283_v58 }
  0xb9   :  { %v436_v61 = vmax.f32 %v284_v59, 0.0 }
  0xbb   :  { %v497_v0 = vpack.c.bf16 %v436_v61, %v435_v60 }
  0xbd   :  { %2957 = vmatmul.msk.bf16.gmra.mxu1 %vm165_vm0, %v497_v0 }
  0xbe   :  { %v286_v2 = vpop.f32.mrf.mxu0 }
  0xbf   :  { %v287_v3 = vadd.f32 %v3560_v36, %v286_v2  ;;  %v114_v2 = vpack.c.bf16 %v68_v63, %v67_v62 }
  0xc1   :  { %2918 = vmatmul.msk.bf16.gmra.mxu0 %vm165_vm0, %v108_v1  ;;  %v437_v6 = vmax.f32 %v287_v3, 0.0  ;;  %v3660_v1 = vld [vmem:[%s4534_s4] ss:$0 sm:$0xff] }
  0xc6   :  { %v288_v4 = vpop.f32.mrf.mxu0 }
  0xc7   :  { %v289_v5 = vadd.f32 %v3560_v36, %v288_v4 }
  0xc9   :  { %v438_v7 = vmax.f32 %v289_v5, 0.0 }
  0xcb   :  { %v498_v10 = vpack.c.bf16 %v438_v7, %v437_v6 }
  0xcd   :  { %2958 = vmatmul.msk.bf16.gmra.mxu1 %vm165_vm0, %v498_v10 }
  0xce   :  { %v291_v12 = vpop.f32.mrf.mxu0 }
  0xcf   :  { %v292_v13 = vadd.f32 %v3560_v36, %v291_v12 }
  0xd1   :  { %2919 = vmatmul.msk.bf16.gmra.mxu0 %vm165_vm0, %v109_v11  ;;  %v439_v16 = vmax.f32 %v292_v13, 0.0 }
  0xd6   :  { %v293_v14 = vpop.f32.mrf.mxu0 }
  0xd7   :  { %v294_v15 = vadd.f32 %v3560_v36, %v293_v14 }
  0xd9   :  { %v440_v17 = vmax.f32 %v294_v15, 0.0 }
  0xdb   :  { %v499_v20 = vpack.c.bf16 %v440_v17, %v439_v16  ;;  %v69_v16 = vld [vmem:[%s4532_s0 + $0x120] sm:$0xff]  ;;  %v70_v17 = vld [vmem:[%s4532_s0 + $0x128] sm:$0xff] }
  0xdc   :  { %v115_v19 = vpack.c.bf16 %v70_v17, %v69_v16 }
  0xdd   :  { %2959 = vmatmul.msk.bf16.gmra.mxu1 %vm165_vm0, %v499_v20 }
  0xde   :  { %v296_v22 = vpop.f32.mrf.mxu0 }
  0xdf   :  { %v297_v23 = vadd.f32 %v3560_v36, %v296_v22 }
  0xe1   :  { %2920 = vmatmul.msk.bf16.gmra.mxu0 %vm165_vm0, %v110_v21  ;;  %v441_v26 = vmax.f32 %v297_v23, 0.0 }
  0xe6   :  { %v298_v24 = vpop.f32.mrf.mxu0 }
  0xe7   :  { %v299_v25 = vadd.f32 %v3560_v36, %v298_v24 }
  0xe9   :  { %v442_v27 = vmax.f32 %v299_v25, 0.0 }
  0xeb   :  { %v500_v30 = vpack.c.bf16 %v442_v27, %v441_v26 }
  0xed   :  { %2960 = vmatmul.msk.bf16.gmra.mxu1 %vm165_vm0, %v500_v30 }
  0xee   :  { %v301_v32 = vpop.f32.mrf.mxu0 }
  0xef   :  { %v302_v33 = vadd.f32 %v3560_v36, %v301_v32 }
  0xf1   :  { %2921 = vmatmul.msk.bf16.gmra.mxu0 %vm165_vm0, %v111_v31  ;;  %v443_v37 = vmax.f32 %v302_v33, 0.0  ;;  %v71_v33 = vld [vmem:[%s4532_s0 + $0x130] sm:$0xff] }
  0xf6   :  { %v303_v34 = vpop.f32.mrf.mxu0 }
  0xf7   :  { %v304_v35 = vadd.f32 %v3560_v36, %v303_v34  ;;  %v72_v34 = vld [vmem:[%s4532_s0 + $0x138] sm:$0xff] }
  0xf9   :  { %v444_v38 = vmax.f32 %v304_v35, 0.0 }
  0xfb   :  { %v501_v41 = vpack.c.bf16 %v444_v38, %v443_v37  ;;  %v116_v37 = vpack.c.bf16 %v72_v34, %v71_v33 }
  0xfd   :  { %2961 = vmatmul.msk.bf16.gmra.mxu1 %vm165_vm0, %v501_v41 }
  0xfe   :  { %v306_v43 = vpop.f32.mrf.mxu0 }
  0xff   :  { %v307_v46 = vadd.f32 %v3560_v36, %v306_v43 }
 0x101   :  { %2922 = vmatmul.msk.bf16.gmra.mxu0 %vm165_vm0, %v112_v42  ;;  %v445_v49 = vmax.f32 %v307_v46, 0.0 }
 0x106   :  { %v308_v47 = vpop.f32.mrf.mxu0 }
 0x107   :  { %v309_v48 = vadd.f32 %v3560_v36, %v308_v47 }
 0x109   :  { %v446_v50 = vmax.f32 %v309_v48, 0.0 }
 0x10b   :  { %v502_v53 = vpack.c.bf16 %v446_v50, %v445_v49 }
 0x10d   :  { %2962 = vmatmul.msk.bf16.gmra.mxu1 %vm165_vm0, %v502_v53 }
 0x10e   :  { %v311_v55 = vpop.f32.mrf.mxu0 }
 0x10f   :  { %v312_v56 = vadd.f32 %v3560_v36, %v311_v55 }
 0x111   :  { %2923 = vmatmul.msk.bf16.gmra.mxu0 %vm165_vm0, %v113_v54  ;;  %v447_v59 = vmax.f32 %v312_v56, 0.0  ;;  %v117_v54 = vpack.c.bf16 %v74_v52, %v73_v51 }
 0x116   :  { %v313_v57 = vpop.f32.mrf.mxu0 }
 0x117   :  { %v314_v58 = vadd.f32 %v3560_v36, %v313_v57 }
 0x119   :  { %v448_v60 = vmax.f32 %v314_v58, 0.0 }
 0x11a   :  { %v668_v61 = vpop.f32.mrf.mxu1 }
 0x11b   :  { %v503_v0 = vpack.c.bf16 %v448_v60, %v447_v59  ;;  %v669_v4 = vadd.f32 %v3660_v1, %v668_v61 }
 0x11d   :  { %2963 = vmatmul.msk.bf16.gmra.mxu1 %vm165_vm0, %v503_v0  ;;  %v828_v7 = vmax.f32 %v669_v4, 0.0 }
 0x11e   :  { %v316_v3 = vpop.f32.mrf.mxu0 }
 0x11f   :  { %v317_v8 = vadd.f32 %v3560_v36, %v316_v3 }
 0x121   :  { %2924 = vmatmul.msk.bf16.gmra.mxu0 %vm165_vm0, %v114_v2  ;;  %v449_v13 = vmax.f32 %v317_v8, 0.0 }
 0x122   :  { %v670_v5 = vpop.f32.mrf.mxu1 }
 0x123   :  { %v671_v6 = vadd.f32 %v3660_v1, %v670_v5  ;;  %v75_v5 = vld [vmem:[%s4532_s0 + $0x150] sm:$0xff] }
 0x125   :  { %v829_v9 = vmax.f32 %v671_v6, 0.0  ;;  %v76_v6 = vld [vmem:[%s4532_s0 + $0x158] sm:$0xff] }
 0x126   :  { %v318_v10 = vpop.f32.mrf.mxu0  ;;  %v118_v8 = vpack.c.bf16 %v76_v6, %v75_v5 }
 0x127   :  { %v319_v11 = vadd.f32 %v3560_v36, %v318_v10  ;;  %v892_v12 = vpack.c.bf16 %v829_v9, %v828_v7 }
 0x129   :  { %v450_v14 = vmax.f32 %v319_v11, 0.0  ;;  %2995 = vmatmul.msk.bf16.vlgmr.msra.gmra.mxu2 %vm944_vm1, %v892_v12 }
 0x12a   :  { %v673_v15 = vpop.f32.mrf.mxu1 }
 0x12b   :  { %v504_v18 = vpack.c.bf16 %v450_v14, %v449_v13  ;;  %v674_v21 = vadd.f32 %v3660_v1, %v673_v15 }
 0x12d   :  { %2964 = vmatmul.msk.bf16.gmra.mxu1 %vm165_vm0, %v504_v18  ;;  %v830_v24 = vmax.f32 %v674_v21, 0.0 }
 0x12e   :  { %v321_v20 = vpop.f32.mrf.mxu0 }
 0x12f   :  { %v322_v25 = vadd.f32 %v3560_v36, %v321_v20 }
 0x131   :  { %2925 = vmatmul.msk.bf16.gmra.mxu0 %vm165_vm0, %v115_v19  ;;  %v451_v30 = vmax.f32 %v322_v25, 0.0 }
 0x132   :  { %v675_v22 = vpop.f32.mrf.mxu1 }
 0x133   :  { %v676_v23 = vadd.f32 %v3660_v1, %v675_v22  ;;  %v77_v22 = vld [vmem:[%s4532_s0 + $0x160] sm:$0xff] }
 0x135   :  { %v831_v26 = vmax.f32 %v676_v23, 0.0  ;;  %v78_v23 = vld [vmem:[%s4532_s0 + $0x168] sm:$0xff] }
 0x136   :  { %v323_v27 = vpop.f32.mrf.mxu0  ;;  %v119_v25 = vpack.c.bf16 %v78_v23, %v77_v22 }
 0x137   :  { %v324_v28 = vadd.f32 %v3560_v36, %v323_v27  ;;  %v893_v29 = vpack.c.bf16 %v831_v26, %v830_v24 }
 0x139   :  { %v452_v31 = vmax.f32 %v324_v28, 0.0  ;;  %2996 = vmatmul.msk.bf16.gmra.mxu2 %vm944_vm1, %v893_v29 }
 0x13a   :  { %v678_v32 = vpop.f32.mrf.mxu1 }
 0x13b   :  { %v505_v35 = vpack.c.bf16 %v452_v31, %v451_v30  ;;  %v679_v39 = vadd.f32 %v3660_v1, %v678_v32 }
 0x13d   :  { %2965 = vmatmul.msk.bf16.gmra.mxu1 %vm165_vm0, %v505_v35  ;;  %v832_v42 = vmax.f32 %v679_v39, 0.0 }
 0x13e   :  { %v326_v38 = vpop.f32.mrf.mxu0 }
 0x13f   :  { %v327_v43 = vadd.f32 %v3560_v36, %v326_v38 }
 0x141   :  { %2926 = vmatmul.msk.bf16.gmra.mxu0 %vm165_vm0, %v116_v37  ;;  %v453_v48 = vmax.f32 %v327_v43, 0.0 }
 0x142   :  { %v680_v40 = vpop.f32.mrf.mxu1 }
 0x143   :  { %v681_v41 = vadd.f32 %v3660_v1, %v680_v40  ;;  %v79_v40 = vld [vmem:[%s4532_s0 + $0x170] sm:$0xff] }
 0x145   :  { %v833_v44 = vmax.f32 %v681_v41, 0.0  ;;  %v80_v41 = vld [vmem:[%s4532_s0 + $0x178] sm:$0xff] }
 0x146   :  { %v328_v45 = vpop.f32.mrf.mxu0  ;;  %v120_v43 = vpack.c.bf16 %v80_v41, %v79_v40 }
 0x147   :  { %v329_v46 = vadd.f32 %v3560_v36, %v328_v45  ;;  %v894_v47 = vpack.c.bf16 %v833_v44, %v832_v42 }
 0x149   :  { %v454_v49 = vmax.f32 %v329_v46, 0.0  ;;  %2997 = vmatmul.msk.bf16.gmra.mxu2 %vm944_vm1, %v894_v47 }
 0x14a   :  { %v683_v50 = vpop.f32.mrf.mxu1 }
 0x14b   :  { %v506_v53 = vpack.c.bf16 %v454_v49, %v453_v48  ;;  %v684_v56 = vadd.f32 %v3660_v1, %v683_v50 }
 0x14d   :  { %2966 = vmatmul.msk.bf16.gmra.mxu1 %vm165_vm0, %v506_v53  ;;  %v834_v59 = vmax.f32 %v684_v56, 0.0 }
 0x14e   :  { %v331_v55 = vpop.f32.mrf.mxu0 }
 0x14f   :  { %v332_v60 = vadd.f32 %v3560_v36, %v331_v55 }
 0x151   :  { %2927 = vmatmul.msk.bf16.gmra.mxu0 %vm165_vm0, %v117_v54  ;;  %v455_v2 = vmax.f32 %v332_v60, 0.0 }
 0x152   :  { %v685_v57 = vpop.f32.mrf.mxu1 }
 0x153   :  { %v686_v58 = vadd.f32 %v3660_v1, %v685_v57  ;;  %v81_v57 = vld [vmem:[%s4532_s0 + $0x180] sm:$0xff] }
 0x155   :  { %v835_v61 = vmax.f32 %v686_v58, 0.0  ;;  %v82_v58 = vld [vmem:[%s4532_s0 + $0x188] sm:$0xff] }
 0x156   :  { %v333_v62 = vpop.f32.mrf.mxu0 }
 0x157   :  { %v334_v63 = vadd.f32 %v3560_v36, %v333_v62  ;;  %v895_v0 = vpack.c.bf16 %v835_v61, %v834_v59  ;;  %v3152_v59 = vld [vmem:[%s4537_s7 + $0x18] sm:$0xff]  ;;  %v121_v61 = vpack.c.bf16 %v82_v58, %v81_v57  ;;  %v87_v58 = vld [vmem:[%s4532_s0 + $0x1b0] sm:$0xff] }
 0x158   :  { %1442 = vmatpush.bf16.msra.mxu3 %v3152_v59  ;;  %v88_v59 = vld [vmem:[%s4532_s0 + $0x1b8] sm:$0xff] }
 0x159   :  { %v456_v3 = vmax.f32 %v334_v63, 0.0  ;;  %2998 = vmatmul.msk.bf16.gmra.mxu2 %vm944_vm1, %v895_v0  ;;  %v3151_v63 = vld [vmem:[%s4537_s7 + $0x10] sm:$0xff] }
 0x15a   :  { %v688_v4 = vpop.f32.mrf.mxu1 }
 0x15b   :  { %v507_v7 = vpack.c.bf16 %v456_v3, %v455_v2  ;;  %v689_v10 = vadd.f32 %v3660_v1, %v688_v4  ;;  %v3150_v3 = vld [vmem:[%s4537_s7 + $0x8] sm:$0xff] }
 0x15c   :  { %1443 = vmatpush.bf16.msra.mxu3 %v3151_v63 }
 0x15d   :  { %2967 = vmatmul.msk.bf16.gmra.mxu1 %vm165_vm0, %v507_v7  ;;  %v836_v13 = vmax.f32 %v689_v10, 0.0 }
 0x15e   :  { %v336_v9 = vpop.f32.mrf.mxu0 }
 0x15f   :  { %v337_v14 = vadd.f32 %v3560_v36, %v336_v9  ;;  %v3149_v9 = vld [vmem:[%s4537_s7] sm:$0xff] }
 0x160   :  { %1444 = vmatpush.bf16.msra.mxu3 %v3150_v3 }
 0x161   :  { %2928 = vmatmul.msk.bf16.gmra.mxu0 %vm165_vm0, %v118_v8  ;;  %v457_v19 = vmax.f32 %v337_v14, 0.0 }
 0x162   :  { %v690_v11 = vpop.f32.mrf.mxu1 }
 0x163   :  { %v691_v12 = vadd.f32 %v3660_v1, %v690_v11 }
 0x164   :  { %1445 = vmatpush.bf16.msra.mxu3 %v3149_v9 }
 0x165   :  { %v837_v15 = vmax.f32 %v691_v12, 0.0 }
 0x166   :  { %v338_v16 = vpop.f32.mrf.mxu0 }
 0x167   :  { %v339_v17 = vadd.f32 %v3560_v36, %v338_v16  ;;  %v896_v18 = vpack.c.bf16 %v837_v15, %v836_v13  ;;  %v83_v15 = vld [vmem:[%s4532_s0 + $0x190] sm:$0xff]  ;;  %v84_v16 = vld [vmem:[%s4532_s0 + $0x198] sm:$0xff] }
 0x169   :  { %v458_v20 = vmax.f32 %v339_v17, 0.0  ;;  %2999 = vmatmul.msk.bf16.gmra.mxu2 %vm944_vm1, %v896_v18  ;;  %v122_v18 = vpack.c.bf16 %v84_v16, %v83_v15 }
 0x16a   :  { %v693_v21 = vpop.f32.mrf.mxu1 }
 0x16b   :  { %v508_v24 = vpack.c.bf16 %v458_v20, %v457_v19  ;;  %v694_v27 = vadd.f32 %v3660_v1, %v693_v21 }
 0x16d   :  { %2968 = vmatmul.msk.bf16.gmra.mxu1 %vm165_vm0, %v508_v24  ;;  %v838_v30 = vmax.f32 %v694_v27, 0.0 }
 0x16e   :  { %v341_v26 = vpop.f32.mrf.mxu0 }
 0x16f   :  { %v342_v31 = vadd.f32 %v3560_v36, %v341_v26 }
 0x171   :  { %2929 = vmatmul.msk.bf16.gmra.mxu0 %vm165_vm0, %v119_v25  ;;  %v459_v37 = vmax.f32 %v342_v31, 0.0 }
 0x172   :  { %v695_v28 = vpop.f32.mrf.mxu1 }
 0x173   :  { %v696_v29 = vadd.f32 %v3660_v1, %v695_v28 }
 0x175   :  { %v839_v32 = vmax.f32 %v696_v29, 0.0 }
 0x176   :  { %v343_v33 = vpop.f32.mrf.mxu0 }
 0x177   :  { %v344_v34 = vadd.f32 %v3560_v36, %v343_v33  ;;  %v897_v35 = vpack.c.bf16 %v839_v32, %v838_v30  ;;  %v85_v32 = vld [vmem:[%s4532_s0 + $0x1a0] sm:$0xff]  ;;  %v86_v33 = vld [vmem:[%s4532_s0 + $0x1a8] sm:$0xff] }
 0x179   :  { %v460_v38 = vmax.f32 %v344_v34, 0.0  ;;  %3000 = vmatmul.msk.bf16.gmra.mxu2 %vm944_vm1, %v897_v35 }
 0x17a   :  { %v698_v39 = vpop.f32.mrf.mxu1 }
 0x17b   :  { %v509_v42 = vpack.c.bf16 %v460_v38, %v459_v37  ;;  %v699_v45 = vadd.f32 %v3660_v1, %v698_v39  ;;  %v123_v37 = vpack.c.bf16 %v86_v33, %v85_v32  ;;  %v3795_v39 = vld [vmem:[%s4536_s6] ss:$0 sm:$0xff] }
 0x17d   :  { %2969 = vmatmul.msk.bf16.gmra.mxu1 %vm165_vm0, %v509_v42  ;;  %v840_v48 = vmax.f32 %v699_v45, 0.0 }
 0x17e   :  { %v346_v44 = vpop.f32.mrf.mxu0 }
 0x17f   :  { %v347_v49 = vadd.f32 %v3560_v36, %v346_v44 }
 0x181   :  { %2930 = vmatmul.msk.bf16.gmra.mxu0 %vm165_vm0, %v120_v43  ;;  %v461_v54 = vmax.f32 %v347_v49, 0.0 }
 0x182   :  { %v700_v46 = vpop.f32.mrf.mxu1 }
 0x183   :  { %v701_v47 = vadd.f32 %v3660_v1, %v700_v46 }
 0x185   :  { %v841_v50 = vmax.f32 %v701_v47, 0.0 }
 0x186   :  { %v348_v51 = vpop.f32.mrf.mxu0 }
 0x187   :  { %v349_v52 = vadd.f32 %v3560_v36, %v348_v51  ;;  %v898_v53 = vpack.c.bf16 %v841_v50, %v840_v48 }
 0x189   :  { %v462_v55 = vmax.f32 %v349_v52, 0.0  ;;  %3001 = vmatmul.msk.bf16.gmra.mxu2 %vm944_vm1, %v898_v53 }
 0x18a   :  { %v703_v56 = vpop.f32.mrf.mxu1 }
 0x18b   :  { %v510_v60 = vpack.c.bf16 %v462_v55, %v461_v54  ;;  %v704_v0 = vadd.f32 %v3660_v1, %v703_v56 }
 0x18d   :  { %2970 = vmatmul.msk.bf16.gmra.mxu1 %vm165_vm0, %v510_v60  ;;  %v842_v5 = vmax.f32 %v704_v0, 0.0 }
 0x18e   :  { %v351_v62 = vpop.f32.mrf.mxu0 }
 0x18f   :  { %v352_v6 = vadd.f32 %v3560_v36, %v351_v62  ;;  %v124_v62 = vpack.c.bf16 %v88_v59, %v87_v58 }
 0x191   :  { %2931 = vmatmul.msk.bf16.gmra.mxu0 %vm165_vm0, %v121_v61  ;;  %v463_v12 = vmax.f32 %v352_v6, 0.0 }
 0x192   :  { %v705_v2 = vpop.f32.mrf.mxu1 }
 0x193   :  { %v706_v4 = vadd.f32 %v3660_v1, %v705_v2 }
 0x195   :  { %v843_v7 = vmax.f32 %v706_v4, 0.0 }
 0x196   :  { %v353_v8 = vpop.f32.mrf.mxu0 }
 0x197   :  { %v354_v10 = vadd.f32 %v3560_v36, %v353_v8  ;;  %v899_v11 = vpack.c.bf16 %v843_v7, %v842_v5 }
 0x199   :  { %v464_v13 = vmax.f32 %v354_v10, 0.0  ;;  %3002 = vmatmul.msk.bf16.gmra.mxu2 %vm944_vm1, %v899_v11 }
 0x19a   :  { %v708_v14 = vpop.f32.mrf.mxu1 }
 0x19b   :  { %v511_v17 = vpack.c.bf16 %v464_v13, %v463_v12  ;;  %v709_v20 = vadd.f32 %v3660_v1, %v708_v14 }
 0x19d   :  { %2971 = vmatmul.msk.bf16.gmra.mxu1 %vm165_vm0, %v511_v17  ;;  %v844_v23 = vmax.f32 %v709_v20, 0.0  ;;  %v90_v20 = vld [vmem:[%s4532_s0 + $0x1c8] sm:$0xff] }
 0x19e   :  { %v356_v19 = vpop.f32.mrf.mxu0 }
 0x19f   :  { %v357_v24 = vadd.f32 %v3560_v36, %v356_v19  ;;  %v89_v19 = vld [vmem:[%s4532_s0 + $0x1c0] sm:$0xff] }
 0x1a1   :  { %2932 = vmatmul.msk.bf16.gmra.mxu0 %vm165_vm0, %v122_v18  ;;  %v465_v29 = vmax.f32 %v357_v24, 0.0 }
 0x1a2   :  { %v710_v21 = vpop.f32.mrf.mxu1 }
 0x1a3   :  { %v711_v22 = vadd.f32 %v3660_v1, %v710_v21 }
 0x1a5   :  { %v845_v25 = vmax.f32 %v711_v22, 0.0 }
 0x1a6   :  { %v358_v26 = vpop.f32.mrf.mxu0 }
 0x1a7   :  { %v359_v27 = vadd.f32 %v3560_v36, %v358_v26  ;;  %v900_v28 = vpack.c.bf16 %v845_v25, %v844_v23  ;;  %v125_v23 = vpack.c.bf16 %v90_v20, %v89_v19 }
 0x1a9   :  { %v466_v30 = vmax.f32 %v359_v27, 0.0  ;;  %3003 = vmatmul.msk.bf16.gmra.mxu2 %vm944_vm1, %v900_v28 }
 0x1aa   :  { %v713_v31 = vpop.f32.mrf.mxu1 }
 0x1ab   :  { %v512_v34 = vpack.c.bf16 %v466_v30, %v465_v29  ;;  %v714_v40 = vadd.f32 %v3660_v1, %v713_v31 }
 0x1ac   :  { %v1050_v35 = vpop.f32.mrf.mxu2 }
 0x1ad   :  { %2972 = vmatmul.msk.bf16.gmra.mxu1 %vm165_vm0, %v512_v34  ;;  %v1051_v42 = vadd.f32 %v3795_v39, %v1050_v35  ;;  %v846_v45 = vmax.f32 %v714_v40, 0.0 }
 0x1ae   :  { %v361_v38 = vpop.f32.mrf.mxu0 }
 0x1af   :  { %v362_v46 = vadd.f32 %v3560_v36, %v361_v38  ;;  %v1210_v50 = vmax.f32 %v1051_v42, 0.0 }
 0x1b1   :  { %2933 = vmatmul.msk.bf16.gmra.mxu0 %vm165_vm0, %v123_v37  ;;  %v467_v54 = vmax.f32 %v362_v46, 0.0  ;;  %v92_v46 = vld [vmem:[%s4532_s0 + $0x1d8] sm:$0xff] }
 0x1b2   :  { %v715_v41 = vpop.f32.mrf.mxu1 }
 0x1b3   :  { %v716_v43 = vadd.f32 %v3660_v1, %v715_v41 }
 0x1b4   :  { %v1052_v44 = vpop.f32.mrf.mxu2 }
 0x1b5   :  { %v847_v47 = vmax.f32 %v716_v43, 0.0  ;;  %v1053_v48 = vadd.f32 %v3795_v39, %v1052_v44 }
 0x1b6   :  { %v363_v49 = vpop.f32.mrf.mxu0 }
 0x1b7   :  { %v1211_v51 = vmax.f32 %v1053_v48, 0.0  ;;  %v364_v52 = vadd.f32 %v3560_v36, %v363_v49  ;;  %v901_v53 = vpack.c.bf16 %v847_v47, %v846_v45  ;;  %v91_v45 = vld [vmem:[%s4532_s0 + $0x1d0] sm:$0xff] }
 0x1b8   :  { %v126_v49 = vpack.c.bf16 %v92_v46, %v91_v45 }
 0x1b9   :  { %v468_v55 = vmax.f32 %v364_v52, 0.0  ;;  %3004 = vmatmul.msk.bf16.gmra.mxu2 %vm944_vm1, %v901_v53  ;;  %v1274_v56 = vpack.c.bf16 %v1211_v51, %v1210_v50 }
 0x1ba   :  { %v718_v57 = vpop.f32.mrf.mxu1 }
 0x1bb   :  { %v513_v60 = vpack.c.bf16 %v468_v55, %v467_v54  ;;  %3043 = vmatmul.msk.bf16.vlgmr.msra.gmra.mxu3 %vm165_vm0, %v1274_v56  ;;  %v719_v0 = vadd.f32 %v3660_v1, %v718_v57 }
 0x1bc   :  { %v1055_v61 = vpop.f32.mrf.mxu2 }
 0x1bd   :  { %2973 = vmatmul.msk.bf16.gmra.mxu1 %vm165_vm0, %v513_v60  ;;  %v1056_v3 = vadd.f32 %v3795_v39, %v1055_v61  ;;  %v848_v6 = vmax.f32 %v719_v0, 0.0 }
 0x1be   :  { %v366_v63 = vpop.f32.mrf.mxu0 }
 0x1bf   :  { %v367_v7 = vadd.f32 %v3560_v36, %v366_v63  ;;  %v1212_v11 = vmax.f32 %v1056_v3, 0.0 }
 0x1c1   :  { %2934 = vmatmul.msk.bf16.gmra.mxu0 %vm165_vm0, %v124_v62  ;;  %v469_v15 = vmax.f32 %v367_v7, 0.0  ;;  %v94_v7 = vld [vmem:[%s4532_s0 + $0x1e8] sm:$0xff] }
 0x1c2   :  { %v720_v2 = vpop.f32.mrf.mxu1 }
 0x1c3   :  { %v721_v4 = vadd.f32 %v3660_v1, %v720_v2 }
 0x1c4   :  { %v1057_v5 = vpop.f32.mrf.mxu2 }
 0x1c5   :  { %v849_v8 = vmax.f32 %v721_v4, 0.0  ;;  %v1058_v9 = vadd.f32 %v3795_v39, %v1057_v5 }
 0x1c6   :  { %v368_v10 = vpop.f32.mrf.mxu0 }
 0x1c7   :  { %v1213_v12 = vmax.f32 %v1058_v9, 0.0  ;;  %v369_v13 = vadd.f32 %v3560_v36, %v368_v10  ;;  %v902_v14 = vpack.c.bf16 %v849_v8, %v848_v6  ;;  %v93_v6 = vld [vmem:[%s4532_s0 + $0x1e0] sm:$0xff] }
 0x1c8   :  { %v127_v10 = vpack.c.bf16 %v94_v7, %v93_v6 }
 0x1c9   :  { %v470_v16 = vmax.f32 %v369_v13, 0.0  ;;  %3005 = vmatmul.msk.bf16.gmra.mxu2 %vm944_vm1, %v902_v14  ;;  %v1275_v17 = vpack.c.bf16 %v1213_v12, %v1212_v11 }
 0x1ca   :  { %v723_v18 = vpop.f32.mrf.mxu1 }
 0x1cb   :  { %v514_v21 = vpack.c.bf16 %v470_v16, %v469_v15  ;;  %3044 = vmatmul.msk.bf16.gmra.mxu3 %vm165_vm0, %v1275_v17  ;;  %v724_v25 = vadd.f32 %v3660_v1, %v723_v18 }
 0x1cc   :  { %v1060_v22 = vpop.f32.mrf.mxu2 }
 0x1cd   :  { %2974 = vmatmul.msk.bf16.gmra.mxu1 %vm165_vm0, %v514_v21  ;;  %v1061_v27 = vadd.f32 %v3795_v39, %v1060_v22  ;;  %v850_v30 = vmax.f32 %v724_v25, 0.0 }
 0x1ce   :  { %v371_v24 = vpop.f32.mrf.mxu0 }
 0x1cf   :  { %v372_v31 = vadd.f32 %v3560_v36, %v371_v24  ;;  %v1214_v35 = vmax.f32 %v1061_v27, 0.0 }
 0x1d1   :  { %2935 = vmatmul.msk.bf16.gmra.mxu0 %vm165_vm0, %v125_v23  ;;  %v471_v41 = vmax.f32 %v372_v31, 0.0  ;;  %v96_v31 = vld [vmem:[%s4532_s0 + $0x1f8] sm:$0xff] }
 0x1d2   :  { %v725_v26 = vpop.f32.mrf.mxu1 }
 0x1d3   :  { %v726_v28 = vadd.f32 %v3660_v1, %v725_v26 }
 0x1d4   :  { %v1062_v29 = vpop.f32.mrf.mxu2 }
 0x1d5   :  { %v851_v32 = vmax.f32 %v726_v28, 0.0  ;;  %v1063_v33 = vadd.f32 %v3795_v39, %v1062_v29 }
 0x1d6   :  { %v373_v34 = vpop.f32.mrf.mxu0 }
 0x1d7   :  { %v1215_v37 = vmax.f32 %v1063_v33, 0.0  ;;  %v374_v38 = vadd.f32 %v3560_v36, %v373_v34  ;;  %v903_v40 = vpack.c.bf16 %v851_v32, %v850_v30  ;;  %v95_v30 = vld [vmem:[%s4532_s0 + $0x1f0] sm:$0xff] }
 0x1d8   :  { %v128_v34 = vpack.c.bf16 %v96_v31, %v95_v30  ;;  %v3904_v30 = vld [vmem:[%s4531_s2] ss:$0 sm:$0xff] }
 0x1d9   :  { %v472_v42 = vmax.f32 %v374_v38, 0.0  ;;  %3006 = vmatmul.msk.bf16.gmra.mxu2 %vm944_vm1, %v903_v40  ;;  %v1276_v43 = vpack.c.bf16 %v1215_v37, %v1214_v35 }
 0x1da   :  { %v728_v44 = vpop.f32.mrf.mxu1 }
 0x1db   :  { %v515_v47 = vpack.c.bf16 %v472_v42, %v471_v41  ;;  %3045 = vmatmul.msk.bf16.gmra.mxu3 %vm165_vm0, %v1276_v43  ;;  %v729_v51 = vadd.f32 %v3660_v1, %v728_v44 }
 0x1dc   :  { %v1065_v48 = vpop.f32.mrf.mxu2 }
 0x1dd   :  { %2975 = vmatmul.msk.bf16.gmra.mxu1 %vm165_vm0, %v515_v47  ;;  %v1066_v53 = vadd.f32 %v3795_v39, %v1065_v48  ;;  %v852_v56 = vmax.f32 %v729_v51, 0.0 }
 0x1de   :  { %v376_v50 = vpop.f32.mrf.mxu0 }
 0x1df   :  { %v377_v57 = vadd.f32 %v3560_v36, %v376_v50  ;;  %v1216_v61 = vmax.f32 %v1066_v53, 0.0 }
 0x1e1   :  { %2936 = vmatmul.msk.bf16.gmra.mxu0 %vm165_vm0, %v126_v49  ;;  %v473_v2 = vmax.f32 %v377_v57, 0.0 }
 0x1e2   :  { %v730_v52 = vpop.f32.mrf.mxu1 }
 0x1e3   :  { %v731_v54 = vadd.f32 %v3660_v1, %v730_v52 }
 0x1e4   :  { %v1067_v55 = vpop.f32.mrf.mxu2 }
 0x1e5   :  { %v853_v58 = vmax.f32 %v731_v54, 0.0  ;;  %v1068_v59 = vadd.f32 %v3795_v39, %v1067_v55 }
 0x1e6   :  { %v378_v60 = vpop.f32.mrf.mxu0 }
 0x1e7   :  { %v904_v62 = vpack.c.bf16 %v853_v58, %v852_v56  ;;  %v1217_v63 = vmax.f32 %v1068_v59, 0.0  ;;  %v379_v0 = vadd.f32 %v3560_v36, %v378_v60 }
 0x1e9   :  { %v474_v3 = vmax.f32 %v379_v0, 0.0  ;;  %3007 = vmatmul.msk.bf16.gmra.mxu2 %vm944_vm1, %v904_v62  ;;  %v1277_v4 = vpack.c.bf16 %v1217_v63, %v1216_v61 }
 0x1ea   :  { %v733_v5 = vpop.f32.mrf.mxu1 }
 0x1eb   :  { %v516_v8 = vpack.c.bf16 %v474_v3, %v473_v2  ;;  %3046 = vmatmul.msk.bf16.gmra.mxu3 %vm165_vm0, %v1277_v4  ;;  %v734_v12 = vadd.f32 %v3660_v1, %v733_v5 }
 0x1ec   :  { %v1070_v9 = vpop.f32.mrf.mxu2 }
 0x1ed   :  { %2976 = vmatmul.msk.bf16.gmra.mxu1 %vm165_vm0, %v516_v8  ;;  %v1071_v14 = vadd.f32 %v3795_v39, %v1070_v9  ;;  %v854_v17 = vmax.f32 %v734_v12, 0.0 }
 0x1ee   :  { %v381_v11 = vpop.f32.mrf.mxu0 }
 0x1ef   :  { %v382_v18 = vadd.f32 %v3560_v36, %v381_v11  ;;  %v1218_v22 = vmax.f32 %v1071_v14, 0.0 }
 0x1f1   :  { %2937 = vmatmul.msk.bf16.gmra.mxu0 %vm165_vm0, %v127_v10  ;;  %v475_v26 = vmax.f32 %v382_v18, 0.0 }
 0x1f2   :  { %v735_v13 = vpop.f32.mrf.mxu1 }
 0x1f3   :  { %v736_v15 = vadd.f32 %v3660_v1, %v735_v13 }
 0x1f4   :  { %v1072_v16 = vpop.f32.mrf.mxu2 }
 0x1f5   :  { %v855_v19 = vmax.f32 %v736_v15, 0.0  ;;  %v1073_v20 = vadd.f32 %v3795_v39, %v1072_v16 }
 0x1f6   :  { %v383_v21 = vpop.f32.mrf.mxu0 }
 0x1f7   :  { %v905_v23 = vpack.c.bf16 %v855_v19, %v854_v17  ;;  %v1219_v24 = vmax.f32 %v1073_v20, 0.0  ;;  %v384_v25 = vadd.f32 %v3560_v36, %v383_v21 }
 0x1f9   :  { %v476_v27 = vmax.f32 %v384_v25, 0.0  ;;  %3008 = vmatmul.msk.bf16.gmra.mxu2 %vm944_vm1, %v905_v23  ;;  %v1278_v28 = vpack.c.bf16 %v1219_v24, %v1218_v22 }
 0x1fa   :  { %v738_v29 = vpop.f32.mrf.mxu1 }
 0x1fb   :  { %v517_v32 = vpack.c.bf16 %v476_v27, %v475_v26  ;;  %3047 = vmatmul.msk.bf16.gmra.mxu3 %vm165_vm0, %v1278_v28  ;;  %v739_v37 = vadd.f32 %v3660_v1, %v738_v29 }
 0x1fc   :  { %v1075_v33 = vpop.f32.mrf.mxu2 }
 0x1fd   :  { %2977 = vmatmul.msk.bf16.gmra.mxu1 %vm165_vm0, %v517_v32  ;;  %v1076_v40 = vadd.f32 %v3795_v39, %v1075_v33  ;;  %v856_v43 = vmax.f32 %v739_v37, 0.0 }
 0x1fe   :  { %v386_v35 = vpop.f32.mrf.mxu0 }
 0x1ff   :  { %v387_v44 = vadd.f32 %v3560_v36, %v386_v35  ;;  %v1220_v48 = vmax.f32 %v1076_v40, 0.0 }
 0x201   :  { %2938 = vmatmul.msk.bf16.gmra.mxu0 %vm165_vm0, %v128_v34  ;;  %v477_v52 = vmax.f32 %v387_v44, 0.0 }
 0x202   :  { %v740_v38 = vpop.f32.mrf.mxu1 }
 0x203   :  { %v741_v41 = vadd.f32 %v3660_v1, %v740_v38 }
 0x204   :  { %v1077_v42 = vpop.f32.mrf.mxu2 }
 0x205   :  { %v857_v45 = vmax.f32 %v741_v41, 0.0  ;;  %v1078_v46 = vadd.f32 %v3795_v39, %v1077_v42 }
 0x206   :  { %v388_v47 = vpop.f32.mrf.mxu0 }
 0x207   :  { %v906_v49 = vpack.c.bf16 %v857_v45, %v856_v43  ;;  %v1221_v50 = vmax.f32 %v1078_v46, 0.0  ;;  %v389_v51 = vadd.f32 %v3560_v36, %v388_v47 }
 0x209   :  { %v478_v53 = vmax.f32 %v389_v51, 0.0  ;;  %3009 = vmatmul.msk.bf16.gmra.mxu2 %vm944_vm1, %v906_v49  ;;  %v1279_v54 = vpack.c.bf16 %v1221_v50, %v1220_v48 }
 0x20a   :  { %v743_v55 = vpop.f32.mrf.mxu1 }
 0x20b   :  { %v518_v56 = vpack.c.bf16 %v478_v53, %v477_v52  ;;  %3048 = vmatmul.msk.bf16.gmra.mxu3 %vm165_vm0, %v1279_v54  ;;  %v744_v59 = vadd.f32 %v3660_v1, %v743_v55 }
 0x20c   :  { %v1080_v57 = vpop.f32.mrf.mxu2 }
 0x20d   :  { %2978 = vmatmul.msk.bf16.gmra.mxu1 %vm165_vm0, %v518_v56  ;;  %v1081_v61 = vadd.f32 %v3795_v39, %v1080_v57  ;;  %v858_v0 = vmax.f32 %v744_v59, 0.0  ;;  %v3921_v59 = vld [vmem:[%s4538_s8] ss:$0 sm:$0xff] }
 0x20e   :  { %v391_v58 = vpop.f32.mrf.mxu0 }
 0x20f   :  { %v392_v2 = vadd.f32 %v3560_v36, %v391_v58  ;;  %v1222_v6 = vmax.f32 %v1081_v61, 0.0 }
 0x211   :  { %v479_v10 = vmax.f32 %v392_v2, 0.0 }
 0x212   :  { %v745_v60 = vpop.f32.mrf.mxu1 }
 0x213   :  { %v746_v62 = vadd.f32 %v3660_v1, %v745_v60 }
 0x214   :  { %v1082_v63 = vpop.f32.mrf.mxu2 }
 0x215   :  { %v859_v3 = vmax.f32 %v746_v62, 0.0  ;;  %v1083_v4 = vadd.f32 %v3795_v39, %v1082_v63 }
 0x216   :  { %v393_v5 = vpop.f32.mrf.mxu0 }
 0x217   :  { %v907_v7 = vpack.c.bf16 %v859_v3, %v858_v0  ;;  %v1223_v8 = vmax.f32 %v1083_v4, 0.0  ;;  %v394_v9 = vadd.f32 %v3560_v36, %v393_v5 }
 0x219   :  { %v480_v11 = vmax.f32 %v394_v9, 0.0  ;;  %3010 = vmatmul.msk.bf16.gmra.mxu2 %vm944_vm1, %v907_v7  ;;  %v1280_v12 = vpack.c.bf16 %v1223_v8, %v1222_v6 }
 0x21a   :  { %v748_v13 = vpop.f32.mrf.mxu1 }
 0x21b   :  { %v519_v14 = vpack.c.bf16 %v480_v11, %v479_v10  ;;  %3049 = vmatmul.msk.bf16.gmra.mxu3 %vm165_vm0, %v1280_v12  ;;  %v749_v17 = vadd.f32 %v3660_v1, %v748_v13 }
 0x21c   :  { %v1085_v15 = vpop.f32.mrf.mxu2 }
 0x21d   :  { %2979 = vmatmul.msk.bf16.gmra.mxu1 %vm165_vm0, %v519_v14  ;;  %v1086_v19 = vadd.f32 %v3795_v39, %v1085_v15  ;;  %v860_v22 = vmax.f32 %v749_v17, 0.0 }
 0x21e   :  { %v396_v16 = vpop.f32.mrf.mxu0 }
 0x21f   :  { %v397_v23 = vadd.f32 %v3560_v36, %v396_v16  ;;  %v1224_v27 = vmax.f32 %v1086_v19, 0.0 }
 0x221   :  { %v481_v32 = vmax.f32 %v397_v23, 0.0 }
 0x222   :  { %v750_v18 = vpop.f32.mrf.mxu1 }
 0x223   :  { %v751_v20 = vadd.f32 %v3660_v1, %v750_v18 }
 0x224   :  { %v1087_v21 = vpop.f32.mrf.mxu2 }
 0x225   :  { %v861_v24 = vmax.f32 %v751_v20, 0.0  ;;  %v1088_v25 = vadd.f32 %v3795_v39, %v1087_v21 }
 0x226   :  { %v398_v26 = vpop.f32.mrf.mxu0 }
 0x227   :  { %v908_v28 = vpack.c.bf16 %v861_v24, %v860_v22  ;;  %v1225_v29 = vmax.f32 %v1088_v25, 0.0  ;;  %v399_v31 = vadd.f32 %v3904_v30, %v398_v26 }
 0x229   :  { %v482_v33 = vmax.f32 %v399_v31, 0.0  ;;  %3011 = vmatmul.msk.bf16.gmra.mxu2 %vm944_vm1, %v908_v28  ;;  %v1281_v34 = vpack.c.bf16 %v1225_v29, %v1224_v27 }
 0x22a   :  { %v753_v36 = vpop.f32.mrf.mxu1 }
 0x22b   :  { %v520_v35 = vpack.c.bf16 %v482_v33, %v481_v32  ;;  %3050 = vmatmul.msk.bf16.gmra.mxu3 %vm165_vm0, %v1281_v34  ;;  %v754_v40 = vadd.f32 %v3660_v1, %v753_v36 }
 0x22c   :  { %v1090_v37 = vpop.f32.mrf.mxu2 }
 0x22d   :  { %2980 = vmatmul.msk.bf16.gmra.mxu1 %vm165_vm0, %v520_v35  ;;  %v1091_v42 = vadd.f32 %v3795_v39, %v1090_v37  ;;  %v862_v45 = vmax.f32 %v754_v40, 0.0 }
 0x22e   :  { %v401_v38 = vpop.f32.mrf.mxu0 }
 0x22f   :  { %v402_v46 = vadd.f32 %v3904_v30, %v401_v38  ;;  %v1226_v50 = vmax.f32 %v1091_v42, 0.0 }
 0x231   :  { %v483_v54 = vmax.f32 %v402_v46, 0.0 }
 0x232   :  { %v755_v41 = vpop.f32.mrf.mxu1 }
 0x233   :  { %v756_v43 = vadd.f32 %v3660_v1, %v755_v41 }
 0x234   :  { %v1092_v44 = vpop.f32.mrf.mxu2 }
 0x235   :  { %v863_v47 = vmax.f32 %v756_v43, 0.0  ;;  %v1093_v48 = vadd.f32 %v3795_v39, %v1092_v44 }
 0x236   :  { %v403_v49 = vpop.f32.mrf.mxu0 }
 0x237   :  { %v909_v51 = vpack.c.bf16 %v863_v47, %v862_v45  ;;  %v1227_v52 = vmax.f32 %v1093_v48, 0.0  ;;  %v404_v53 = vadd.f32 %v3904_v30, %v403_v49 }
 0x239   :  { %v484_v55 = vmax.f32 %v404_v53, 0.0  ;;  %3012 = vmatmul.msk.bf16.gmra.mxu2 %vm944_vm1, %v909_v51  ;;  %v1282_v56 = vpack.c.bf16 %v1227_v52, %v1226_v50 }
 0x23a   :  { %v758_v57 = vpop.f32.mrf.mxu1 }
 0x23b   :  { %v521_v58 = vpack.c.bf16 %v484_v55, %v483_v54  ;;  %3051 = vmatmul.msk.bf16.gmra.mxu3 %vm165_vm0, %v1282_v56  ;;  %v759_v0 = vadd.f32 %v3660_v1, %v758_v57 }
 0x23c   :  { %v1095_v60 = vpop.f32.mrf.mxu2 }
 0x23d   :  { %2981 = vmatmul.msk.bf16.gmra.mxu1 %vm165_vm0, %v521_v58  ;;  %v1096_v3 = vadd.f32 %v3795_v39, %v1095_v60  ;;  %v864_v7 = vmax.f32 %v759_v0, 0.0 }
 0x23e   :  { %v406_v61 = vpop.f32.mrf.mxu0  ;;  %v1447_v62 = vpop.f32.mrf.mxu3 }
 0x23f   :  { %v1448_v63 = vadd.f32 %v3921_v59, %v1447_v62  ;;  %v407_v8 = vadd.f32 %v3904_v30, %v406_v61  ;;  %v1228_v11 = vmax.f32 %v1096_v3, 0.0 }
 0x241   :  { %v3075_v2 = vmul.f32 -1.442695, %v1448_v63  ;;  %v485_v19 = vmax.f32 %v407_v8, 0.0 }
 0x242   :  { %v760_v4 = vpop.f32.mrf.mxu1 }
 0x243   :  { %3157 = vpow2.f32 %v3075_v2  ;;  %v761_v5 = vadd.f32 %v3660_v1, %v760_v4 }
 0x244   :  { %v1097_v6 = vpop.f32.mrf.mxu2 }
 0x245   :  { %v865_v9 = vmax.f32 %v761_v5, 0.0  ;;  %v1098_v10 = vadd.f32 %v3795_v39, %v1097_v6 }
 0x246   :  { %v408_v12 = vpop.f32.mrf.mxu0  ;;  %v1449_v13 = vpop.f32.mrf.mxu3 }
 0x247   :  { %v910_v14 = vpack.c.bf16 %v865_v9, %v864_v7  ;;  %v1229_v15 = vmax.f32 %v1098_v10, 0.0  ;;  %v409_v16 = vadd.f32 %v3904_v30, %v408_v12  ;;  %v1450_v17 = vadd.f32 %v3921_v59, %v1449_v13 }
 0x249   :  { %v3158_v18 = vpop.eup %3157  ;;  %v486_v20 = vmax.f32 %v409_v16, 0.0  ;;  %v3076_v21 = vmul.f32 -1.442695, %v1450_v17  ;;  %3013 = vmatmul.msk.bf16.gmra.mxu2 %vm944_vm1, %v910_v14  ;;  %v1283_v22 = vpack.c.bf16 %v1229_v15, %v1228_v11  ;;  %v3963_v15 = vld [vmem:[%s4534_s4] ss:$0 sm:$0xff] }
 0x24a   :  { %v1799_v23 = vadd.f32 1.0, %v3158_v18  ;;  %v763_v24 = vpop.f32.mrf.mxu1 }
 0x24b   :  { %v522_v25 = vpack.c.bf16 %v486_v20, %v485_v19  ;;  %3159 = vpow2.f32 %v3076_v21  ;;  %3052 = vmatmul.msk.bf16.gmra.mxu3 %vm165_vm0, %v1283_v22  ;;  %v764_v31 = vadd.f32 %v3660_v1, %v763_v24 }
 0x24c   :  { %3161 = vrcp.f32 %v1799_v23  ;;  %v1100_v26 = vpop.f32.mrf.mxu2  ;;  %v1872_v47 = vand.u32 2147483647, %v1799_v23  ;;  %v1874_v48 = vand.u32 2147483648, %v1799_v23  ;;  %vm1868_vm3 = vweird.f32 %v1799_v23 }
 0x24d   :  { %2982 = vmatmul.msk.bf16.gmra.mxu1 %vm165_vm0, %v522_v25  ;;  %v1101_v35 = vadd.f32 %v3795_v39, %v1100_v26  ;;  %v866_v41 = vmax.f32 %v764_v31, 0.0 }
 0x24e   :  { %v411_v27 = vpop.f32.mrf.mxu0  ;;  %v1452_v28 = vpop.f32.mrf.mxu3  ;;  %v1875_v63 = vor.u32 1.1754944e-38, %v1874_v48  ;;  %vm1873_vm5 = vcmp.eq.f32.partialorder %v1872_v47, 8.507059e+37 }
 0x24f   :  { %v1453_v29 = vadd.f32 %v3921_v59, %v1452_v28  ;;  %v412_v44 = vadd.f32 %v3904_v30, %v411_v27  ;;  %v1230_v49 = vmax.f32 %v1101_v35, 0.0 }
 0x251   :  { %v3160_v32 = vpop.eup %3159  ;;  %v3077_v33 = vmul.f32 -1.442695, %v1453_v29  ;;  %v487_v58 = vmax.f32 %v412_v44, 0.0 }
 0x252   :  { %v3162_v34 = vpop.eup %3161  ;;  %v3937_v36 = vadd.f32 1.0, %v3160_v32  ;;  %v765_v37 = vpop.f32.mrf.mxu1 }
 0x253   :  { %v1864_v38 = vmul.f32 %v3162_v34, %v1799_v23  ;;  %3163 = vpow2.f32 %v3077_v33  ;;  %v766_v40 = vadd.f32 %v3660_v1, %v765_v37  ;;  %vm1869_vm2 = vweird.f32 %v3162_v34 }
 0x254   :  { %3165 = vrcp.f32 %v3937_v36  ;;  %v1102_v42 = vpop.f32.mrf.mxu2  ;;  %vm1870_vm4 = vmor %vm1868_vm3, %vm1869_vm2  ;;  %v1887_v10 = vand.u32 2147483647, %v3937_v36  ;;  %v1889_v11 = vand.u32 2147483648, %v3937_v36  ;;  %vm1883_vm7 = vweird.f32 %v3937_v36 }
 0x255   :  { %v1865_v43 = vsub.f32 1.0, %v1864_v38  ;;  %v867_v45 = vmax.f32 %v766_v40, 0.0  ;;  %v1103_v46 = vadd.f32 %v3795_v39, %v1102_v42 }
 0x256   :  { %v413_v50 = vpop.f32.mrf.mxu0  ;;  %v1454_v51 = vpop.f32.mrf.mxu3  ;;  %vm1888_vm9 = vcmp.eq.f32.partialorder %v1887_v10, 8.507059e+37  ;;  %v1890_v20 = vor.u32 1.1754944e-38, %v1889_v11 }
 0x257   :  { %v1866_v52 = vmul.f32 %v3162_v34, %v1865_v43  ;;  %v911_v53 = vpack.c.bf16 %v867_v45, %v866_v41  ;;  %v1231_v54 = vmax.f32 %v1103_v46, 0.0  ;;  %v414_v1 = vadd.f32 %v3904_v30, %v413_v50 }
 0x258   :  { %v1455_v55 = vadd.f32 %v3921_v59, %v1454_v51 }
 0x259   :  { %v3164_v56 = vpop.eup %3163  ;;  %v1867_v57 = vadd.f32 %v3162_v34, %v1866_v52  ;;  %v488_v60 = vmax.f32 %v414_v1, 0.0  ;;  %3014 = vmatmul.msk.bf16.gmra.mxu2 %vm944_vm1, %v911_v53  ;;  %v1284_v61 = vpack.c.bf16 %v1231_v54, %v1230_v49 }
 0x25a   :  { %v3166_v62 = vpop.eup %3165  ;;  %v3948_v0 = vadd.f32 1.0, %v3164_v56  ;;  %v3078_v2 = vmul.f32 -1.442695, %v1455_v55  ;;  %v768_v3 = vpop.f32.mrf.mxu1 }
 0x25b   :  { %v1871_v4 = vsel %vm1870_vm4, %v3162_v34, %v1867_v57  ;;  %v1879_v5 = vmul.f32 %v3166_v62, %v3937_v36  ;;  %v523_v6 = vpack.c.bf16 %v488_v60, %v487_v58  ;;  %3053 = vmatmul.msk.bf16.gmra.mxu3 %vm165_vm0, %v1284_v61  ;;  %vm1884_vm6 = vweird.f32 %v3166_v62 }
 0x25c   :  { %v1876_v7 = vsel %vm1873_vm5, %v1875_v63, %v1871_v4  ;;  %3167 = vrcp.f32 %v3948_v0  ;;  %v1105_v8 = vpop.f32.mrf.mxu2  ;;  %v769_v16 = vadd.f32 %v3963_v15, %v768_v3  ;;  %vm1885_vm8 = vmor %vm1883_vm7, %vm1884_vm6  ;;  %v1902_v27 = vand.u32 2147483647, %v3948_v0 }
 0x25d   :  { %2823 = vst.msk [vmem:[%s4539_s9] sm:$0xff] %vm165_vm0, %v1876_v7  ;;  %v1880_v9 = vsub.f32 1.0, %v1879_v5  ;;  %3169 = vpow2.f32 %v3078_v2  ;;  %2983 = vmatmul.msk.bf16.gmra.mxu1 %vm165_vm0, %v523_v6  ;;  %v1106_v21 = vadd.f32 %v3795_v39, %v1105_v8  ;;  %v1904_v38 = vand.u32 2147483648, %v3948_v0 }
 0x25e   :  { %v416_v12 = vpop.f32.mrf.mxu0  ;;  %v1457_v13 = vpop.f32.mrf.mxu3  ;;  %v868_v32 = vmax.f32 %v769_v16, 0.0  ;;  %vm1898_vm11 = vweird.f32 %v3948_v0  ;;  %vm1903_vm13 = vcmp.eq.f32.partialorder %v1902_v27, 8.507059e+37 }
 0x25f   :  { %v1881_v14 = vmul.f32 %v3166_v62, %v1880_v9  ;;  %v1458_v17 = vadd.f32 %v3921_v59, %v1457_v13  ;;  %v417_v36 = vadd.f32 %v3904_v30, %v416_v12  ;;  %v1232_v40 = vmax.f32 %v1106_v21, 0.0 }
 0x260   :  { %v1905_v53 = vor.u32 1.1754944e-38, %v1904_v38 }
 0x261   :  { %v1882_v18 = vadd.f32 %v3166_v62, %v1881_v14  ;;  %v3079_v22 = vmul.f32 -1.442695, %v1458_v17  ;;  %v489_v49 = vmax.f32 %v417_v36, 0.0 }
 0x262   :  { %v3168_v19 = vpop.eup %3167  ;;  %v770_v23 = vpop.f32.mrf.mxu1 }
 0x263   :  { %v3170_v24 = vpop.eup %3169  ;;  %v1886_v25 = vsel %vm1885_vm8, %v3166_v62, %v1882_v18  ;;  %v1894_v26 = vmul.f32 %v3168_v19, %v3948_v0  ;;  %v771_v28 = vadd.f32 %v3963_v15, %v770_v23  ;;  %3171 = vpow2.f32 %v3079_v22 }
 0x264   :  { %v1891_v29 = vsel %vm1888_vm9, %v1890_v20, %v1886_v25  ;;  %v3972_v31 = vadd.f32 1.0, %v3170_v24  ;;  %v1107_v33 = vpop.f32.mrf.mxu2  ;;  %vm1899_vm10 = vweird.f32 %v3168_v19 }
 0x265   :  { %2824 = vst.msk [vmem:[%s4539_s9 + $0x8] sm:$0xff] %vm165_vm0, %v1891_v29  ;;  %v1895_v34 = vsub.f32 1.0, %v1894_v26  ;;  %v869_v35 = vmax.f32 %v771_v28, 0.0  ;;  %v1108_v37 = vadd.f32 %v3795_v39, %v1107_v33  ;;  %vm1900_vm12 = vmor %vm1898_vm11, %vm1899_vm10 }
 0x266   :  { %3173 = vrcp.f32 %v3972_v31  ;;  %v418_v41 = vpop.f32.mrf.mxu0  ;;  %v1459_v42 = vpop.f32.mrf.mxu3  ;;  %v1917_v4 = vand.u32 2147483647, %v3972_v31  ;;  %v1919_v5 = vand.u32 2147483648, %v3972_v31  ;;  %vm1913_vm15 = vweird.f32 %v3972_v31 }
 0x267   :  { %v1896_v43 = vmul.f32 %v3168_v19, %v1895_v34  ;;  %v912_v44 = vpack.c.bf16 %v869_v35, %v868_v32  ;;  %v1233_v45 = vmax.f32 %v1108_v37, 0.0  ;;  %v419_v46 = vadd.f32 %v3904_v30, %v418_v41 }
 0x268   :  { %v1460_v47 = vadd.f32 %v3921_v59, %v1459_v42  ;;  %vm1918_vm3 = vcmp.eq.f32.partialorder %v1917_v4, 8.507059e+37  ;;  %v1920_v16 = vor.u32 1.1754944e-38, %v1919_v5 }
 0x269   :  { %v1897_v48 = vadd.f32 %v3168_v19, %v1896_v43  ;;  %v490_v50 = vmax.f32 %v419_v46, 0.0  ;;  %3015 = vmatmul.msk.bf16.gmra.mxu2 %vm944_vm1, %v912_v44  ;;  %v1285_v51 = vpack.c.bf16 %v1233_v45, %v1232_v40  ;;  %v3172_v52 = vpop.eup %3171 }
 0x26a   :  { %v3080_v54 = vmul.f32 -1.442695, %v1460_v47  ;;  %v773_v1 = vpop.f32.mrf.mxu1  ;;  %v3987_v56 = vadd.f32 1.0, %v3172_v52 }
 0x26b   :  { %v1901_v55 = vsel %vm1900_vm12, %v3168_v19, %v1897_v48  ;;  %v524_v57 = vpack.c.bf16 %v490_v50, %v489_v49  ;;  %3054 = vmatmul.msk.bf16.gmra.mxu3 %vm165_vm0, %v1285_v51  ;;  %v774_v9 = vadd.f32 %v3963_v15, %v773_v1 }
 0x26c   :  { %v3174_v58 = vpop.eup %3173  ;;  %v1906_v60 = vsel %vm1903_vm13, %v1905_v53, %v1901_v55  ;;  %3175 = vpow2.f32 %v3080_v54  ;;  %v1110_v61 = vpop.f32.mrf.mxu2  ;;  %v1932_v21 = vand.u32 2147483647, %v3987_v56  ;;  %v1934_v29 = vand.u32 2147483648, %v3987_v56 }
 0x26d   :  { %2825 = vst.msk [vmem:[%s4539_s9 + $0x10] sm:$0xff] %vm165_vm0, %v1906_v60  ;;  %v1909_v62 = vmul.f32 %v3174_v58, %v3972_v31  ;;  %3177 = vrcp.f32 %v3987_v56  ;;  %2984 = vmatmul.msk.bf16.gmra.mxu1 %vm165_vm0, %v524_v57  ;;  %vm1914_vm14 = vweird.f32 %v3174_v58  ;;  %v1111_v18 = vadd.f32 %v3795_v39, %v1110_v61 }
 0x26e   :  { %v421_v63 = vpop.f32.mrf.mxu0  ;;  %v1462_v0 = vpop.f32.mrf.mxu3  ;;  %vm1915_vm2 = vmor %vm1913_vm15, %vm1914_vm14  ;;  %v870_v25 = vmax.f32 %v774_v9, 0.0  ;;  %vm1928_vm5 = vweird.f32 %v3987_v56  ;;  %v1935_v47 = vor.u32 1.1754944e-38, %v1934_v29  ;;  %vm1933_vm7 = vcmp.eq.f32.partialorder %v1932_v21, 8.507059e+37 }
 0x26f   :  { %v1910_v2 = vsub.f32 1.0, %v1909_v62  ;;  %v1463_v3 = vadd.f32 %v3921_v59, %v1462_v0  ;;  %v422_v22 = vadd.f32 %v3904_v30, %v421_v63  ;;  %v1234_v36 = vmax.f32 %v1111_v18, 0.0 }
 0x271   :  { %v1911_v6 = vmul.f32 %v3174_v58, %v1910_v2  ;;  %v3081_v7 = vmul.f32 -1.442695, %v1463_v3  ;;  %v491_v38 = vmax.f32 %v422_v22, 0.0 }
 0x272   :  { %v3176_v8 = vpop.eup %3175  ;;  %v775_v10 = vpop.f32.mrf.mxu1 }
 0x273   :  { %v3178_v11 = vpop.eup %3177  ;;  %v1912_v12 = vadd.f32 %v3174_v58, %v1911_v6  ;;  %v4002_v13 = vadd.f32 1.0, %v3176_v8  ;;  %3179 = vpow2.f32 %v3081_v7  ;;  %v776_v14 = vadd.f32 %v3963_v15, %v775_v10 }
 0x274   :  { %v1924_v17 = vmul.f32 %v3178_v11, %v3987_v56  ;;  %v1112_v19 = vpop.f32.mrf.mxu2  ;;  %vm1929_vm4 = vweird.f32 %v3178_v11 }
 0x275   :  { %v1916_v20 = vsel %vm1915_vm2, %v3174_v58, %v1912_v12  ;;  %3181 = vrcp.f32 %v4002_v13  ;;  %v871_v26 = vmax.f32 %v776_v14, 0.0  ;;  %v1113_v31 = vadd.f32 %v3795_v39, %v1112_v19  ;;  %vm1930_vm6 = vmor %vm1928_vm5, %vm1929_vm4 }
 0x276   :  { %v1921_v23 = vsel %vm1918_vm3, %v1920_v16, %v1916_v20  ;;  %v1925_v24 = vsub.f32 1.0, %v1924_v17  ;;  %v423_v27 = vpop.f32.mrf.mxu0  ;;  %v1464_v28 = vpop.f32.mrf.mxu3  ;;  %v1947_v1 = vand.u32 2147483647, %v4002_v13  ;;  %v1949_v57 = vand.u32 2147483648, %v4002_v13 }
 0x277   :  { %2826 = vst.msk [vmem:[%s4539_s9 + $0x18] sm:$0xff] %vm165_vm0, %v1921_v23  ;;  %v424_v32 = vadd.f32 %v3904_v30, %v423_v27  ;;  %v1465_v33 = vadd.f32 %v3921_v59, %v1464_v28  ;;  %v913_v35 = vpack.c.bf16 %v871_v26, %v870_v25  ;;  %v1235_v40 = vmax.f32 %v1113_v31, 0.0 }
 0x278   :  { %v1926_v34 = vmul.f32 %v3178_v11, %v1925_v24  ;;  %vm1943_vm9 = vweird.f32 %v4002_v13  ;;  %vm1948_vm10 = vcmp.eq.f32.partialorder %v1947_v1, 8.507059e+37  ;;  %v1950_v5 = vor.u32 1.1754944e-38, %v1949_v57 }
 0x279   :  { %v3180_v37 = vpop.eup %3179  ;;  %v492_v41 = vmax.f32 %v424_v32, 0.0  ;;  %v3082_v42 = vmul.f32 -1.442695, %v1465_v33  ;;  %3016 = vmatmul.msk.bf16.gmra.mxu2 %vm944_vm1, %v913_v35  ;;  %v1286_v48 = vpack.c.bf16 %v1235_v40, %v1234_v36 }
 0x27a   :  { %v1927_v43 = vadd.f32 %v3178_v11, %v1926_v34  ;;  %v4019_v44 = vadd.f32 1.0, %v3180_v37  ;;  %v778_v45 = vpop.f32.mrf.mxu1 }
 0x27b   :  { %v3182_v46 = vpop.eup %3181  ;;  %v525_v49 = vpack.c.bf16 %v492_v41, %v491_v38  ;;  %3183 = vpow2.f32 %v3082_v42  ;;  %3055 = vmatmul.msk.bf16.gmra.mxu3 %vm165_vm0, %v1286_v48  ;;  %v779_v61 = vadd.f32 %v3963_v15, %v778_v45 }
 0x27c   :  { %v1931_v50 = vsel %vm1930_vm6, %v3178_v11, %v1927_v43  ;;  %v1939_v51 = vmul.f32 %v3182_v46, %v4002_v13  ;;  %3185 = vrcp.f32 %v4019_v44  ;;  %v1115_v52 = vpop.f32.mrf.mxu2  ;;  %vm1944_vm8 = vweird.f32 %v3182_v46 }
 0x27d   :  { %v1936_v53 = vsel %vm1933_vm7, %v1935_v47, %v1931_v50  ;;  %2985 = vmatmul.msk.bf16.gmra.mxu1 %vm165_vm0, %v525_v49  ;;  %vm1945_vm11 = vmor %vm1943_vm9, %vm1944_vm8  ;;  %v872_v9 = vmax.f32 %v779_v61, 0.0  ;;  %v1116_v10 = vadd.f32 %v3795_v39, %v1115_v52  ;;  %v1962_v17 = vand.u32 2147483647, %v4019_v44 }
 0x27e   :  { %2827 = vst.msk [vmem:[%s4539_s9 + $0x20] sm:$0xff] %vm165_vm0, %v1936_v53  ;;  %v1940_v54 = vsub.f32 1.0, %v1939_v51  ;;  %v426_v55 = vpop.f32.mrf.mxu0  ;;  %v1467_v56 = vpop.f32.mrf.mxu3  ;;  %v1964_v18 = vand.u32 2147483648, %v4019_v44  ;;  %vm1958_vm13 = vweird.f32 %v4019_v44 }
 0x27f   :  { %v1468_v58 = vadd.f32 %v3921_v59, %v1467_v56  ;;  %v427_v14 = vadd.f32 %v3904_v30, %v426_v55  ;;  %v1236_v25 = vmax.f32 %v1116_v10, 0.0  ;;  %vm1963_vm15 = vcmp.eq.f32.partialorder %v1962_v17, 8.507059e+37 }
 0x280   :  { %v1941_v60 = vmul.f32 %v3182_v46, %v1940_v54  ;;  %v4071_v54 = vld [vmem:[%s4536_s6] ss:$0 sm:$0xff] }
 0x281   :  { %v3184_v62 = vpop.eup %3183  ;;  %v3083_v63 = vmul.f32 -1.442695, %v1468_v58  ;;  %v493_v31 = vmax.f32 %v427_v14, 0.0 }
 0x282   :  { %v3186_v0 = vpop.eup %3185  ;;  %v1942_v2 = vadd.f32 %v3182_v46, %v1941_v60  ;;  %v4035_v3 = vadd.f32 1.0, %v3184_v62  ;;  %v780_v4 = vpop.f32.mrf.mxu1 }
 0x283   :  { %v1954_v6 = vmul.f32 %v3186_v0, %v4019_v44  ;;  %3187 = vpow2.f32 %v3083_v63  ;;  %v781_v7 = vadd.f32 %v3963_v15, %v780_v4  ;;  %vm1959_vm12 = vweird.f32 %v3186_v0 }
 0x284   :  { %v1946_v8 = vsel %vm1945_vm11, %v3182_v46, %v1942_v2  ;;  %3189 = vrcp.f32 %v4035_v3  ;;  %v1117_v11 = vpop.f32.mrf.mxu2  ;;  %vm1960_vm14 = vmor %vm1958_vm13, %vm1959_vm12  ;;  %v1979_v44 = vand.u32 2147483648, %v4035_v3  ;;  %v1977_v47 = vand.u32 2147483647, %v4035_v3 }
 0x285   :  { %v1951_v12 = vsel %vm1948_vm10, %v1950_v5, %v1946_v8  ;;  %v1955_v13 = vsub.f32 1.0, %v1954_v6  ;;  %v873_v16 = vmax.f32 %v781_v7, 0.0  ;;  %v1118_v19 = vadd.f32 %v3795_v39, %v1117_v11 }
 0x286   :  { %2828 = vst.msk [vmem:[%s4539_s9 + $0x28] sm:$0xff] %vm165_vm0, %v1951_v12  ;;  %v428_v20 = vpop.f32.mrf.mxu0  ;;  %v1469_v21 = vpop.f32.mrf.mxu3  ;;  %v1965_v39 = vor.u32 1.1754944e-38, %v1964_v18  ;;  %vm1973_vm3 = vweird.f32 %v4035_v3  ;;  %v1980_v52 = vor.u32 1.1754944e-38, %v1979_v44  ;;  %vm1978_vm5 = vcmp.eq.f32.partialorder %v1977_v47, 8.507059e+37 }
 0x287   :  { %v1956_v22 = vmul.f32 %v3186_v0, %v1955_v13  ;;  %v914_v23 = vpack.c.bf16 %v873_v16, %v872_v9  ;;  %v429_v24 = vadd.f32 %v3904_v30, %v428_v20  ;;  %v1237_v26 = vmax.f32 %v1118_v19, 0.0 }
 0x288   :  { %v1470_v27 = vadd.f32 %v3921_v59, %v1469_v21 }
 0x289   :  { %v3188_v28 = vpop.eup %3187  ;;  %v1957_v29 = vadd.f32 %v3186_v0, %v1956_v22  ;;  %v494_v32 = vmax.f32 %v429_v24, 0.0  ;;  %v1287_v36 = vpack.c.bf16 %v1237_v26, %v1236_v25  ;;  %3017 = vmatmul.msk.bf16.gmra.mxu2 %vm944_vm1, %v914_v23 }
 0x28a   :  { %v3190_v33 = vpop.eup %3189  ;;  %v4052_v34 = vadd.f32 1.0, %v3188_v28  ;;  %v3084_v35 = vmul.f32 -1.442695, %v1470_v27  ;;  %v783_v30 = vpop.f32.mrf.mxu1 }
 0x28b   :  { %v1961_v37 = vsel %vm1960_vm14, %v3186_v0, %v1957_v29  ;;  %v1969_v38 = vmul.f32 %v3190_v33, %v4035_v3  ;;  %v526_v40 = vpack.c.bf16 %v494_v32, %v493_v31  ;;  %3056 = vmatmul.msk.bf16.gmra.mxu3 %vm165_vm0, %v1287_v36  ;;  %vm1974_vm2 = vweird.f32 %v3190_v33 }
 0x28c   :  { %v1966_v41 = vsel %vm1963_vm15, %v1965_v39, %v1961_v37  ;;  %3191 = vrcp.f32 %v4052_v34  ;;  %v1120_v42 = vpop.f32.mrf.mxu2  ;;  %vm1975_vm4 = vmor %vm1973_vm3, %vm1974_vm2  ;;  %v784_v53 = vadd.f32 %v3963_v15, %v783_v30  ;;  %v1992_v2 = vand.u32 2147483647, %v4052_v34 }
 0x28d   :  { %2829 = vst.msk [vmem:[%s4539_s9 + $0x30] sm:$0xff] %vm165_vm0, %v1966_v41  ;;  %v1970_v43 = vsub.f32 1.0, %v1969_v38  ;;  %3193 = vpow2.f32 %v3084_v35  ;;  %2986 = vmatmul.msk.bf16.gmra.mxu1 %vm165_vm0, %v526_v40  ;;  %v1121_v1 = vadd.f32 %v4071_v54, %v1120_v42  ;;  %v1994_v3 = vand.u32 2147483648, %v4052_v34 }
 0x28e   :  { %v1472_v45 = vpop.f32.mrf.mxu3  ;;  %v874_v5 = vmax.f32 %v784_v53, 0.0  ;;  %vm1988_vm7 = vweird.f32 %v4052_v34  ;;  %vm1993_vm9 = vcmp.eq.f32.partialorder %v1992_v2, 8.507059e+37 }
 0x28f   :  { %v1971_v46 = vmul.f32 %v3190_v33, %v1970_v43  ;;  %v1473_v48 = vadd.f32 %v3921_v59, %v1472_v45  ;;  %v1238_v6 = vmax.f32 %v1121_v1, 0.0  ;;  %v1995_v18 = vor.u32 1.1754944e-38, %v1994_v3 }
 0x291   :  { %v1972_v49 = vadd.f32 %v3190_v33, %v1971_v46  ;;  %v3085_v50 = vmul.f32 -1.442695, %v1473_v48 }
 0x292   :  { %v3192_v51 = vpop.eup %3191  ;;  %v785_v55 = vpop.f32.mrf.mxu1 }
 0x293   :  { %v3194_v56 = vpop.eup %3193  ;;  %v1976_v57 = vsel %vm1975_vm4, %v3190_v33, %v1972_v49  ;;  %v1984_v58 = vmul.f32 %v3192_v51, %v4052_v34  ;;  %3195 = vpow2.f32 %v3085_v50  ;;  %v786_v62 = vadd.f32 %v3963_v15, %v785_v55 }
 0x294   :  { %v1981_v60 = vsel %vm1978_vm5, %v1980_v52, %v1976_v57  ;;  %v1808_v61 = vadd.f32 1.0, %v3194_v56  ;;  %v1122_v63 = vpop.f32.mrf.mxu2  ;;  %vm1989_vm6 = vweird.f32 %v3192_v51 }
 0x295   :  { %2830 = vst.msk [vmem:[%s4539_s9 + $0x38] sm:$0xff] %vm165_vm0, %v1981_v60  ;;  %v1985_v0 = vsub.f32 1.0, %v1984_v58  ;;  %v1123_v4 = vadd.f32 %v4071_v54, %v1122_v63  ;;  %v875_v9 = vmax.f32 %v786_v62, 0.0  ;;  %vm1990_vm8 = vmor %vm1988_vm7, %vm1989_vm6 }
 0x296   :  { %3197 = vrcp.f32 %v1808_v61  ;;  %v1474_v7 = vpop.f32.mrf.mxu3  ;;  %v2007_v28 = vand.u32 2147483647, %v1808_v61  ;;  %v2009_v31 = vand.u32 2147483648, %v1808_v61  ;;  %vm2003_vm11 = vweird.f32 %v1808_v61 }
 0x297   :  { %v1986_v8 = vmul.f32 %v3192_v51, %v1985_v0  ;;  %v1239_v10 = vmax.f32 %v1123_v4, 0.0  ;;  %v1475_v11 = vadd.f32 %v3921_v59, %v1474_v7  ;;  %v915_v14 = vpack.c.bf16 %v875_v9, %v874_v5 }
 0x298   :  { %vm2008_vm12 = vcmp.eq.f32.partialorder %v2007_v28, 8.507059e+37  ;;  %v2010_v41 = vor.u32 1.1754944e-38, %v2009_v31 }
 0x299   :  { %v3196_v12 = vpop.eup %3195  ;;  %v1987_v13 = vadd.f32 %v3192_v51, %v1986_v8  ;;  %v1288_v16 = vpack.c.bf16 %v1239_v10, %v1238_v6  ;;  %v3086_v17 = vmul.f32 -1.442695, %v1475_v11  ;;  %3018 = vmatmul.msk.bf16.gmra.mxu2 %vm944_vm1, %v915_v14 }
 0x29a   :  { %v4086_v19 = vadd.f32 1.0, %v3196_v12  ;;  %v788_v20 = vpop.f32.mrf.mxu1 }
 0x29b   :  { %v1991_v21 = vsel %vm1990_vm8, %v3192_v51, %v1987_v13  ;;  %3199 = vpow2.f32 %v3086_v17  ;;  %3057 = vmatmul.msk.bf16.gmra.mxu3 %vm165_vm0, %v1288_v16  ;;  %v789_v35 = vadd.f32 %v3963_v15, %v788_v20 }
 0x29c   :  { %v3198_v22 = vpop.eup %3197  ;;  %v1996_v23 = vsel %vm1993_vm9, %v1995_v18, %v1991_v21  ;;  %3201 = vrcp.f32 %v4086_v19  ;;  %v1125_v24 = vpop.f32.mrf.mxu2  ;;  %v2022_v42 = vand.u32 2147483647, %v4086_v19  ;;  %v2024_v43 = vand.u32 2147483648, %v4086_v19 }
 0x29d   :  { %2831 = vst.msk [vmem:[%s4539_s9 + $0x40] sm:$0xff] %vm165_vm0, %v1996_v23  ;;  %v1999_v25 = vmul.f32 %v3198_v22, %v1808_v61  ;;  %vm2004_vm10 = vweird.f32 %v3198_v22  ;;  %v1126_v30 = vadd.f32 %v4071_v54, %v1125_v24  ;;  %v876_v50 = vmax.f32 %v789_v35, 0.0 }
 0x29e   :  { %v1477_v26 = vpop.f32.mrf.mxu3  ;;  %vm2005_vm13 = vmor %vm2003_vm11, %vm2004_vm10  ;;  %vm2018_vm15 = vweird.f32 %v4086_v19  ;;  %v2025_v0 = vor.u32 1.1754944e-38, %v2024_v43  ;;  %vm2023_vm3 = vcmp.eq.f32.partialorder %v2022_v42, 8.507059e+37 }
 0x29f   :  { %v2000_v27 = vsub.f32 1.0, %v1999_v25  ;;  %v1478_v29 = vadd.f32 %v3921_v59, %v1477_v26  ;;  %v1240_v51 = vmax.f32 %v1126_v30, 0.0 }
 0x2a1   :  { %v3200_v32 = vpop.eup %3199  ;;  %v2001_v33 = vmul.f32 %v3198_v22, %v2000_v27  ;;  %v3087_v39 = vmul.f32 -1.442695, %v1478_v29 }
 0x2a2   :  { %v3202_v34 = vpop.eup %3201  ;;  %v4096_v36 = vadd.f32 1.0, %v3200_v32  ;;  %v790_v37 = vpop.f32.mrf.mxu1 }
 0x2a3   :  { %v2002_v38 = vadd.f32 %v3198_v22, %v2001_v33  ;;  %v2014_v40 = vmul.f32 %v3202_v34, %v4086_v19  ;;  %3203 = vpow2.f32 %v3087_v39  ;;  %v791_v47 = vadd.f32 %v3963_v15, %v790_v37 }
 0x2a4   :  { %3205 = vrcp.f32 %v4096_v36  ;;  %v1127_v44 = vpop.f32.mrf.mxu2  ;;  %vm2019_vm14 = vweird.f32 %v3202_v34  ;;  %v2039_v9 = vand.u32 2147483648, %v4096_v36  ;;  %v2037_v12 = vand.u32 2147483647, %v4096_v36 }
 0x2a5   :  { %v2006_v45 = vsel %vm2005_vm13, %v3198_v22, %v2002_v38  ;;  %v2015_v46 = vsub.f32 1.0, %v2014_v40  ;;  %v1128_v48 = vadd.f32 %v4071_v54, %v1127_v44  ;;  %v877_v1 = vmax.f32 %v791_v47, 0.0  ;;  %vm2020_vm2 = vmor %vm2018_vm15, %vm2019_vm14 }
 0x2a6   :  { %v2011_v49 = vsel %vm2008_vm12, %v2010_v41, %v2006_v45  ;;  %v1479_v52 = vpop.f32.mrf.mxu3  ;;  %vm2033_vm5 = vweird.f32 %v4096_v36  ;;  %v2040_v19 = vor.u32 1.1754944e-38, %v2039_v9  ;;  %vm2038_vm7 = vcmp.eq.f32.partialorder %v2037_v12, 8.507059e+37 }
 0x2a7   :  { %2832 = vst.msk [vmem:[%s4539_s9 + $0x48] sm:$0xff] %vm165_vm0, %v2011_v49  ;;  %v2016_v53 = vmul.f32 %v3202_v34, %v2015_v46  ;;  %v1241_v55 = vmax.f32 %v1128_v48, 0.0  ;;  %v1480_v56 = vadd.f32 %v3921_v59, %v1479_v52  ;;  %v916_v60 = vpack.c.bf16 %v877_v1, %v876_v50 }
 0x2a9   :  { %v3204_v57 = vpop.eup %3203  ;;  %v2017_v58 = vadd.f32 %v3202_v34, %v2016_v53  ;;  %v1289_v61 = vpack.c.bf16 %v1241_v55, %v1240_v51  ;;  %v3088_v62 = vmul.f32 -1.442695, %v1480_v56  ;;  %3019 = vmatmul.msk.bf16.gmra.mxu2 %vm944_vm1, %v916_v60 }
 0x2aa   :  { %v3206_v63 = vpop.eup %3205  ;;  %v4113_v2 = vadd.f32 1.0, %v3204_v57  ;;  %v793_v3 = vpop.f32.mrf.mxu1 }
 0x2ab   :  { %v2021_v4 = vsel %vm2020_vm2, %v3202_v34, %v2017_v58  ;;  %v2029_v5 = vmul.f32 %v3206_v63, %v4096_v36  ;;  %3207 = vpow2.f32 %v3088_v62  ;;  %3058 = vmatmul.msk.bf16.gmra.mxu3 %vm165_vm0, %v1289_v61  ;;  %vm2034_vm4 = vweird.f32 %v3206_v63 }
 0x2ac   :  { %v2026_v6 = vsel %vm2023_vm3, %v2025_v0, %v2021_v4  ;;  %3209 = vrcp.f32 %v4113_v2  ;;  %v1130_v7 = vpop.f32.mrf.mxu2  ;;  %v794_v17 = vadd.f32 %v3963_v15, %v793_v3  ;;  %vm2035_vm6 = vmor %vm2033_vm5, %vm2034_vm4  ;;  %v2052_v33 = vand.u32 2147483647, %v4113_v2 }
 0x2ad   :  { %2833 = vst.msk [vmem:[%s4539_s9 + $0x50] sm:$0xff] %vm165_vm0, %v2026_v6  ;;  %v2030_v8 = vsub.f32 1.0, %v2029_v5  ;;  %v1131_v27 = vadd.f32 %v4071_v54, %v1130_v7  ;;  %v2054_v39 = vand.u32 2147483648, %v4113_v2  ;;  %vm2048_vm9 = vweird.f32 %v4113_v2 }
 0x2ae   :  { %v1482_v10 = vpop.f32.mrf.mxu3  ;;  %v878_v31 = vmax.f32 %v794_v17, 0.0  ;;  %vm2053_vm11 = vcmp.eq.f32.partialorder %v2052_v33, 8.507059e+37 }
 0x2af   :  { %v2031_v11 = vmul.f32 %v3206_v63, %v2030_v8  ;;  %v1483_v13 = vadd.f32 %v3921_v59, %v1482_v10  ;;  %v1242_v38 = vmax.f32 %v1131_v27, 0.0  ;;  %v2055_v44 = vor.u32 1.1754944e-38, %v2054_v39 }
 0x2b1   :  { %v3208_v14 = vpop.eup %3207  ;;  %v2032_v16 = vadd.f32 %v3206_v63, %v2031_v11  ;;  %v3089_v21 = vmul.f32 -1.442695, %v1483_v13 }
 0x2b2   :  { %v3210_v18 = vpop.eup %3209  ;;  %v4128_v20 = vadd.f32 1.0, %v3208_v14  ;;  %v795_v22 = vpop.f32.mrf.mxu1 }
 0x2b3   :  { %v2036_v23 = vsel %vm2035_vm6, %v3206_v63, %v2032_v16  ;;  %v2044_v24 = vmul.f32 %v3210_v18, %v4113_v2  ;;  %v796_v25 = vadd.f32 %v3963_v15, %v795_v22  ;;  %vm2049_vm8 = vweird.f32 %v3210_v18 }
 0x2b4   :  { %v2041_v26 = vsel %vm2038_vm7, %v2040_v19, %v2036_v23  ;;  %3211 = vrcp.f32 %v4128_v20  ;;  %v1132_v28 = vpop.f32.mrf.mxu2  ;;  %vm2050_vm10 = vmor %vm2048_vm9, %vm2049_vm8  ;;  %v2069_v1 = vand.u32 2147483648, %v4128_v20  ;;  %v2067_v57 = vand.u32 2147483647, %v4128_v20 }
 0x2b5   :  { %2834 = vst.msk [vmem:[%s4539_s9 + $0x58] sm:$0xff] %vm165_vm0, %v2041_v26  ;;  %v2045_v29 = vsub.f32 1.0, %v2044_v24  ;;  %3213 = vpow2.f32 %v3089_v21  ;;  %v879_v32 = vmax.f32 %v796_v25, 0.0  ;;  %v1133_v34 = vadd.f32 %v4071_v54, %v1132_v28 }
 0x2b6   :  { %v1484_v36 = vpop.f32.mrf.mxu3  ;;  %vm2063_vm13 = vweird.f32 %v4128_v20  ;;  %v2070_v0 = vor.u32 1.1754944e-38, %v2069_v1  ;;  %vm2068_vm15 = vcmp.eq.f32.partialorder %v2067_v57, 8.507059e+37 }
 0x2b7   :  { %v2046_v35 = vmul.f32 %v3210_v18, %v2045_v29  ;;  %v917_v30 = vpack.c.bf16 %v879_v32, %v878_v31  ;;  %v1485_v37 = vadd.f32 %v3921_v59, %v1484_v36  ;;  %v1243_v40 = vmax.f32 %v1133_v34, 0.0 }
 0x2b9   :  { %v2047_v41 = vadd.f32 %v3210_v18, %v2046_v35  ;;  %v3090_v42 = vmul.f32 -1.442695, %v1485_v37  ;;  %v1290_v45 = vpack.c.bf16 %v1243_v40, %v1242_v38  ;;  %3020 = vmatmul.msk.bf16.gmra.mxu2 %vm944_vm1, %v917_v30  ;;  %v4181_v40 = vld [vmem:[%s4538_s8] ss:$0 sm:$0xff] }
 0x2ba   :  { %v3212_v43 = vpop.eup %3211  ;;  %v798_v46 = vpop.f32.mrf.mxu1 }
 0x2bb   :  { %v3214_v47 = vpop.eup %3213  ;;  %v2051_v48 = vsel %vm2050_vm10, %v3210_v18, %v2047_v41  ;;  %v2059_v49 = vmul.f32 %v3212_v43, %v4128_v20  ;;  %3215 = vpow2.f32 %v3090_v42  ;;  %3059 = vmatmul.msk.bf16.gmra.mxu3 %vm165_vm0, %v1290_v45  ;;  %vm2064_vm12 = vweird.f32 %v3212_v43 }
 0x2bc   :  { %v2056_v50 = vsel %vm2053_vm11, %v2055_v44, %v2051_v48  ;;  %v1813_v51 = vadd.f32 1.0, %v3214_v47  ;;  %v1135_v52 = vpop.f32.mrf.mxu2  ;;  %v799_v62 = vadd.f32 %v3963_v15, %v798_v46  ;;  %vm2065_vm14 = vmor %vm2063_vm13, %vm2064_vm12 }
 0x2bd   :  { %2835 = vst.msk [vmem:[%s4539_s9 + $0x60] sm:$0xff] %vm165_vm0, %v2056_v50  ;;  %v2060_v53 = vsub.f32 1.0, %v2059_v49  ;;  %v1136_v8 = vadd.f32 %v4071_v54, %v1135_v52 }
 0x2be   :  { %3217 = vrcp.f32 %v1813_v51  ;;  %v1487_v55 = vpop.f32.mrf.mxu3  ;;  %v880_v11 = vmax.f32 %v799_v62, 0.0  ;;  %v2084_v19 = vand.u32 2147483648, %v1813_v51  ;;  %v2082_v24 = vand.u32 2147483647, %v1813_v51 }
 0x2bf   :  { %v2061_v56 = vmul.f32 %v3212_v43, %v2060_v53  ;;  %v1488_v58 = vadd.f32 %v3921_v59, %v1487_v55  ;;  %v1244_v20 = vmax.f32 %v1136_v8, 0.0  ;;  %vm2078_vm3 = vweird.f32 %v1813_v51 }
 0x2c0   :  { %vm2083_vm5 = vcmp.eq.f32.partialorder %v2082_v24, 8.507059e+37 }
 0x2c1   :  { %v3216_v60 = vpop.eup %3215  ;;  %v2062_v61 = vadd.f32 %v3212_v43, %v2061_v56  ;;  %v3091_v63 = vmul.f32 -1.442695, %v1488_v58 }
 0x2c2   :  { %v4155_v2 = vadd.f32 1.0, %v3216_v60  ;;  %v800_v3 = vpop.f32.mrf.mxu1 }
 0x2c3   :  { %v2066_v4 = vsel %vm2065_vm14, %v3212_v43, %v2062_v61  ;;  %3219 = vpow2.f32 %v3091_v63  ;;  %v801_v5 = vadd.f32 %v3963_v15, %v800_v3 }
 0x2c4   :  { %v3218_v6 = vpop.eup %3217  ;;  %v2071_v7 = vsel %vm2068_vm15, %v2070_v0, %v2066_v4  ;;  %3221 = vrcp.f32 %v4155_v2  ;;  %v1137_v9 = vpop.f32.mrf.mxu2  ;;  %v2099_v35 = vand.u32 2147483648, %v4155_v2  ;;  %v2097_v38 = vand.u32 2147483647, %v4155_v2 }
 0x2c5   :  { %2836 = vst.msk [vmem:[%s4539_s9 + $0x68] sm:$0xff] %vm165_vm0, %v2071_v7  ;;  %v2074_v10 = vmul.f32 %v3218_v6, %v1813_v51  ;;  %v881_v12 = vmax.f32 %v801_v5, 0.0  ;;  %v1138_v13 = vadd.f32 %v4071_v54, %v1137_v9  ;;  %vm2079_vm2 = vweird.f32 %v3218_v6 }
 0x2c6   :  { %v1489_v14 = vpop.f32.mrf.mxu3  ;;  %vm2080_vm4 = vmor %vm2078_vm3, %vm2079_vm2  ;;  %vm2093_vm7 = vweird.f32 %v4155_v2  ;;  %v2100_v46 = vor.u32 1.1754944e-38, %v2099_v35  ;;  %vm2098_vm9 = vcmp.eq.f32.partialorder %v2097_v38, 8.507059e+37  ;;  %v4221_v35 = vld [vmem:[%s4534_s4] ss:$0 sm:$0xff] }
 0x2c7   :  { %v2075_v16 = vsub.f32 1.0, %v2074_v10  ;;  %v918_v17 = vpack.c.bf16 %v881_v12, %v880_v11  ;;  %v1490_v18 = vadd.f32 %v3921_v59, %v1489_v14  ;;  %v1245_v21 = vmax.f32 %v1138_v13, 0.0 }
 0x2c8   :  { %v2085_v59 = vor.u32 1.1754944e-38, %v2084_v19 }
 0x2c9   :  { %v3220_v22 = vpop.eup %3219  ;;  %v2076_v23 = vmul.f32 %v3218_v6, %v2075_v16  ;;  %v3092_v25 = vmul.f32 -1.442695, %v1490_v18  ;;  %v1291_v28 = vpack.c.bf16 %v1245_v21, %v1244_v20  ;;  %3021 = vmatmul.msk.bf16.gmra.mxu2 %vm944_vm1, %v918_v17 }
 0x2ca   :  { %v3222_v26 = vpop.eup %3221  ;;  %v4166_v27 = vadd.f32 1.0, %v3220_v22  ;;  %v803_v29 = vpop.f32.mrf.mxu1 }
 0x2cb   :  { %v2077_v31 = vadd.f32 %v3218_v6, %v2076_v23  ;;  %v2089_v32 = vmul.f32 %v3222_v26, %v4155_v2  ;;  %3223 = vpow2.f32 %v3092_v25  ;;  %3060 = vmatmul.msk.bf16.gmra.mxu3 %vm165_vm0, %v1291_v28  ;;  %vm2094_vm6 = vweird.f32 %v3222_v26 }
 0x2cc   :  { %3225 = vrcp.f32 %v4166_v27  ;;  %v1140_v33 = vpop.f32.mrf.mxu2  ;;  %vm2095_vm8 = vmor %vm2093_vm7, %vm2094_vm6  ;;  %v804_v48 = vadd.f32 %v3963_v15, %v803_v29  ;;  %v2112_v58 = vand.u32 2147483647, %v4166_v27  ;;  %v2114_v60 = vand.u32 2147483648, %v4166_v27 }
 0x2cd   :  { %v2081_v39 = vsel %vm2080_vm4, %v3218_v6, %v2077_v31  ;;  %v2090_v34 = vsub.f32 1.0, %v2089_v32  ;;  %v1141_v49 = vadd.f32 %v4071_v54, %v1140_v33  ;;  %vm2108_vm11 = vweird.f32 %v4166_v27 }
 0x2ce   :  { %v2086_v36 = vsel %vm2083_vm5, %v2085_v59, %v2081_v39  ;;  %v1492_v30 = vpop.f32.mrf.mxu3  ;;  %v882_v61 = vmax.f32 %v804_v48, 0.0  ;;  %v2115_v10 = vor.u32 1.1754944e-38, %v2114_v60  ;;  %vm2113_vm13 = vcmp.eq.f32.partialorder %v2112_v58, 8.507059e+37 }
 0x2cf   :  { %2837 = vst.msk [vmem:[%s4539_s9 + $0x70] sm:$0xff] %vm165_vm0, %v2086_v36  ;;  %v2091_v37 = vmul.f32 %v3222_v26, %v2090_v34  ;;  %v1493_v41 = vadd.f32 %v4181_v40, %v1492_v30  ;;  %v1246_v62 = vmax.f32 %v1141_v49, 0.0 }
 0x2d1   :  { %v3224_v42 = vpop.eup %3223  ;;  %v2092_v43 = vadd.f32 %v3222_v26, %v2091_v37  ;;  %v3093_v44 = vmul.f32 -1.442695, %v1493_v41 }
 0x2d2   :  { %v3226_v45 = vpop.eup %3225  ;;  %v4185_v47 = vadd.f32 1.0, %v3224_v42  ;;  %v805_v50 = vpop.f32.mrf.mxu1 }
 0x2d3   :  { %v2096_v51 = vsel %vm2095_vm8, %v3222_v26, %v2092_v43  ;;  %v2104_v52 = vmul.f32 %v3226_v45, %v4166_v27  ;;  %3227 = vpow2.f32 %v3093_v44  ;;  %v806_v56 = vadd.f32 %v3963_v15, %v805_v50 }
 0x2d4   :  { %v2101_v53 = vsel %vm2098_vm9, %v2100_v46, %v2096_v51  ;;  %3229 = vrcp.f32 %v4185_v47  ;;  %v1142_v1 = vpop.f32.mrf.mxu2  ;;  %vm2109_vm10 = vweird.f32 %v3226_v45  ;;  %v2129_v20 = vand.u32 2147483648, %v4185_v47 }
 0x2d5   :  { %2838 = vst.msk [vmem:[%s4539_s9 + $0x78] sm:$0xff] %vm165_vm0, %v2101_v53  ;;  %v2105_v55 = vsub.f32 1.0, %v2104_v52  ;;  %v1143_v57 = vadd.f32 %v4071_v54, %v1142_v1  ;;  %v883_v2 = vmax.f32 %v806_v56, 0.0  ;;  %vm2110_vm12 = vmor %vm2108_vm11, %vm2109_vm10  ;;  %v2127_v23 = vand.u32 2147483647, %v4185_v47 }
 0x2d6   :  { %v1494_v63 = vpop.f32.mrf.mxu3  ;;  %vm2123_vm15 = vweird.f32 %v4185_v47  ;;  %v2130_v28 = vor.u32 1.1754944e-38, %v2129_v20 }
 0x2d7   :  { %v2106_v0 = vmul.f32 %v3226_v45, %v2105_v55  ;;  %v1247_v3 = vmax.f32 %v1143_v57, 0.0  ;;  %v1495_v4 = vadd.f32 %v4181_v40, %v1494_v63  ;;  %v919_v7 = vpack.c.bf16 %v883_v2, %v882_v61 }
 0x2d8   :  { %vm2128_vm3 = vcmp.eq.f32.partialorder %v2127_v23, 8.507059e+37 }
 0x2d9   :  { %v3228_v5 = vpop.eup %3227  ;;  %v2107_v6 = vadd.f32 %v3226_v45, %v2106_v0  ;;  %v1292_v8 = vpack.c.bf16 %v1247_v3, %v1246_v62  ;;  %v3094_v12 = vmul.f32 -1.442695, %v1495_v4  ;;  %3022 = vmatmul.msk.bf16.gmra.mxu2 %vm944_vm1, %v919_v7 }
 0x2da   :  { %v3230_v9 = vpop.eup %3229  ;;  %v4201_v11 = vadd.f32 1.0, %v3228_v5  ;;  %v808_v13 = vpop.f32.mrf.mxu1 }
 0x2db   :  { %v2111_v14 = vsel %vm2110_vm12, %v3226_v45, %v2107_v6  ;;  %v2119_v16 = vmul.f32 %v3230_v9, %v4185_v47  ;;  %3061 = vmatmul.msk.bf16.gmra.mxu3 %vm165_vm0, %v1292_v8  ;;  %vm2124_vm14 = vweird.f32 %v3230_v9  ;;  %v809_v29 = vadd.f32 %v3963_v15, %v808_v13 }
 0x2dc   :  { %v2116_v17 = vsel %vm2113_vm13, %v2115_v10, %v2111_v14  ;;  %3231 = vrcp.f32 %v4201_v11  ;;  %v1145_v18 = vpop.f32.mrf.mxu2  ;;  %vm2125_vm2 = vmor %vm2123_vm15, %vm2124_vm14  ;;  %v2142_v38 = vand.u32 2147483647, %v4201_v11  ;;  %v2144_v41 = vand.u32 2147483648, %v4201_v11 }
 0x2dd   :  { %2839 = vst.msk [vmem:[%s4539_s9 + $0x80] sm:$0xff] %vm165_vm0, %v2116_v17  ;;  %v2120_v19 = vsub.f32 1.0, %v2119_v16  ;;  %3233 = vpow2.f32 %v3094_v12  ;;  %v1146_v31 = vadd.f32 %v4071_v54, %v1145_v18  ;;  %v884_v43 = vmax.f32 %v809_v29, 0.0 }
 0x2de   :  { %v1497_v21 = vpop.f32.mrf.mxu3  ;;  %vm2138_vm5 = vweird.f32 %v4201_v11  ;;  %v2145_v55 = vor.u32 1.1754944e-38, %v2144_v41  ;;  %vm2143_vm7 = vcmp.eq.f32.partialorder %v2142_v38, 8.507059e+37 }
 0x2df   :  { %v2121_v22 = vmul.f32 %v3230_v9, %v2120_v19  ;;  %v1498_v24 = vadd.f32 %v4181_v40, %v1497_v21  ;;  %v1248_v44 = vmax.f32 %v1146_v31, 0.0 }
 0x2e1   :  { %v2122_v25 = vadd.f32 %v3230_v9, %v2121_v22  ;;  %v3095_v26 = vmul.f32 -1.442695, %v1498_v24 }
 0x2e2   :  { %v3232_v27 = vpop.eup %3231  ;;  %v810_v32 = vpop.f32.mrf.mxu1 }
 0x2e3   :  { %v3234_v59 = vpop.eup %3233  ;;  %v2126_v33 = vsel %vm2125_vm2, %v3230_v9, %v2122_v25  ;;  %v2134_v39 = vmul.f32 %v3232_v27, %v4201_v11  ;;  %3235 = vpow2.f32 %v3095_v26  ;;  %v811_v30 = vadd.f32 %v4221_v35, %v810_v32 }
 0x2e4   :  { %v2131_v34 = vsel %vm2128_vm3, %v2130_v28, %v2126_v33  ;;  %v1818_v36 = vadd.f32 1.0, %v3234_v59  ;;  %v1147_v37 = vpop.f32.mrf.mxu2  ;;  %vm2139_vm4 = vweird.f32 %v3232_v27 }
 0x2e5   :  { %2840 = vst.msk [vmem:[%s4539_s9 + $0x88] sm:$0xff] %vm165_vm0, %v2131_v34  ;;  %v2135_v15 = vsub.f32 1.0, %v2134_v39  ;;  %v1148_v42 = vadd.f32 %v4071_v54, %v1147_v37  ;;  %v885_v47 = vmax.f32 %v811_v30, 0.0  ;;  %vm2140_vm6 = vmor %vm2138_vm5, %vm2139_vm4 }
 0x2e6   :  { %3237 = vrcp.f32 %v1818_v36  ;;  %v1499_v45 = vpop.f32.mrf.mxu3  ;;  %v2157_v3 = vand.u32 2147483647, %v1818_v36  ;;  %v2159_v5 = vand.u32 2147483648, %v1818_v36  ;;  %vm2153_vm9 = vweird.f32 %v1818_v36 }
 0x2e7   :  { %v2136_v46 = vmul.f32 %v3232_v27, %v2135_v15  ;;  %v1249_v48 = vmax.f32 %v1148_v42, 0.0  ;;  %v1500_v49 = vadd.f32 %v4181_v40, %v1499_v45  ;;  %v920_v52 = vpack.c.bf16 %v885_v47, %v884_v43 }
 0x2e8   :  { %vm2158_vm10 = vcmp.eq.f32.partialorder %v2157_v3, 8.507059e+37  ;;  %v2160_v17 = vor.u32 1.1754944e-38, %v2159_v5 }
 0x2e9   :  { %v3236_v50 = vpop.eup %3235  ;;  %v2137_v51 = vadd.f32 %v3232_v27, %v2136_v46  ;;  %v1293_v53 = vpack.c.bf16 %v1249_v48, %v1248_v44  ;;  %v3096_v1 = vmul.f32 -1.442695, %v1500_v49  ;;  %3023 = vmatmul.msk.bf16.gmra.mxu2 %vm944_vm1, %v920_v52 }
 0x2ea   :  { %v4234_v56 = vadd.f32 1.0, %v3236_v50  ;;  %v813_v57 = vpop.f32.mrf.mxu1 }
 0x2eb   :  { %v2141_v58 = vsel %vm2140_vm6, %v3232_v27, %v2137_v51  ;;  %3239 = vpow2.f32 %v3096_v1  ;;  %3062 = vmatmul.msk.bf16.gmra.mxu3 %vm165_vm0, %v1293_v53  ;;  %v814_v11 = vadd.f32 %v4221_v35, %v813_v57 }
 0x2ec   :  { %v3238_v60 = vpop.eup %3237  ;;  %v2146_v61 = vsel %vm2143_vm7, %v2145_v55, %v2141_v58  ;;  %3241 = vrcp.f32 %v4234_v56  ;;  %v1150_v62 = vpop.f32.mrf.mxu2  ;;  %v2172_v18 = vand.u32 2147483647, %v4234_v56  ;;  %v2174_v19 = vand.u32 2147483648, %v4234_v56 }
 0x2ed   :  { %2841 = vst.msk [vmem:[%s4539_s9 + $0x90] sm:$0xff] %vm165_vm0, %v2146_v61  ;;  %v2149_v63 = vmul.f32 %v3238_v60, %v1818_v36  ;;  %vm2154_vm8 = vweird.f32 %v3238_v60  ;;  %v1151_v12 = vadd.f32 %v4071_v54, %v1150_v62  ;;  %v886_v26 = vmax.f32 %v814_v11, 0.0 }
 0x2ee   :  { %v1502_v0 = vpop.f32.mrf.mxu3  ;;  %vm2155_vm11 = vmor %vm2153_vm9, %vm2154_vm8  ;;  %vm2168_vm13 = vweird.f32 %v4234_v56  ;;  %v2175_v15 = vor.u32 1.1754944e-38, %v2174_v19  ;;  %vm2173_vm15 = vcmp.eq.f32.partialorder %v2172_v18, 8.507059e+37 }
 0x2ef   :  { %v2150_v2 = vsub.f32 1.0, %v2149_v63  ;;  %v1503_v4 = vadd.f32 %v4181_v40, %v1502_v0  ;;  %v1250_v27 = vmax.f32 %v1151_v12, 0.0 }
 0x2f1   :  { %v3240_v6 = vpop.eup %3239  ;;  %v2151_v7 = vmul.f32 %v3238_v60, %v2150_v2  ;;  %v3097_v8 = vmul.f32 -1.442695, %v1503_v4 }
 0x2f2   :  { %v3242_v9 = vpop.eup %3241  ;;  %v1820_v10 = vadd.f32 1.0, %v3240_v6  ;;  %v815_v13 = vpop.f32.mrf.mxu1 }
 0x2f3   :  { %v2152_v14 = vadd.f32 %v3238_v60, %v2151_v7  ;;  %v2164_v16 = vmul.f32 %v3242_v9, %v4234_v56  ;;  %3243 = vpow2.f32 %v3097_v8  ;;  %v816_v23 = vadd.f32 %v4221_v35, %v815_v13 }
 0x2f4   :  { %3245 = vrcp.f32 %v1820_v10  ;;  %v1152_v20 = vpop.f32.mrf.mxu2  ;;  %vm2169_vm12 = vweird.f32 %v3242_v9  ;;  %v2187_v47 = vand.u32 2147483647, %v1820_v10  ;;  %v2189_v48 = vand.u32 2147483648, %v1820_v10 }
 0x2f5   :  { %v2156_v21 = vsel %vm2155_vm11, %v3238_v60, %v2152_v14  ;;  %v2165_v22 = vsub.f32 1.0, %v2164_v16  ;;  %v1153_v24 = vadd.f32 %v4071_v54, %v1152_v20  ;;  %v887_v31 = vmax.f32 %v816_v23, 0.0  ;;  %vm2170_vm14 = vmor %vm2168_vm13, %vm2169_vm12 }
 0x2f6   :  { %v2161_v25 = vsel %vm2158_vm10, %v2160_v17, %v2156_v21  ;;  %v1504_v28 = vpop.f32.mrf.mxu3  ;;  %vm2183_vm3 = vweird.f32 %v1820_v10  ;;  %vm2188_vm5 = vcmp.eq.f32.partialorder %v2187_v47, 8.507059e+37  ;;  %v2190_v55 = vor.u32 1.1754944e-38, %v2189_v48 }
 0x2f7   :  { %2842 = vst.msk [vmem:[%s4539_s9 + $0x98] sm:$0xff] %vm165_vm0, %v2161_v25  ;;  %v2166_v29 = vmul.f32 %v3242_v9, %v2165_v22  ;;  %v1251_v32 = vmax.f32 %v1153_v24, 0.0  ;;  %v1505_v59 = vadd.f32 %v4181_v40, %v1504_v28  ;;  %v921_v34 = vpack.c.bf16 %v887_v31, %v886_v26 }
 0x2f9   :  { %v3244_v33 = vpop.eup %3243  ;;  %v2167_v39 = vadd.f32 %v3242_v9, %v2166_v29  ;;  %v1294_v36 = vpack.c.bf16 %v1251_v32, %v1250_v27  ;;  %v3098_v30 = vmul.f32 -1.442695, %v1505_v59  ;;  %3024 = vmatmul.msk.bf16.gmra.mxu2 %vm944_vm1, %v921_v34 }
 0x2fa   :  { %v3246_v37 = vpop.eup %3245  ;;  %v1821_v38 = vadd.f32 1.0, %v3244_v33  ;;  %v818_v41 = vpop.f32.mrf.mxu1 }
 0x2fb   :  { %v2171_v42 = vsel %vm2170_vm14, %v3242_v9, %v2167_v39  ;;  %v2179_v43 = vmul.f32 %v3246_v37, %v1820_v10  ;;  %3247 = vpow2.f32 %v3098_v30  ;;  %3063 = vmatmul.msk.bf16.gmra.mxu3 %vm165_vm0, %v1294_v36  ;;  %vm2184_vm2 = vweird.f32 %v3246_v37 }
 0x2fc   :  { %v2176_v44 = vsel %vm2173_vm15, %v2175_v15, %v2171_v42  ;;  %3249 = vrcp.f32 %v1821_v38  ;;  %v1155_v46 = vpop.f32.mrf.mxu2  ;;  %vm2185_vm4 = vmor %vm2183_vm3, %vm2184_vm2  ;;  %v819_v61 = vadd.f32 %v4221_v35, %v818_v41  ;;  %v2202_v5 = vand.u32 2147483647, %v1821_v38 }
 0x2fd   :  { %2843 = vst.msk [vmem:[%s4539_s9 + $0xa0] sm:$0xff] %vm165_vm0, %v2176_v44  ;;  %v2180_v45 = vsub.f32 1.0, %v2179_v43  ;;  %v1156_v0 = vadd.f32 %v4071_v54, %v1155_v46  ;;  %v2204_v6 = vand.u32 2147483648, %v1821_v38  ;;  %vm2198_vm7 = vweird.f32 %v1821_v38 }
 0x2fe   :  { %v1507_v50 = vpop.f32.mrf.mxu3  ;;  %v888_v9 = vmax.f32 %v819_v61, 0.0  ;;  %vm2203_vm9 = vcmp.eq.f32.partialorder %v2202_v5, 8.507059e+37 }
 0x2ff   :  { %v2181_v49 = vmul.f32 %v3246_v37, %v2180_v45  ;;  %v1508_v53 = vadd.f32 %v4181_v40, %v1507_v50  ;;  %v1252_v11 = vmax.f32 %v1156_v0, 0.0  ;;  %v2205_v19 = vor.u32 1.1754944e-38, %v2204_v6 }
 0x301   :  { %v3248_v51 = vpop.eup %3247  ;;  %v2182_v52 = vadd.f32 %v3246_v37, %v2181_v49  ;;  %v3099_v62 = vmul.f32 -1.442695, %v1508_v53 }
 0x302   :  { %v3250_v1 = vpop.eup %3249  ;;  %v1822_v56 = vadd.f32 1.0, %v3248_v51  ;;  %v820_v57 = vpop.f32.mrf.mxu1 }
 0x303   :  { %v2186_v58 = vsel %vm2185_vm4, %v3246_v37, %v2182_v52  ;;  %v2194_v60 = vmul.f32 %v3250_v1, %v1821_v38  ;;  %v821_v3 = vadd.f32 %v4221_v35, %v820_v57  ;;  %vm2199_vm6 = vweird.f32 %v3250_v1 }
 0x304   :  { %v2191_v63 = vsel %vm2188_vm5, %v2190_v55, %v2186_v58  ;;  %3251 = vrcp.f32 %v1822_v56  ;;  %v1157_v4 = vpop.f32.mrf.mxu2  ;;  %vm2200_vm8 = vmor %vm2198_vm7, %vm2199_vm6  ;;  %v2219_v31 = vand.u32 2147483648, %v1822_v56  ;;  %v2217_v59 = vand.u32 2147483647, %v1822_v56 }
 0x305   :  { %2844 = vst.msk [vmem:[%s4539_s9 + $0xa8] sm:$0xff] %vm165_vm0, %v2191_v63  ;;  %v2195_v2 = vsub.f32 1.0, %v2194_v60  ;;  %3253 = vpow2.f32 %v3099_v62  ;;  %v1158_v7 = vadd.f32 %v4071_v54, %v1157_v4  ;;  %v889_v10 = vmax.f32 %v821_v3, 0.0 }
 0x306   :  { %v1509_v13 = vpop.f32.mrf.mxu3  ;;  %vm2213_vm11 = vweird.f32 %v1822_v56  ;;  %v2220_v30 = vor.u32 1.1754944e-38, %v2219_v31  ;;  %vm2218_vm13 = vcmp.eq.f32.partialorder %v2217_v59, 8.507059e+37 }
 0x307   :  { %v2196_v8 = vmul.f32 %v3250_v1, %v2195_v2  ;;  %v1253_v12 = vmax.f32 %v1158_v7, 0.0  ;;  %v922_v16 = vpack.c.bf16 %v889_v10, %v888_v9  ;;  %v1510_v17 = vadd.f32 %v4181_v40, %v1509_v13 }
 0x309   :  { %v2197_v14 = vadd.f32 %v3250_v1, %v2196_v8  ;;  %v1295_v20 = vpack.c.bf16 %v1253_v12, %v1252_v11  ;;  %v3100_v25 = vmul.f32 -1.442695, %v1510_v17  ;;  %3025 = vmatmul.msk.bf16.gmra.mxu2 %vm944_vm1, %v922_v16 }
 0x30a   :  { %v3252_v18 = vpop.eup %3251  ;;  %v823_v21 = vpop.f32.mrf.mxu1 }
 0x30b   :  { %v3254_v22 = vpop.eup %3253  ;;  %v2201_v23 = vsel %vm2200_vm8, %v3250_v1, %v2197_v14  ;;  %v2209_v24 = vmul.f32 %v3252_v18, %v1822_v56  ;;  %3255 = vpow2.f32 %v3100_v25  ;;  %3064 = vmatmul.msk.bf16.gmra.mxu3 %vm165_vm0, %v1295_v20  ;;  %vm2214_vm10 = vweird.f32 %v3252_v18 }
 0x30c   :  { %v2206_v26 = vsel %vm2203_vm9, %v2205_v19, %v2201_v23  ;;  %v1823_v27 = vadd.f32 1.0, %v3254_v22  ;;  %v1160_v29 = vpop.f32.mrf.mxu2  ;;  %v824_v34 = vadd.f32 %v4221_v35, %v823_v21  ;;  %vm2215_vm12 = vmor %vm2213_vm11, %vm2214_vm10  ;;  %v4300_v21 = vld [vmem:[%s4536_s6] ss:$0 sm:$0xff] }
 0x30d   :  { %2845 = vst.msk [vmem:[%s4539_s9 + $0xb0] sm:$0xff] %vm165_vm0, %v2206_v26  ;;  %v2210_v28 = vsub.f32 1.0, %v2209_v24  ;;  %v1161_v46 = vadd.f32 %v4071_v54, %v1160_v29 }
 0x30e   :  { %3257 = vrcp.f32 %v1823_v27  ;;  %v1512_v33 = vpop.f32.mrf.mxu3  ;;  %v890_v48 = vmax.f32 %v824_v34, 0.0  ;;  %v2232_v53 = vand.u32 2147483647, %v1823_v27  ;;  %v2234_v1 = vand.u32 2147483648, %v1823_v27 }
 0x30f   :  { %v2211_v32 = vmul.f32 %v3252_v18, %v2210_v28  ;;  %v1513_v36 = vadd.f32 %v4181_v40, %v1512_v33  ;;  %v1254_v55 = vmax.f32 %v1161_v46, 0.0  ;;  %vm2228_vm15 = vweird.f32 %v1823_v27 }
 0x310   :  { %v2235_v3 = vor.u32 1.1754944e-38, %v2234_v1  ;;  %vm2233_vm3 = vcmp.eq.f32.partialorder %v2232_v53, 8.507059e+37 }
 0x311   :  { %v2212_v39 = vadd.f32 %v3252_v18, %v2211_v32  ;;  %v3256_v15 = vpop.eup %3255  ;;  %v3101_v41 = vmul.f32 -1.442695, %v1513_v36 }
 0x312   :  { %v825_v37 = vpop.f32.mrf.mxu1  ;;  %v1824_v45 = vadd.f32 1.0, %v3256_v15 }
 0x313   :  { %v2216_v38 = vsel %vm2215_vm12, %v3252_v18, %v2212_v39  ;;  %v826_v42 = vadd.f32 %v4221_v35, %v825_v37  ;;  %3259 = vpow2.f32 %v3101_v41 }
 0x314   :  { %v3258_v43 = vpop.eup %3257  ;;  %v2221_v44 = vsel %vm2218_vm13, %v2220_v30, %v2216_v38  ;;  %v1162_v50 = vpop.f32.mrf.mxu2  ;;  %3261 = vrcp.f32 %v1824_v45  ;;  %v2249_v9 = vand.u32 2147483648, %v1824_v45  ;;  %v2247_v12 = vand.u32 2147483647, %v1824_v45 }
 0x315   :  { %2846 = vst.msk [vmem:[%s4539_s9 + $0xb8] sm:$0xff] %vm165_vm0, %v2221_v44  ;;  %v2224_v47 = vmul.f32 %v3258_v43, %v1823_v27  ;;  %v891_v49 = vmax.f32 %v826_v42, 0.0  ;;  %v1163_v35 = vadd.f32 %v4071_v54, %v1162_v50  ;;  %vm2229_vm14 = vweird.f32 %v3258_v43 }
 0x316   :  { %v1514_v56 = vpop.f32.mrf.mxu3  ;;  %vm2230_vm2 = vmor %vm2228_vm15, %vm2229_vm14  ;;  %vm2243_vm4 = vweird.f32 %v1824_v45  ;;  %v2250_v19 = vor.u32 1.1754944e-38, %v2249_v9  ;;  %vm2248_vm6 = vcmp.eq.f32.partialorder %v2247_v12, 8.507059e+37 }
 0x317   :  { %v2225_v51 = vsub.f32 1.0, %v2224_v47  ;;  %v923_v52 = vpack.c.bf16 %v891_v49, %v890_v48  ;;  %v1255_v58 = vmax.f32 %v1163_v35, 0.0  ;;  %v1515_v60 = vadd.f32 %v4181_v40, %v1514_v56 }
 0x319   :  { %v2226_v57 = vmul.f32 %v3258_v43, %v2225_v51  ;;  %v3260_v61 = vpop.eup %3259  ;;  %v1296_v63 = vpack.c.bf16 %v1255_v58, %v1254_v55  ;;  %v3102_v0 = vmul.f32 -1.442695, %v1515_v60  ;;  %3026 = vmatmul.msk.bf16.gmra.mxu2 %vm944_vm1, %v923_v52 }
 0x31a   :  { %v3262_v2 = vpop.eup %3261  ;;  %v1825_v54 = vadd.f32 1.0, %v3260_v61 }
 0x31b   :  { %v2227_v62 = vadd.f32 %v3258_v43, %v2226_v57  ;;  %v2239_v5 = vmul.f32 %v3262_v2, %v1824_v45  ;;  %3263 = vpow2.f32 %v3102_v0  ;;  %3065 = vmatmul.msk.bf16.gmra.mxu3 %vm165_vm0, %v1296_v63  ;;  %vm2244_vm1 = vweird.f32 %v3262_v2 }
 0x31c   :  { %3265 = vrcp.f32 %v1825_v54  ;;  %v1165_v7 = vpop.f32.mrf.mxu2  ;;  %vm2245_vm5 = vmor %vm2243_vm4, %vm2244_vm1  ;;  %v2262_v29 = vand.u32 2147483647, %v1825_v54  ;;  %v2264_v31 = vand.u32 2147483648, %v1825_v54  ;;  %vm2258_vm8 = vweird.f32 %v1825_v54 }
 0x31d   :  { %v2231_v4 = vsel %vm2230_vm2, %v3258_v43, %v2227_v62  ;;  %v2240_v8 = vsub.f32 1.0, %v2239_v5  ;;  %v1166_v22 = vadd.f32 %v4300_v21, %v1165_v7 }
 0x31e   :  { %v2236_v6 = vsel %vm2233_vm3, %v2235_v3, %v2231_v4  ;;  %v1517_v10 = vpop.f32.mrf.mxu3  ;;  %v2265_v41 = vor.u32 1.1754944e-38, %v2264_v31  ;;  %vm2263_vm10 = vcmp.eq.f32.partialorder %v2262_v29, 8.507059e+37 }
 0x31f   :  { %2847 = vst.msk [vmem:[%s4539_s9 + $0xc0] sm:$0xff] %vm165_vm0, %v2236_v6  ;;  %v2241_v11 = vmul.f32 %v3262_v2, %v2240_v8  ;;  %v1518_v13 = vadd.f32 %v4181_v40, %v1517_v10  ;;  %v1256_v32 = vmax.f32 %v1166_v22, 0.0 }
 0x321   :  { %v3264_v14 = vpop.eup %3263  ;;  %v2242_v16 = vadd.f32 %v3262_v2, %v2241_v11  ;;  %v3103_v17 = vmul.f32 -1.442695, %v1518_v13 }
 0x322   :  { %v3266_v18 = vpop.eup %3265  ;;  %v1826_v20 = vadd.f32 1.0, %v3264_v14 }
 0x323   :  { %v2246_v23 = vsel %vm2245_vm5, %v3262_v2, %v2242_v16  ;;  %v2254_v24 = vmul.f32 %v3266_v18, %v1825_v54  ;;  %3267 = vpow2.f32 %v3103_v17  ;;  %vm2259_vm7 = vweird.f32 %v3266_v18 }
 0x324   :  { %v2251_v25 = vsel %vm2248_vm6, %v2250_v19, %v2246_v23  ;;  %3269 = vrcp.f32 %v1826_v20  ;;  %v1167_v26 = vpop.f32.mrf.mxu2  ;;  %vm2260_vm9 = vmor %vm2258_vm8, %vm2259_vm7  ;;  %v2279_v48 = vand.u32 2147483648, %v1826_v20  ;;  %v2277_v51 = vand.u32 2147483647, %v1826_v20 }
 0x325   :  { %2848 = vst.msk [vmem:[%s4539_s9 + $0xc8] sm:$0xff] %vm165_vm0, %v2251_v25  ;;  %v2255_v27 = vsub.f32 1.0, %v2254_v24  ;;  %v1168_v28 = vadd.f32 %v4300_v21, %v1167_v26  ;;  %vm2273_vm12 = vweird.f32 %v1826_v20 }
 0x326   :  { %v1519_v59 = vpop.f32.mrf.mxu3  ;;  %v2280_v56 = vor.u32 1.1754944e-38, %v2279_v48  ;;  %vm2278_vm14 = vcmp.eq.f32.partialorder %v2277_v51, 8.507059e+37 }
 0x327   :  { %v2256_v33 = vmul.f32 %v3266_v18, %v2255_v27  ;;  %v1257_v39 = vmax.f32 %v1168_v28, 0.0  ;;  %v1520_v34 = vadd.f32 %v4181_v40, %v1519_v59 }
 0x329   :  { %v3268_v36 = vpop.eup %3267  ;;  %v2257_v30 = vadd.f32 %v3266_v18, %v2256_v33  ;;  %v1297_v37 = vpack.c.bf16 %v1257_v39, %v1256_v32  ;;  %v3104_v15 = vmul.f32 -1.442695, %v1520_v34 }
 0x32a   :  { %v3270_v38 = vpop.eup %3269  ;;  %v1827_v42 = vadd.f32 1.0, %v3268_v36 }
 0x32b   :  { %v2261_v43 = vsel %vm2260_vm9, %v3266_v18, %v2257_v30  ;;  %v2269_v44 = vmul.f32 %v3270_v38, %v1826_v20  ;;  %3271 = vpow2.f32 %v3104_v15  ;;  %3066 = vmatmul.msk.bf16.gmra.mxu3 %vm165_vm0, %v1297_v37  ;;  %vm2274_vm11 = vweird.f32 %v3270_v38 }
 0x32c   :  { %v2266_v45 = vsel %vm2263_vm10, %v2265_v41, %v2261_v43  ;;  %3273 = vrcp.f32 %v1827_v42  ;;  %v1170_v46 = vpop.f32.mrf.mxu2  ;;  %vm2275_vm13 = vmor %vm2273_vm12, %vm2274_vm11  ;;  %v2292_v3 = vand.u32 2147483647, %v1827_v42  ;;  %v2294_v54 = vand.u32 2147483648, %v1827_v42 }
 0x32d   :  { %2849 = vst.msk [vmem:[%s4539_s9 + $0xd0] sm:$0xff] %vm165_vm0, %v2266_v45  ;;  %v2270_v47 = vsub.f32 1.0, %v2269_v44  ;;  %v1171_v58 = vadd.f32 %v4300_v21, %v1170_v46  ;;  %vm2288_vm2 = vweird.f32 %v1827_v42 }
 0x32e   :  { %v1522_v49 = vpop.f32.mrf.mxu3  ;;  %v2295_v14 = vor.u32 1.1754944e-38, %v2294_v54  ;;  %vm2293_vm1 = vcmp.eq.f32.partialorder %v2292_v3, 8.507059e+37 }
 0x32f   :  { %v2271_v50 = vmul.f32 %v3270_v38, %v2270_v47  ;;  %v1523_v52 = vadd.f32 %v4181_v40, %v1522_v49  ;;  %v1258_v4 = vmax.f32 %v1171_v58, 0.0 }
 0x331   :  { %v3272_v35 = vpop.eup %3271  ;;  %v2272_v53 = vadd.f32 %v3270_v38, %v2271_v50  ;;  %v3105_v1 = vmul.f32 -1.442695, %v1523_v52 }
 0x332   :  { %v3274_v55 = vpop.eup %3273  ;;  %v1828_v57 = vadd.f32 1.0, %v3272_v35 }
 0x333   :  { %v2276_v60 = vsel %vm2275_vm13, %v3270_v38, %v2272_v53  ;;  %v2284_v61 = vmul.f32 %v3274_v55, %v1827_v42  ;;  %3275 = vpow2.f32 %v3105_v1  ;;  %vm2289_vm15 = vweird.f32 %v3274_v55 }
 0x334   :  { %v2281_v62 = vsel %vm2278_vm14, %v2280_v56, %v2276_v60  ;;  %3277 = vrcp.f32 %v1828_v57  ;;  %v1172_v63 = vpop.f32.mrf.mxu2  ;;  %vm2290_vm3 = vmor %vm2288_vm2, %vm2289_vm15  ;;  %v2309_v23 = vand.u32 2147483648, %v1828_v57  ;;  %v2307_v26 = vand.u32 2147483647, %v1828_v57 }
 0x335   :  { %2850 = vst.msk [vmem:[%s4539_s9 + $0xd8] sm:$0xff] %vm165_vm0, %v2281_v62  ;;  %v2285_v0 = vsub.f32 1.0, %v2284_v61  ;;  %v1173_v2 = vadd.f32 %v4300_v21, %v1172_v63  ;;  %vm2303_vm5 = vweird.f32 %v1828_v57 }
 0x336   :  { %v1524_v5 = vpop.f32.mrf.mxu3  ;;  %v2310_v59 = vor.u32 1.1754944e-38, %v2309_v23  ;;  %vm2308_vm7 = vcmp.eq.f32.partialorder %v2307_v26, 8.507059e+37 }
 0x337   :  { %v2286_v6 = vmul.f32 %v3274_v55, %v2285_v0  ;;  %v1259_v7 = vmax.f32 %v1173_v2, 0.0  ;;  %v1525_v8 = vadd.f32 %v4181_v40, %v1524_v5 }
 0x339   :  { %v3276_v9 = vpop.eup %3275  ;;  %v2287_v10 = vadd.f32 %v3274_v55, %v2286_v6  ;;  %v1298_v11 = vpack.c.bf16 %v1259_v7, %v1258_v4  ;;  %v3106_v12 = vmul.f32 -1.442695, %v1525_v8 }
 0x33a   :  { %v3278_v13 = vpop.eup %3277  ;;  %v1829_v16 = vadd.f32 1.0, %v3276_v9 }
 0x33b   :  { %v2291_v17 = vsel %vm2290_vm3, %v3274_v55, %v2287_v10  ;;  %v2299_v18 = vmul.f32 %v3278_v13, %v1828_v57  ;;  %3279 = vpow2.f32 %v3106_v12  ;;  %3067 = vmatmul.msk.bf16.gmra.mxu3 %vm165_vm0, %v1298_v11  ;;  %vm2304_vm4 = vweird.f32 %v3278_v13 }
 0x33c   :  { %v2296_v19 = vsel %vm2293_vm1, %v2295_v14, %v2291_v17  ;;  %3281 = vrcp.f32 %v1829_v16  ;;  %v1175_v20 = vpop.f32.mrf.mxu2  ;;  %vm2305_vm6 = vmor %vm2303_vm5, %vm2304_vm4  ;;  %v2322_v41 = vand.u32 2147483647, %v1829_v16  ;;  %v2324_v42 = vand.u32 2147483648, %v1829_v16 }
 0x33d   :  { %2851 = vst.msk [vmem:[%s4539_s9 + $0xe0] sm:$0xff] %vm165_vm0, %v2296_v19  ;;  %v2300_v22 = vsub.f32 1.0, %v2299_v18  ;;  %v1176_v39 = vadd.f32 %v4300_v21, %v1175_v20  ;;  %vm2318_vm9 = vweird.f32 %v1829_v16 }
 0x33e   :  { %v1527_v24 = vpop.f32.mrf.mxu3  ;;  %v2325_v35 = vor.u32 1.1754944e-38, %v2324_v42  ;;  %vm2323_vm11 = vcmp.eq.f32.partialorder %v2322_v41, 8.507059e+37 }
 0x33f   :  { %v2301_v25 = vmul.f32 %v3278_v13, %v2300_v22  ;;  %v1528_v27 = vadd.f32 %v4181_v40, %v1527_v24  ;;  %v1260_v43 = vmax.f32 %v1176_v39, 0.0 }
 0x341   :  { %v3280_v28 = vpop.eup %3279  ;;  %v2302_v29 = vadd.f32 %v3278_v13, %v2301_v25  ;;  %v3107_v31 = vmul.f32 -1.442695, %v1528_v27 }
 0x342   :  { %v3282_v32 = vpop.eup %3281  ;;  %v1830_v33 = vadd.f32 1.0, %v3280_v28 }
 0x343   :  { %v2306_v34 = vsel %vm2305_vm6, %v3278_v13, %v2302_v29  ;;  %v2314_v36 = vmul.f32 %v3282_v32, %v1829_v16  ;;  %3283 = vpow2.f32 %v3107_v31  ;;  %vm2319_vm8 = vweird.f32 %v3282_v32 }
 0x344   :  { %v2311_v30 = vsel %vm2308_vm7, %v2310_v59, %v2306_v34  ;;  %3285 = vrcp.f32 %v1830_v33  ;;  %v1177_v37 = vpop.f32.mrf.mxu2  ;;  %vm2320_vm10 = vmor %vm2318_vm9, %vm2319_vm8  ;;  %v2339_v60 = vand.u32 2147483648, %v1830_v33  ;;  %v2337_v63 = vand.u32 2147483647, %v1830_v33 }
 0x345   :  { %2852 = vst.msk [vmem:[%s4539_s9 + $0xe8] sm:$0xff] %vm165_vm0, %v2311_v30  ;;  %v2315_v15 = vsub.f32 1.0, %v2314_v36  ;;  %v1178_v38 = vadd.f32 %v4300_v21, %v1177_v37  ;;  %vm2333_vm13 = vweird.f32 %v1830_v33 }
 0x346   :  { %v1529_v44 = vpop.f32.mrf.mxu3  ;;  %v2340_v5 = vor.u32 1.1754944e-38, %v2339_v60  ;;  %vm2338_vm15 = vcmp.eq.f32.partialorder %v2337_v63, 8.507059e+37 }
 0x347   :  { %v2316_v45 = vmul.f32 %v3282_v32, %v2315_v15  ;;  %v1261_v46 = vmax.f32 %v1178_v38, 0.0  ;;  %v1530_v47 = vadd.f32 %v4181_v40, %v1529_v44 }
 0x349   :  { %v3284_v48 = vpop.eup %3283  ;;  %v2317_v49 = vadd.f32 %v3282_v32, %v2316_v45  ;;  %v1299_v50 = vpack.c.bf16 %v1261_v46, %v1260_v43  ;;  %v3108_v51 = vmul.f32 -1.442695, %v1530_v47 }
 0x34a   :  { %v3286_v52 = vpop.eup %3285  ;;  %v1831_v53 = vadd.f32 1.0, %v3284_v48 }
 0x34b   :  { %v2321_v1 = vsel %vm2320_vm10, %v3282_v32, %v2317_v49  ;;  %v2329_v55 = vmul.f32 %v3286_v52, %v1830_v33  ;;  %3287 = vpow2.f32 %v3108_v51  ;;  %3068 = vmatmul.msk.bf16.gmra.mxu3 %vm165_vm0, %v1299_v50  ;;  %vm2334_vm12 = vweird.f32 %v3286_v52 }
 0x34c   :  { %v2326_v56 = vsel %vm2323_vm11, %v2325_v35, %v2321_v1  ;;  %3289 = vrcp.f32 %v1831_v53  ;;  %v1180_v57 = vpop.f32.mrf.mxu2  ;;  %vm2335_vm14 = vmor %vm2333_vm13, %vm2334_vm12  ;;  %v2352_v14 = vand.u32 2147483647, %v1831_v53  ;;  %v2354_v16 = vand.u32 2147483648, %v1831_v53 }
 0x34d   :  { %2853 = vst.msk [vmem:[%s4539_s9 + $0xf0] sm:$0xff] %vm165_vm0, %v2326_v56  ;;  %v2330_v58 = vsub.f32 1.0, %v2329_v55  ;;  %v1181_v7 = vadd.f32 %v4300_v21, %v1180_v57  ;;  %vm2348_vm3 = vweird.f32 %v1831_v53  ;;  %v4363_v57 = vld [vmem:[%s4538_s8] ss:$0 sm:$0xff] }
 0x34e   :  { %v1532_v61 = vpop.f32.mrf.mxu3  ;;  %v2355_v28 = vor.u32 1.1754944e-38, %v2354_v16  ;;  %vm2353_vm4 = vcmp.eq.f32.partialorder %v2352_v14, 8.507059e+37 }
 0x34f   :  { %v2331_v62 = vmul.f32 %v3286_v52, %v2330_v58  ;;  %v1533_v0 = vadd.f32 %v4181_v40, %v1532_v61  ;;  %v1262_v17 = vmax.f32 %v1181_v7, 0.0 }
 0x351   :  { %v3288_v2 = vpop.eup %3287  ;;  %v2332_v3 = vadd.f32 %v3286_v52, %v2331_v62  ;;  %v3109_v54 = vmul.f32 -1.442695, %v1533_v0 }
 0x352   :  { %v3290_v4 = vpop.eup %3289  ;;  %v1832_v6 = vadd.f32 1.0, %v3288_v2 }
 0x353   :  { %v2336_v8 = vsel %vm2335_vm14, %v3286_v52, %v2332_v3  ;;  %v2344_v9 = vmul.f32 %v3290_v4, %v1831_v53  ;;  %3291 = vpow2.f32 %v3109_v54  ;;  %vm2349_vm2 = vweird.f32 %v3290_v4 }
 0x354   :  { %v2341_v10 = vsel %vm2338_vm15, %v2340_v5, %v2336_v8  ;;  %3293 = vrcp.f32 %v1832_v6  ;;  %v1182_v11 = vpop.f32.mrf.mxu2  ;;  %vm2350_vm1 = vmor %vm2348_vm3, %vm2349_vm2  ;;  %v2369_v34 = vand.u32 2147483648, %v1832_v6  ;;  %v2367_v37 = vand.u32 2147483647, %v1832_v6 }
 0x355   :  { %2854 = vst.msk [vmem:[%s4539_s9 + $0xf8] sm:$0xff] %vm165_vm0, %v2341_v10  ;;  %v2345_v12 = vsub.f32 1.0, %v2344_v9  ;;  %v1183_v13 = vadd.f32 %v4300_v21, %v1182_v11  ;;  %vm2363_vm6 = vweird.f32 %v1832_v6 }
 0x356   :  { %v1534_v18 = vpop.f32.mrf.mxu3  ;;  %v2370_v44 = vor.u32 1.1754944e-38, %v2369_v34  ;;  %vm2368_vm8 = vcmp.eq.f32.partialorder %v2367_v37, 8.507059e+37 }
 0x357   :  { %v2346_v19 = vmul.f32 %v3290_v4, %v2345_v12  ;;  %v1263_v20 = vmax.f32 %v1183_v13, 0.0  ;;  %v1535_v22 = vadd.f32 %v4181_v40, %v1534_v18 }
 0x359   :  { %v3292_v23 = vpop.eup %3291  ;;  %v2347_v24 = vadd.f32 %v3290_v4, %v2346_v19  ;;  %v1300_v25 = vpack.c.bf16 %v1263_v20, %v1262_v17  ;;  %v3110_v26 = vmul.f32 -1.442695, %v1535_v22 }
 0x35a   :  { %v3294_v27 = vpop.eup %3293  ;;  %v1833_v29 = vadd.f32 1.0, %v3292_v23 }
 0x35b   :  { %v2351_v31 = vsel %vm2350_vm1, %v3290_v4, %v2347_v24  ;;  %v2359_v32 = vmul.f32 %v3294_v27, %v1832_v6  ;;  %3295 = vpow2.f32 %v3110_v26  ;;  %3069 = vmatmul.msk.bf16.gmra.mxu3 %vm165_vm0, %v1300_v25  ;;  %vm2364_vm5 = vweird.f32 %v3294_v27 }
 0x35c   :  { %v2356_v59 = vsel %vm2353_vm4, %v2355_v28, %v2351_v31  ;;  %3297 = vrcp.f32 %v1833_v29  ;;  %v1185_v33 = vpop.f32.mrf.mxu2  ;;  %vm2365_vm7 = vmor %vm2363_vm6, %vm2364_vm5  ;;  %v2382_v52 = vand.u32 2147483647, %v1833_v29  ;;  %v2384_v35 = vand.u32 2147483648, %v1833_v29 }
 0x35d   :  { %2855 = vst.msk [vmem:[%s4539_s9 + $0x100] sm:$0xff] %vm165_vm0, %v2356_v59  ;;  %v2360_v39 = vsub.f32 1.0, %v2359_v32  ;;  %v1186_v46 = vadd.f32 %v4300_v21, %v1185_v33  ;;  %vm2378_vm10 = vweird.f32 %v1833_v29 }
 0x35e   :  { %v1537_v36 = vpop.f32.mrf.mxu3  ;;  %v2385_v2 = vor.u32 1.1754944e-38, %v2384_v35  ;;  %vm2383_vm12 = vcmp.eq.f32.partialorder %v2382_v52, 8.507059e+37 }
 0x35f   :  { %v2361_v30 = vmul.f32 %v3294_v27, %v2360_v39  ;;  %v1538_v15 = vadd.f32 %v4181_v40, %v1537_v36  ;;  %v1264_v53 = vmax.f32 %v1186_v46, 0.0 }
 0x361   :  { %v3296_v38 = vpop.eup %3295  ;;  %v2362_v41 = vadd.f32 %v3294_v27, %v2361_v30  ;;  %v3111_v42 = vmul.f32 -1.442695, %v1538_v15 }
 0x362   :  { %v3298_v43 = vpop.eup %3297  ;;  %v1834_v45 = vadd.f32 1.0, %v3296_v38 }
 0x363   :  { %v2366_v47 = vsel %vm2365_vm7, %v3294_v27, %v2362_v41  ;;  %v2374_v48 = vmul.f32 %v3298_v43, %v1833_v29  ;;  %3299 = vpow2.f32 %v3111_v42  ;;  %vm2379_vm9 = vweird.f32 %v3298_v43 }
 0x364   :  { %v2371_v49 = vsel %vm2368_vm8, %v2370_v44, %v2366_v47  ;;  %3301 = vrcp.f32 %v1834_v45  ;;  %v1187_v50 = vpop.f32.mrf.mxu2  ;;  %vm2380_vm11 = vmor %vm2378_vm10, %vm2379_vm9  ;;  %v2399_v8 = vand.u32 2147483648, %v1834_v45  ;;  %v2397_v11 = vand.u32 2147483647, %v1834_v45 }
 0x365   :  { %2856 = vst.msk [vmem:[%s4539_s9 + $0x108] sm:$0xff] %vm165_vm0, %v2371_v49  ;;  %v2375_v40 = vsub.f32 1.0, %v2374_v48  ;;  %v1188_v51 = vadd.f32 %v4300_v21, %v1187_v50  ;;  %vm2393_vm14 = vweird.f32 %v1834_v45 }
 0x366   :  { %v1539_v1 = vpop.f32.mrf.mxu3  ;;  %v2400_v18 = vor.u32 1.1754944e-38, %v2399_v8  ;;  %vm2398_vm2 = vcmp.eq.f32.partialorder %v2397_v11, 8.507059e+37 }
 0x367   :  { %v2376_v55 = vmul.f32 %v3298_v43, %v2375_v40  ;;  %v1265_v56 = vmax.f32 %v1188_v51, 0.0  ;;  %v1540_v58 = vadd.f32 %v4363_v57, %v1539_v1 }
 0x369   :  { %v3300_v60 = vpop.eup %3299  ;;  %v2377_v61 = vadd.f32 %v3298_v43, %v2376_v55  ;;  %v1301_v62 = vpack.c.bf16 %v1265_v56, %v1264_v53  ;;  %v3112_v63 = vmul.f32 -1.442695, %v1540_v58 }
 0x36a   :  { %v3302_v0 = vpop.eup %3301  ;;  %v1835_v3 = vadd.f32 1.0, %v3300_v60 }
 0x36b   :  { %v2381_v54 = vsel %vm2380_vm11, %v3298_v43, %v2377_v61  ;;  %v2389_v4 = vmul.f32 %v3302_v0, %v1834_v45  ;;  %3303 = vpow2.f32 %v3112_v63  ;;  %3070 = vmatmul.msk.bf16.gmra.mxu3 %vm165_vm0, %v1301_v62  ;;  %vm2394_vm13 = vweird.f32 %v3302_v0 }
 0x36c   :  { %v2386_v5 = vsel %vm2383_vm12, %v2385_v2, %v2381_v54  ;;  %3305 = vrcp.f32 %v1835_v3  ;;  %v1190_v6 = vpop.f32.mrf.mxu2  ;;  %vm2395_vm15 = vmor %vm2393_vm14, %vm2394_vm13  ;;  %v2412_v28 = vand.u32 2147483647, %v1835_v3  ;;  %v2414_v29 = vand.u32 2147483648, %v1835_v3 }
 0x36d   :  { %2857 = vst.msk [vmem:[%s4539_s9 + $0x110] sm:$0xff] %vm165_vm0, %v2386_v5  ;;  %v2390_v7 = vsub.f32 1.0, %v2389_v4  ;;  %v1191_v20 = vadd.f32 %v4300_v21, %v1190_v6  ;;  %vm2408_vm1 = vweird.f32 %v1835_v3 }
 0x36e   :  { %v1542_v9 = vpop.f32.mrf.mxu3  ;;  %v2415_v38 = vor.u32 1.1754944e-38, %v2414_v29  ;;  %vm2413_vm5 = vcmp.eq.f32.partialorder %v2412_v28, 8.507059e+37 }
 0x36f   :  { %v2391_v10 = vmul.f32 %v3302_v0, %v2390_v7  ;;  %v1543_v12 = vadd.f32 %v4363_v57, %v1542_v9  ;;  %v1266_v31 = vmax.f32 %v1191_v20, 0.0 }
 0x371   :  { %v3304_v13 = vpop.eup %3303  ;;  %v2392_v14 = vadd.f32 %v3302_v0, %v2391_v10  ;;  %v3113_v16 = vmul.f32 -1.442695, %v1543_v12 }
 0x372   :  { %v3306_v17 = vpop.eup %3305  ;;  %v1836_v19 = vadd.f32 1.0, %v3304_v13 }
 0x373   :  { %v2396_v22 = vsel %vm2395_vm15, %v3302_v0, %v2392_v14  ;;  %v2404_v23 = vmul.f32 %v3306_v17, %v1835_v3  ;;  %3307 = vpow2.f32 %v3113_v16  ;;  %vm2409_vm3 = vweird.f32 %v3306_v17 }
 0x374   :  { %v2401_v24 = vsel %vm2398_vm2, %v2400_v18, %v2396_v22  ;;  %3309 = vrcp.f32 %v1836_v19  ;;  %v1192_v25 = vpop.f32.mrf.mxu2  ;;  %vm2410_vm4 = vmor %vm2408_vm1, %vm2409_vm3  ;;  %v2429_v47 = vand.u32 2147483648, %v1836_v19  ;;  %v2427_v50 = vand.u32 2147483647, %v1836_v19 }
 0x375   :  { %2858 = vst.msk [vmem:[%s4539_s9 + $0x118] sm:$0xff] %vm165_vm0, %v2401_v24  ;;  %v2405_v26 = vsub.f32 1.0, %v2404_v23  ;;  %v1193_v27 = vadd.f32 %v4300_v21, %v1192_v25  ;;  %vm2423_vm7 = vweird.f32 %v1836_v19 }
 0x376   :  { %v1544_v32 = vpop.f32.mrf.mxu3  ;;  %v2430_v1 = vor.u32 1.1754944e-38, %v2429_v47  ;;  %vm2428_vm9 = vcmp.eq.f32.partialorder %v2427_v50, 8.507059e+37 }
 0x377   :  { %v2406_v59 = vmul.f32 %v3306_v17, %v2405_v26  ;;  %v1267_v33 = vmax.f32 %v1193_v27, 0.0  ;;  %v1545_v39 = vadd.f32 %v4363_v57, %v1544_v32 }
 0x379   :  { %v3308_v34 = vpop.eup %3307  ;;  %v2407_v36 = vadd.f32 %v3306_v17, %v2406_v59  ;;  %v1302_v30 = vpack.c.bf16 %v1267_v33, %v1266_v31  ;;  %v3114_v37 = vmul.f32 -1.442695, %v1545_v39 }
 0x37a   :  { %v3310_v15 = vpop.eup %3309  ;;  %v1837_v41 = vadd.f32 1.0, %v3308_v34 }
 0x37b   :  { %v2411_v42 = vsel %vm2410_vm4, %v3306_v17, %v2407_v36  ;;  %v2419_v43 = vmul.f32 %v3310_v15, %v1836_v19  ;;  %3311 = vpow2.f32 %v3114_v37  ;;  %3071 = vmatmul.msk.bf16.gmra.mxu3 %vm165_vm0, %v1302_v30  ;;  %vm2424_vm6 = vweird.f32 %v3310_v15 }
 0x37c   :  { %v2416_v44 = vsel %vm2413_vm5, %v2415_v38, %v2411_v42  ;;  %3313 = vrcp.f32 %v1837_v41  ;;  %v1195_v45 = vpop.f32.mrf.mxu2  ;;  %vm2425_vm8 = vmor %vm2423_vm7, %vm2424_vm6  ;;  %v2442_v2 = vand.u32 2147483647, %v1837_v41  ;;  %v2444_v3 = vand.u32 2147483648, %v1837_v41 }
 0x37d   :  { %2859 = vst.msk [vmem:[%s4539_s9 + $0x120] sm:$0xff] %vm165_vm0, %v2416_v44  ;;  %v2420_v46 = vsub.f32 1.0, %v2419_v43  ;;  %v1196_v56 = vadd.f32 %v4300_v21, %v1195_v45  ;;  %vm2438_vm11 = vweird.f32 %v1837_v41 }
 0x37e   :  { %v1547_v48 = vpop.f32.mrf.mxu3  ;;  %v2445_v13 = vor.u32 1.1754944e-38, %v2444_v3  ;;  %vm2443_vm13 = vcmp.eq.f32.partialorder %v2442_v2, 8.507059e+37 }
 0x37f   :  { %v2421_v49 = vmul.f32 %v3310_v15, %v2420_v46  ;;  %v1548_v40 = vadd.f32 %v4363_v57, %v1547_v48  ;;  %v1268_v54 = vmax.f32 %v1196_v56, 0.0 }
 0x381   :  { %v3312_v51 = vpop.eup %3311  ;;  %v2422_v52 = vadd.f32 %v3310_v15, %v2421_v49  ;;  %v3115_v35 = vmul.f32 -1.442695, %v1548_v40 }
 0x382   :  { %v3314_v53 = vpop.eup %3313  ;;  %v1838_v55 = vadd.f32 1.0, %v3312_v51 }
 0x383   :  { %v2426_v58 = vsel %vm2425_vm8, %v3310_v15, %v2422_v52  ;;  %v2434_v60 = vmul.f32 %v3314_v53, %v1837_v41  ;;  %3315 = vpow2.f32 %v3115_v35  ;;  %vm2439_vm10 = vweird.f32 %v3314_v53 }
 0x384   :  { %v2431_v61 = vsel %vm2428_vm9, %v2430_v1, %v2426_v58  ;;  %3317 = vrcp.f32 %v1838_v55  ;;  %v1197_v62 = vpop.f32.mrf.mxu2  ;;  %vm2440_vm12 = vmor %vm2438_vm11, %vm2439_vm10  ;;  %v2459_v22 = vand.u32 2147483648, %v1838_v55  ;;  %v2457_v25 = vand.u32 2147483647, %v1838_v55 }
 0x385   :  { %2860 = vst.msk [vmem:[%s4539_s9 + $0x128] sm:$0xff] %vm165_vm0, %v2431_v61  ;;  %v2435_v63 = vsub.f32 1.0, %v2434_v60  ;;  %v1198_v0 = vadd.f32 %v4300_v21, %v1197_v62  ;;  %vm2453_vm15 = vweird.f32 %v1838_v55 }
 0x386   :  { %v1549_v4 = vpop.f32.mrf.mxu3  ;;  %v2460_v32 = vor.u32 1.1754944e-38, %v2459_v22  ;;  %vm2458_vm3 = vcmp.eq.f32.partialorder %v2457_v25, 8.507059e+37 }
 0x387   :  { %v2436_v5 = vmul.f32 %v3314_v53, %v2435_v63  ;;  %v1269_v6 = vmax.f32 %v1198_v0, 0.0  ;;  %v1550_v7 = vadd.f32 %v4363_v57, %v1549_v4 }
 0x389   :  { %v3316_v8 = vpop.eup %3315  ;;  %v2437_v9 = vadd.f32 %v3314_v53, %v2436_v5  ;;  %v1303_v10 = vpack.c.bf16 %v1269_v6, %v1268_v54  ;;  %v3116_v11 = vmul.f32 -1.442695, %v1550_v7 }
 0x38a   :  { %v3318_v12 = vpop.eup %3317  ;;  %v1839_v14 = vadd.f32 1.0, %v3316_v8 }
 0x38b   :  { %v2441_v16 = vsel %vm2440_vm12, %v3314_v53, %v2437_v9  ;;  %v2449_v17 = vmul.f32 %v3318_v12, %v1838_v55  ;;  %3319 = vpow2.f32 %v3116_v11  ;;  %3072 = vmatmul.msk.bf16.gmra.mxu3 %vm165_vm0, %v1303_v10  ;;  %vm2454_vm14 = vweird.f32 %v3318_v12 }
 0x38c   :  { %v2446_v18 = vsel %vm2443_vm13, %v2445_v13, %v2441_v16  ;;  %3321 = vrcp.f32 %v1839_v14  ;;  %v1200_v19 = vpop.f32.mrf.mxu2  ;;  %vm2455_vm2 = vmor %vm2453_vm15, %vm2454_vm14  ;;  %v2472_v38 = vand.u32 2147483647, %v1839_v14  ;;  %v2474_v41 = vand.u32 2147483648, %v1839_v14 }
 0x38d   :  { %2861 = vst.msk [vmem:[%s4539_s9 + $0x130] sm:$0xff] %vm165_vm0, %v2446_v18  ;;  %v2450_v20 = vsub.f32 1.0, %v2449_v17  ;;  %v1201_v33 = vadd.f32 %v4300_v21, %v1200_v19  ;;  %vm2468_vm4 = vweird.f32 %v1839_v14 }
 0x38e   :  { %v1552_v23 = vpop.f32.mrf.mxu3  ;;  %v2475_v51 = vor.u32 1.1754944e-38, %v2474_v41  ;;  %vm2473_vm6 = vcmp.eq.f32.partialorder %v2472_v38, 8.507059e+37 }
 0x38f   :  { %v2451_v24 = vmul.f32 %v3318_v12, %v2450_v20  ;;  %v1553_v26 = vadd.f32 %v4363_v57, %v1552_v23  ;;  %v1270_v42 = vmax.f32 %v1201_v33, 0.0 }
 0x391   :  { %v3320_v27 = vpop.eup %3319  ;;  %v2452_v28 = vadd.f32 %v3318_v12, %v2451_v24  ;;  %v3117_v29 = vmul.f32 -1.442695, %v1553_v26 }
 0x392   :  { %v3322_v31 = vpop.eup %3321  ;;  %v1840_v59 = vadd.f32 1.0, %v3320_v27 }
 0x393   :  { %v2456_v39 = vsel %vm2455_vm2, %v3318_v12, %v2452_v28  ;;  %v2464_v34 = vmul.f32 %v3322_v31, %v1839_v14  ;;  %3323 = vpow2.f32 %v3117_v29  ;;  %vm2469_vm1 = vweird.f32 %v3322_v31 }
 0x394   :  { %v2461_v36 = vsel %vm2458_vm3, %v2460_v32, %v2456_v39  ;;  %3325 = vrcp.f32 %v1840_v59  ;;  %v1202_v30 = vpop.f32.mrf.mxu2  ;;  %vm2470_vm5 = vmor %vm2468_vm4, %vm2469_vm1  ;;  %v2489_v58 = vand.u32 2147483648, %v1840_v59  ;;  %v2487_v62 = vand.u32 2147483647, %v1840_v59 }
 0x395   :  { %2862 = vst.msk [vmem:[%s4539_s9 + $0x138] sm:$0xff] %vm165_vm0, %v2461_v36  ;;  %v2465_v37 = vsub.f32 1.0, %v2464_v34  ;;  %v1203_v15 = vadd.f32 %v4300_v21, %v1202_v30  ;;  %vm2483_vm8 = vweird.f32 %v1840_v59 }
 0x396   :  { %v1554_v43 = vpop.f32.mrf.mxu3  ;;  %v2490_v4 = vor.u32 1.1754944e-38, %v2489_v58  ;;  %vm2488_vm10 = vcmp.eq.f32.partialorder %v2487_v62, 8.507059e+37 }
 0x397   :  { %v2466_v44 = vmul.f32 %v3322_v31, %v2465_v37  ;;  %v1271_v45 = vmax.f32 %v1203_v15, 0.0  ;;  %v1555_v46 = vadd.f32 %v4363_v57, %v1554_v43 }
 0x399   :  { %v3324_v47 = vpop.eup %3323  ;;  %v2467_v48 = vadd.f32 %v3322_v31, %v2466_v44  ;;  %v1304_v49 = vpack.c.bf16 %v1271_v45, %v1270_v42  ;;  %v3118_v50 = vmul.f32 -1.442695, %v1555_v46 }
 0x39a   :  { %v3326_v40 = vpop.eup %3325  ;;  %v1841_v52 = vadd.f32 1.0, %v3324_v47 }
 0x39b   :  { %v2471_v35 = vsel %vm2470_vm5, %v3322_v31, %v2467_v48  ;;  %v2479_v53 = vmul.f32 %v3326_v40, %v1840_v59  ;;  %3327 = vpow2.f32 %v3118_v50  ;;  %3073 = vmatmul.msk.bf16.gmra.mxu3 %vm165_vm0, %v1304_v49  ;;  %vm2484_vm7 = vweird.f32 %v3326_v40 }
 0x39c   :  { %v2476_v1 = vsel %vm2473_vm6, %v2475_v51, %v2471_v35  ;;  %3329 = vrcp.f32 %v1841_v52  ;;  %v1205_v55 = vpop.f32.mrf.mxu2  ;;  %vm2485_vm9 = vmor %vm2483_vm8, %vm2484_vm7  ;;  %v2502_v13 = vand.u32 2147483647, %v1841_v52  ;;  %v2504_v14 = vand.u32 2147483648, %v1841_v52 }
 0x39d   :  { %2863 = vst.msk [vmem:[%s4539_s9 + $0x140] sm:$0xff] %vm165_vm0, %v2476_v1  ;;  %v2480_v56 = vsub.f32 1.0, %v2479_v53  ;;  %v1206_v6 = vadd.f32 %v4300_v21, %v1205_v55  ;;  %vm2498_vm12 = vweird.f32 %v1841_v52 }
 0x39e   :  { %v1557_v60 = vpop.f32.mrf.mxu3  ;;  %v2505_v27 = vor.u32 1.1754944e-38, %v2504_v14  ;;  %vm2503_vm14 = vcmp.eq.f32.partialorder %v2502_v13, 8.507059e+37 }
 0x39f   :  { %v2481_v61 = vmul.f32 %v3326_v40, %v2480_v56  ;;  %v1558_v63 = vadd.f32 %v4363_v57, %v1557_v60  ;;  %v1272_v16 = vmax.f32 %v1206_v6, 0.0 }
 0x3a1   :  { %v3328_v0 = vpop.eup %3327  ;;  %v2482_v2 = vadd.f32 %v3326_v40, %v2481_v61  ;;  %v3119_v3 = vmul.f32 -1.442695, %v1558_v63 }
 0x3a2   :  { %v3330_v54 = vpop.eup %3329  ;;  %v1842_v5 = vadd.f32 1.0, %v3328_v0 }
 0x3a3   :  { %v2486_v7 = vsel %vm2485_vm9, %v3326_v40, %v2482_v2  ;;  %v2494_v8 = vmul.f32 %v3330_v54, %v1841_v52  ;;  %3331 = vpow2.f32 %v3119_v3  ;;  %vm2499_vm11 = vweird.f32 %v3330_v54 }
 0x3a4   :  { %v2491_v9 = vsel %vm2488_vm10, %v2490_v4, %v2486_v7  ;;  %3333 = vrcp.f32 %v1842_v5  ;;  %v1207_v10 = vpop.f32.mrf.mxu2  ;;  %vm2500_vm13 = vmor %vm2498_vm12, %vm2499_vm11  ;;  %v2519_v59 = vand.u32 2147483648, %v1842_v5  ;;  %v2517_v34 = vand.u32 2147483647, %v1842_v5 }
 0x3a5   :  { %2864 = vst.msk [vmem:[%s4539_s9 + $0x148] sm:$0xff] %vm165_vm0, %v2491_v9  ;;  %v2495_v11 = vsub.f32 1.0, %v2494_v8  ;;  %v1208_v12 = vadd.f32 %v4300_v21, %v1207_v10  ;;  %vm2513_vm2 = vweird.f32 %v1842_v5 }
 0x3a6   :  { %v1559_v17 = vpop.f32.mrf.mxu3  ;;  %v2520_v41 = vor.u32 1.1754944e-38, %v2519_v59  ;;  %vm2518_vm1 = vcmp.eq.f32.partialorder %v2517_v34, 8.507059e+37 }
 0x3a7   :  { %v2496_v18 = vmul.f32 %v3330_v54, %v2495_v11  ;;  %v1273_v19 = vmax.f32 %v1208_v12, 0.0  ;;  %v1560_v20 = vadd.f32 %v4363_v57, %v1559_v17 }
 0x3a9   :  { %v3332_v22 = vpop.eup %3331  ;;  %v2497_v23 = vadd.f32 %v3330_v54, %v2496_v18  ;;  %v1305_v24 = vpack.c.bf16 %v1273_v19, %v1272_v16  ;;  %v3120_v25 = vmul.f32 -1.442695, %v1560_v20 }
 0x3aa   :  { %v3334_v26 = vpop.eup %3333  ;;  %v1843_v28 = vadd.f32 1.0, %v3332_v22 }
 0x3ab   :  { %v2501_v29 = vsel %vm2500_vm13, %v3330_v54, %v2497_v23  ;;  %v2509_v21 = vmul.f32 %v3334_v26, %v1842_v5  ;;  %3335 = vpow2.f32 %v3120_v25  ;;  %3074 = vmatmul.msk.bf16.gmra.mxu3 %vm165_vm0, %v1305_v24  ;;  %vm2514_vm15 = vweird.f32 %v3334_v26 }
 0x3ac   :  { %v2506_v31 = vsel %vm2503_vm14, %v2505_v27, %v2501_v29  ;;  %3337 = vrcp.f32 %v1843_v28  ;;  %vm2515_vm3 = vmor %vm2513_vm2, %vm2514_vm15  ;;  %v2534_v47 = vand.u32 2147483648, %v1843_v28  ;;  %v2532_v50 = vand.u32 2147483647, %v1843_v28 }
 0x3ad   :  { %2865 = vst.msk [vmem:[%s4539_s9 + $0x150] sm:$0xff] %vm165_vm0, %v2506_v31  ;;  %v2510_v32 = vsub.f32 1.0, %v2509_v21  ;;  %vm2528_vm5 = vweird.f32 %v1843_v28 }
 0x3ae   :  { %v1562_v33 = vpop.f32.mrf.mxu3  ;;  %v2535_v1 = vor.u32 1.1754944e-38, %v2534_v47  ;;  %vm2533_vm7 = vcmp.eq.f32.partialorder %v2532_v50, 8.507059e+37 }
 0x3af   :  { %v2511_v39 = vmul.f32 %v3334_v26, %v2510_v32  ;;  %v1563_v36 = vadd.f32 %v4363_v57, %v1562_v33 }
 0x3b1   :  { %v3336_v30 = vpop.eup %3335  ;;  %v2512_v37 = vadd.f32 %v3334_v26, %v2511_v39  ;;  %v3121_v15 = vmul.f32 -1.442695, %v1563_v36 }
 0x3b2   :  { %v3338_v38 = vpop.eup %3337  ;;  %v1844_v42 = vadd.f32 1.0, %v3336_v30 }
 0x3b3   :  { %v2516_v43 = vsel %vm2515_vm3, %v3334_v26, %v2512_v37  ;;  %v2524_v44 = vmul.f32 %v3338_v38, %v1843_v28  ;;  %3339 = vpow2.f32 %v3121_v15  ;;  %vm2529_vm4 = vweird.f32 %v3338_v38 }
 0x3b4   :  { %v2521_v45 = vsel %vm2518_vm1, %v2520_v41, %v2516_v43  ;;  %3341 = vrcp.f32 %v1844_v42  ;;  %vm2530_vm6 = vmor %vm2528_vm5, %vm2529_vm4  ;;  %v2549_v62 = vand.u32 2147483648, %v1844_v42  ;;  %v2547_v2 = vand.u32 2147483647, %v1844_v42 }
 0x3b5   :  { %2866 = vst.msk [vmem:[%s4539_s9 + $0x158] sm:$0xff] %vm165_vm0, %v2521_v45  ;;  %v2525_v46 = vsub.f32 1.0, %v2524_v44  ;;  %vm2543_vm9 = vweird.f32 %v1844_v42 }
 0x3b6   :  { %v1564_v48 = vpop.f32.mrf.mxu3  ;;  %v2550_v7 = vor.u32 1.1754944e-38, %v2549_v62  ;;  %vm2548_vm11 = vcmp.eq.f32.partialorder %v2547_v2, 8.507059e+37 }
 0x3b7   :  { %v2526_v49 = vmul.f32 %v3338_v38, %v2525_v46  ;;  %v1565_v40 = vadd.f32 %v4363_v57, %v1564_v48 }
 0x3b9   :  { %v3340_v51 = vpop.eup %3339  ;;  %v2527_v52 = vadd.f32 %v3338_v38, %v2526_v49  ;;  %v3122_v35 = vmul.f32 -1.442695, %v1565_v40 }
 0x3ba   :  { %v3342_v53 = vpop.eup %3341  ;;  %v1845_v55 = vadd.f32 1.0, %v3340_v51 }
 0x3bb   :  { %v2531_v56 = vsel %vm2530_vm6, %v3338_v38, %v2527_v52  ;;  %v2539_v58 = vmul.f32 %v3342_v53, %v1844_v42  ;;  %3343 = vpow2.f32 %v3122_v35  ;;  %vm2544_vm8 = vweird.f32 %v3342_v53 }
 0x3bc   :  { %v2536_v60 = vsel %vm2533_vm7, %v2535_v1, %v2531_v56  ;;  %3345 = vrcp.f32 %v1845_v55  ;;  %vm2545_vm10 = vmor %vm2543_vm9, %vm2544_vm8  ;;  %v2564_v13 = vand.u32 2147483648, %v1845_v55  ;;  %v2562_v17 = vand.u32 2147483647, %v1845_v55 }
 0x3bd   :  { %2867 = vst.msk [vmem:[%s4539_s9 + $0x160] sm:$0xff] %vm165_vm0, %v2536_v60  ;;  %v2540_v61 = vsub.f32 1.0, %v2539_v58  ;;  %vm2558_vm13 = vweird.f32 %v1845_v55 }
 0x3be   :  { %v1567_v63 = vpop.f32.mrf.mxu3  ;;  %v2565_v24 = vor.u32 1.1754944e-38, %v2564_v13  ;;  %vm2563_vm15 = vcmp.eq.f32.partialorder %v2562_v17, 8.507059e+37 }
 0x3bf   :  { %v2541_v0 = vmul.f32 %v3342_v53, %v2540_v61  ;;  %v1568_v3 = vadd.f32 %v4363_v57, %v1567_v63 }
 0x3c1   :  { %v3344_v54 = vpop.eup %3343  ;;  %v2542_v4 = vadd.f32 %v3342_v53, %v2541_v0  ;;  %v3123_v5 = vmul.f32 -1.442695, %v1568_v3 }
 0x3c2   :  { %v3346_v6 = vpop.eup %3345  ;;  %v1846_v8 = vadd.f32 1.0, %v3344_v54 }
 0x3c3   :  { %v2546_v9 = vsel %vm2545_vm10, %v3342_v53, %v2542_v4  ;;  %v2554_v10 = vmul.f32 %v3346_v6, %v1845_v55  ;;  %3347 = vpow2.f32 %v3123_v5  ;;  %vm2559_vm12 = vweird.f32 %v3346_v6 }
 0x3c4   :  { %v2551_v11 = vsel %vm2548_vm11, %v2550_v7, %v2546_v9  ;;  %3349 = vrcp.f32 %v1846_v8  ;;  %vm2560_vm14 = vmor %vm2558_vm13, %vm2559_vm12  ;;  %v2579_v21 = vand.u32 2147483648, %v1846_v8  ;;  %v2577_v59 = vand.u32 2147483647, %v1846_v8 }
 0x3c5   :  { %2868 = vst.msk [vmem:[%s4539_s9 + $0x168] sm:$0xff] %vm165_vm0, %v2551_v11  ;;  %v2555_v12 = vsub.f32 1.0, %v2554_v10  ;;  %vm2573_vm3 = vweird.f32 %v1846_v8 }
 0x3c6   :  { %v1569_v14 = vpop.f32.mrf.mxu3  ;;  %v2580_v37 = vor.u32 1.1754944e-38, %v2579_v21  ;;  %vm2578_vm4 = vcmp.eq.f32.partialorder %v2577_v59, 8.507059e+37 }
 0x3c7   :  { %v2556_v16 = vmul.f32 %v3346_v6, %v2555_v12  ;;  %v1570_v18 = vadd.f32 %v4363_v57, %v1569_v14 }
 0x3c9   :  { %v3348_v19 = vpop.eup %3347  ;;  %v2557_v20 = vadd.f32 %v3346_v6, %v2556_v16  ;;  %v3124_v22 = vmul.f32 -1.442695, %v1570_v18 }
 0x3ca   :  { %v3350_v23 = vpop.eup %3349  ;;  %v1847_v25 = vadd.f32 1.0, %v3348_v19 }
 0x3cb   :  { %v2561_v26 = vsel %vm2560_vm14, %v3346_v6, %v2557_v20  ;;  %v2569_v27 = vmul.f32 %v3350_v23, %v1846_v8  ;;  %3351 = vpow2.f32 %v3124_v22  ;;  %vm2574_vm2 = vweird.f32 %v3350_v23 }
 0x3cc   :  { %v2566_v28 = vsel %vm2563_vm15, %v2565_v24, %v2561_v26  ;;  %3353 = vrcp.f32 %v1847_v25  ;;  %vm2575_vm1 = vmor %vm2573_vm3, %vm2574_vm2  ;;  %v2594_v44 = vand.u32 2147483648, %v1847_v25  ;;  %v2592_v47 = vand.u32 2147483647, %v1847_v25 }
 0x3cd   :  { %2869 = vst.msk [vmem:[%s4539_s9 + $0x170] sm:$0xff] %vm165_vm0, %v2566_v28  ;;  %v2570_v29 = vsub.f32 1.0, %v2569_v27  ;;  %vm2588_vm6 = vweird.f32 %v1847_v25 }
 0x3ce   :  { %v1572_v31 = vpop.f32.mrf.mxu3  ;;  %v2595_v52 = vor.u32 1.1754944e-38, %v2594_v44  ;;  %vm2593_vm8 = vcmp.eq.f32.partialorder %v2592_v47, 8.507059e+37 }
 0x3cf   :  { %v2571_v32 = vmul.f32 %v3350_v23, %v2570_v29  ;;  %v1573_v33 = vadd.f32 %v4363_v57, %v1572_v31 }
 0x3d1   :  { %v3352_v39 = vpop.eup %3351  ;;  %v2572_v34 = vadd.f32 %v3350_v23, %v2571_v32  ;;  %v3125_v36 = vmul.f32 -1.442695, %v1573_v33 }
 0x3d2   :  { %v3354_v30 = vpop.eup %3353  ;;  %v1848_v15 = vadd.f32 1.0, %v3352_v39 }
 0x3d3   :  { %v2576_v38 = vsel %vm2575_vm1, %v3350_v23, %v2572_v34  ;;  %v2584_v41 = vmul.f32 %v3354_v30, %v1847_v25  ;;  %3355 = vpow2.f32 %v3125_v36  ;;  %vm2589_vm5 = vweird.f32 %v3354_v30 }
 0x3d4   :  { %v2581_v42 = vsel %vm2578_vm4, %v2580_v37, %v2576_v38  ;;  %3357 = vrcp.f32 %v1848_v15  ;;  %vm2590_vm7 = vmor %vm2588_vm6, %vm2589_vm5  ;;  %v2609_v58 = vand.u32 2147483648, %v1848_v15  ;;  %v2607_v62 = vand.u32 2147483647, %v1848_v15 }
 0x3d5   :  { %2870 = vst.msk [vmem:[%s4539_s9 + $0x178] sm:$0xff] %vm165_vm0, %v2581_v42  ;;  %v2585_v43 = vsub.f32 1.0, %v2584_v41  ;;  %vm2603_vm10 = vweird.f32 %v1848_v15 }
 0x3d6   :  { %v1574_v45 = vpop.f32.mrf.mxu3  ;;  %v2610_v4 = vor.u32 1.1754944e-38, %v2609_v58  ;;  %vm2608_vm12 = vcmp.eq.f32.partialorder %v2607_v62, 8.507059e+37 }
 0x3d7   :  { %v2586_v46 = vmul.f32 %v3354_v30, %v2585_v43  ;;  %v1575_v48 = vadd.f32 %v4363_v57, %v1574_v45 }
 0x3d9   :  { %v3356_v49 = vpop.eup %3355  ;;  %v2587_v50 = vadd.f32 %v3354_v30, %v2586_v46  ;;  %v3126_v40 = vmul.f32 -1.442695, %v1575_v48 }
 0x3da   :  { %v3358_v51 = vpop.eup %3357  ;;  %v1849_v35 = vadd.f32 1.0, %v3356_v49 }
 0x3db   :  { %v2591_v53 = vsel %vm2590_vm7, %v3354_v30, %v2587_v50  ;;  %v2599_v1 = vmul.f32 %v3358_v51, %v1848_v15  ;;  %3359 = vpow2.f32 %v3126_v40  ;;  %vm2604_vm9 = vweird.f32 %v3358_v51 }
 0x3dc   :  { %v2596_v55 = vsel %vm2593_vm8, %v2595_v52, %v2591_v53  ;;  %3361 = vrcp.f32 %v1849_v35  ;;  %vm2605_vm11 = vmor %vm2603_vm10, %vm2604_vm9  ;;  %v2624_v10 = vand.u32 2147483648, %v1849_v35  ;;  %v2622_v13 = vand.u32 2147483647, %v1849_v35 }
 0x3dd   :  { %2871 = vst.msk [vmem:[%s4539_s9 + $0x180] sm:$0xff] %vm165_vm0, %v2596_v55  ;;  %v2600_v56 = vsub.f32 1.0, %v2599_v1  ;;  %vm2618_vm14 = vweird.f32 %v1849_v35 }
 0x3de   :  { %v1577_v60 = vpop.f32.mrf.mxu3  ;;  %v2625_v20 = vor.u32 1.1754944e-38, %v2624_v10  ;;  %vm2623_vm2 = vcmp.eq.f32.partialorder %v2622_v13, 8.507059e+37 }
 0x3df   :  { %v2601_v61 = vmul.f32 %v3358_v51, %v2600_v56  ;;  %v1578_v63 = vadd.f32 %v4363_v57, %v1577_v60 }
 0x3e1   :  { %v3360_v0 = vpop.eup %3359  ;;  %v2602_v2 = vadd.f32 %v3358_v51, %v2601_v61  ;;  %v3127_v3 = vmul.f32 -1.442695, %v1578_v63 }
 0x3e2   :  { %v3362_v54 = vpop.eup %3361  ;;  %v1850_v5 = vadd.f32 1.0, %v3360_v0 }
 0x3e3   :  { %v2606_v6 = vsel %vm2605_vm11, %v3358_v51, %v2602_v2  ;;  %v2614_v7 = vmul.f32 %v3362_v54, %v1849_v35  ;;  %3363 = vpow2.f32 %v3127_v3  ;;  %vm2619_vm13 = vweird.f32 %v3362_v54 }
 0x3e4   :  { %v2611_v8 = vsel %vm2608_vm12, %v2610_v4, %v2606_v6  ;;  %3365 = vrcp.f32 %v1850_v5  ;;  %vm2620_vm15 = vmor %vm2618_vm14, %vm2619_vm13  ;;  %v2639_v27 = vand.u32 2147483648, %v1850_v5  ;;  %v2637_v21 = vand.u32 2147483647, %v1850_v5 }
 0x3e5   :  { %2872 = vst.msk [vmem:[%s4539_s9 + $0x188] sm:$0xff] %vm165_vm0, %v2611_v8  ;;  %v2615_v9 = vsub.f32 1.0, %v2614_v7  ;;  %vm2633_vm1 = vweird.f32 %v1850_v5 }
 0x3e6   :  { %v1579_v11 = vpop.f32.mrf.mxu3  ;;  %v2640_v34 = vor.u32 1.1754944e-38, %v2639_v27  ;;  %vm2638_vm5 = vcmp.eq.f32.partialorder %v2637_v21, 8.507059e+37 }
 0x3e7   :  { %v2616_v12 = vmul.f32 %v3362_v54, %v2615_v9  ;;  %v1580_v14 = vadd.f32 %v4363_v57, %v1579_v11 }
 0x3e9   :  { %v3364_v16 = vpop.eup %3363  ;;  %v2617_v17 = vadd.f32 %v3362_v54, %v2616_v12  ;;  %v3128_v18 = vmul.f32 -1.442695, %v1580_v14 }
 0x3ea   :  { %v3366_v19 = vpop.eup %3365  ;;  %v1851_v22 = vadd.f32 1.0, %v3364_v16 }
 0x3eb   :  { %v2621_v23 = vsel %vm2620_vm15, %v3362_v54, %v2617_v17  ;;  %v2629_v24 = vmul.f32 %v3366_v19, %v1850_v5  ;;  %3367 = vpow2.f32 %v3128_v18  ;;  %vm2634_vm3 = vweird.f32 %v3366_v19 }
 0x3ec   :  { %v2626_v25 = vsel %vm2623_vm2, %v2625_v20, %v2621_v23  ;;  %3369 = vrcp.f32 %v1851_v22  ;;  %vm2635_vm4 = vmor %vm2633_vm1, %vm2634_vm3  ;;  %v2654_v41 = vand.u32 2147483648, %v1851_v22  ;;  %v2652_v44 = vand.u32 2147483647, %v1851_v22 }
 0x3ed   :  { %2873 = vst.msk [vmem:[%s4539_s9 + $0x190] sm:$0xff] %vm165_vm0, %v2626_v25  ;;  %v2630_v26 = vsub.f32 1.0, %v2629_v24  ;;  %vm2648_vm7 = vweird.f32 %v1851_v22 }
 0x3ee   :  { %v1582_v28 = vpop.f32.mrf.mxu3  ;;  %v2655_v50 = vor.u32 1.1754944e-38, %v2654_v41  ;;  %vm2653_vm9 = vcmp.eq.f32.partialorder %v2652_v44, 8.507059e+37  ;;  %v4491_v41 = vld [vmem:[%s4538_s8] ss:$0 sm:$0xff] }
 0x3ef   :  { %v2631_v29 = vmul.f32 %v3366_v19, %v2630_v26  ;;  %v1583_v31 = vadd.f32 %v4363_v57, %v1582_v28 }
 0x3f1   :  { %v3368_v32 = vpop.eup %3367  ;;  %v2632_v59 = vadd.f32 %v3366_v19, %v2631_v29  ;;  %v3129_v33 = vmul.f32 -1.442695, %v1583_v31 }
 0x3f2   :  { %v3370_v39 = vpop.eup %3369  ;;  %v1852_v36 = vadd.f32 1.0, %v3368_v32 }
 0x3f3   :  { %v2636_v30 = vsel %vm2635_vm4, %v3366_v19, %v2632_v59  ;;  %v2644_v37 = vmul.f32 %v3370_v39, %v1851_v22  ;;  %3371 = vpow2.f32 %v3129_v33  ;;  %vm2649_vm6 = vweird.f32 %v3370_v39 }
 0x3f4   :  { %v2641_v15 = vsel %vm2638_vm5, %v2640_v34, %v2636_v30  ;;  %3373 = vrcp.f32 %v1852_v36  ;;  %vm2650_vm8 = vmor %vm2648_vm7, %vm2649_vm6  ;;  %v2669_v1 = vand.u32 2147483648, %v1852_v36  ;;  %v2667_v58 = vand.u32 2147483647, %v1852_v36 }
 0x3f5   :  { %2874 = vst.msk [vmem:[%s4539_s9 + $0x198] sm:$0xff] %vm165_vm0, %v2641_v15  ;;  %v2645_v38 = vsub.f32 1.0, %v2644_v37  ;;  %vm2663_vm11 = vweird.f32 %v1852_v36 }
 0x3f6   :  { %v1584_v42 = vpop.f32.mrf.mxu3  ;;  %v2670_v2 = vor.u32 1.1754944e-38, %v2669_v1  ;;  %vm2668_vm13 = vcmp.eq.f32.partialorder %v2667_v58, 8.507059e+37 }
 0x3f7   :  { %v2646_v43 = vmul.f32 %v3370_v39, %v2645_v38  ;;  %v1585_v45 = vadd.f32 %v4363_v57, %v1584_v42 }
 0x3f9   :  { %v3372_v46 = vpop.eup %3371  ;;  %v2647_v47 = vadd.f32 %v3370_v39, %v2646_v43  ;;  %v3130_v48 = vmul.f32 -1.442695, %v1585_v45 }
 0x3fa   :  { %v3374_v49 = vpop.eup %3373  ;;  %v1853_v40 = vadd.f32 1.0, %v3372_v46 }
 0x3fb   :  { %v2651_v51 = vsel %vm2650_vm8, %v3370_v39, %v2647_v47  ;;  %v2659_v52 = vmul.f32 %v3374_v49, %v1852_v36  ;;  %3375 = vpow2.f32 %v3130_v48  ;;  %vm2664_vm10 = vweird.f32 %v3374_v49 }
 0x3fc   :  { %v2656_v35 = vsel %vm2653_vm9, %v2655_v50, %v2651_v51  ;;  %3377 = vrcp.f32 %v1853_v40  ;;  %vm2665_vm12 = vmor %vm2663_vm11, %vm2664_vm10  ;;  %v2684_v7 = vand.u32 2147483648, %v1853_v40  ;;  %v2682_v10 = vand.u32 2147483647, %v1853_v40 }
 0x3fd   :  { %2875 = vst.msk [vmem:[%s4539_s9 + $0x1a0] sm:$0xff] %vm165_vm0, %v2656_v35  ;;  %v2660_v53 = vsub.f32 1.0, %v2659_v52  ;;  %vm2678_vm15 = vweird.f32 %v1853_v40 }
 0x3fe   :  { %v1587_v55 = vpop.f32.mrf.mxu3  ;;  %v2685_v17 = vor.u32 1.1754944e-38, %v2684_v7  ;;  %vm2683_vm3 = vcmp.eq.f32.partialorder %v2682_v10, 8.507059e+37 }
 0x3ff   :  { %v2661_v56 = vmul.f32 %v3374_v49, %v2660_v53  ;;  %v1588_v60 = vadd.f32 %v4363_v57, %v1587_v55 }
 0x401   :  { %v3376_v61 = vpop.eup %3375  ;;  %v2662_v62 = vadd.f32 %v3374_v49, %v2661_v56  ;;  %v3131_v63 = vmul.f32 -1.442695, %v1588_v60 }
 0x402   :  { %v3378_v0 = vpop.eup %3377  ;;  %v1854_v3 = vadd.f32 1.0, %v3376_v61 }
 0x403   :  { %v2666_v54 = vsel %vm2665_vm12, %v3374_v49, %v2662_v62  ;;  %v2674_v4 = vmul.f32 %v3378_v0, %v1853_v40  ;;  %3379 = vpow2.f32 %v3131_v63  ;;  %vm2679_vm14 = vweird.f32 %v3378_v0 }
 0x404   :  { %v2671_v5 = vsel %vm2668_vm13, %v2670_v2, %v2666_v54  ;;  %3381 = vrcp.f32 %v1854_v3  ;;  %vm2680_vm2 = vmor %vm2678_vm15, %vm2679_vm14  ;;  %v2699_v24 = vand.u32 2147483648, %v1854_v3  ;;  %v2697_v27 = vand.u32 2147483647, %v1854_v3 }
 0x405   :  { %2876 = vst.msk [vmem:[%s4539_s9 + $0x1a8] sm:$0xff] %vm165_vm0, %v2671_v5  ;;  %v2675_v6 = vsub.f32 1.0, %v2674_v4  ;;  %vm2693_vm4 = vweird.f32 %v1854_v3 }
 0x406   :  { %v1589_v8 = vpop.f32.mrf.mxu3  ;;  %v2700_v59 = vor.u32 1.1754944e-38, %v2699_v24  ;;  %vm2698_vm6 = vcmp.eq.f32.partialorder %v2697_v27, 8.507059e+37 }
 0x407   :  { %v2676_v9 = vmul.f32 %v3378_v0, %v2675_v6  ;;  %v1590_v11 = vadd.f32 %v4363_v57, %v1589_v8 }
 0x409   :  { %v3380_v12 = vpop.eup %3379  ;;  %v2677_v13 = vadd.f32 %v3378_v0, %v2676_v9  ;;  %v3132_v14 = vmul.f32 -1.442695, %v1590_v11 }
 0x40a   :  { %v3382_v16 = vpop.eup %3381  ;;  %v1855_v18 = vadd.f32 1.0, %v3380_v12 }
 0x40b   :  { %v2681_v19 = vsel %vm2680_vm2, %v3378_v0, %v2677_v13  ;;  %v2689_v20 = vmul.f32 %v3382_v16, %v1854_v3  ;;  %3383 = vpow2.f32 %v3132_v14  ;;  %vm2694_vm1 = vweird.f32 %v3382_v16 }
 0x40c   :  { %v2686_v22 = vsel %vm2683_vm3, %v2685_v17, %v2681_v19  ;;  %3385 = vrcp.f32 %v1855_v18  ;;  %vm2695_vm5 = vmor %vm2693_vm4, %vm2694_vm1  ;;  %v2714_v30 = vand.u32 2147483648, %v1855_v18  ;;  %v2712_v38 = vand.u32 2147483647, %v1855_v18 }
 0x40d   :  { %2877 = vst.msk [vmem:[%s4539_s9 + $0x1b0] sm:$0xff] %vm165_vm0, %v2686_v22  ;;  %v2690_v23 = vsub.f32 1.0, %v2689_v20  ;;  %vm2708_vm8 = vweird.f32 %v1855_v18 }
 0x40e   :  { %v1592_v25 = vpop.f32.mrf.mxu3  ;;  %v2715_v47 = vor.u32 1.1754944e-38, %v2714_v30  ;;  %vm2713_vm10 = vcmp.eq.f32.partialorder %v2712_v38, 8.507059e+37 }
 0x40f   :  { %v2691_v26 = vmul.f32 %v3382_v16, %v2690_v23  ;;  %v1593_v28 = vadd.f32 %v4363_v57, %v1592_v25 }
 0x411   :  { %v3384_v29 = vpop.eup %3383  ;;  %v2692_v21 = vadd.f32 %v3382_v16, %v2691_v26  ;;  %v3133_v31 = vmul.f32 -1.442695, %v1593_v28 }
 0x412   :  { %v3386_v32 = vpop.eup %3385  ;;  %v1856_v33 = vadd.f32 1.0, %v3384_v29 }
 0x413   :  { %v2696_v39 = vsel %vm2695_vm5, %v3382_v16, %v2692_v21  ;;  %v2704_v34 = vmul.f32 %v3386_v32, %v1855_v18  ;;  %3387 = vpow2.f32 %v3133_v31  ;;  %vm2709_vm7 = vweird.f32 %v3386_v32 }
 0x414   :  { %v2701_v36 = vsel %vm2698_vm6, %v2700_v59, %v2696_v39  ;;  %3389 = vrcp.f32 %v1856_v33  ;;  %vm2710_vm9 = vmor %vm2708_vm8, %vm2709_vm7  ;;  %v2729_v52 = vand.u32 2147483648, %v1856_v33  ;;  %v2727_v1 = vand.u32 2147483647, %v1856_v33 }
 0x415   :  { %2878 = vst.msk [vmem:[%s4539_s9 + $0x1b8] sm:$0xff] %vm165_vm0, %v2701_v36  ;;  %v2705_v57 = vsub.f32 1.0, %v2704_v34  ;;  %vm2723_vm12 = vweird.f32 %v1856_v33 }
 0x416   :  { %v1594_v37 = vpop.f32.mrf.mxu3  ;;  %v2730_v62 = vor.u32 1.1754944e-38, %v2729_v52  ;;  %vm2728_vm14 = vcmp.eq.f32.partialorder %v2727_v1, 8.507059e+37 }
 0x417   :  { %v2706_v15 = vmul.f32 %v3386_v32, %v2705_v57  ;;  %v1595_v42 = vadd.f32 %v4491_v41, %v1594_v37 }
 0x419   :  { %v3388_v43 = vpop.eup %3387  ;;  %v2707_v44 = vadd.f32 %v3386_v32, %v2706_v15  ;;  %v3134_v45 = vmul.f32 -1.442695, %v1595_v42 }
 0x41a   :  { %v3390_v46 = vpop.eup %3389  ;;  %v1857_v48 = vadd.f32 1.0, %v3388_v43 }
 0x41b   :  { %v2711_v49 = vsel %vm2710_vm9, %v3386_v32, %v2707_v44  ;;  %v2719_v50 = vmul.f32 %v3390_v46, %v1856_v33  ;;  %3391 = vpow2.f32 %v3134_v45  ;;  %vm2724_vm11 = vweird.f32 %v3390_v46 }
 0x41c   :  { %v2716_v40 = vsel %vm2713_vm10, %v2715_v47, %v2711_v49  ;;  %3393 = vrcp.f32 %v1857_v48  ;;  %vm2725_vm13 = vmor %vm2723_vm12, %vm2724_vm11  ;;  %v2744_v4 = vand.u32 2147483648, %v1857_v48  ;;  %v2742_v7 = vand.u32 2147483647, %v1857_v48 }
 0x41d   :  { %2879 = vst.msk [vmem:[%s4539_s9 + $0x1c0] sm:$0xff] %vm165_vm0, %v2716_v40  ;;  %v2720_v51 = vsub.f32 1.0, %v2719_v50  ;;  %vm2738_vm2 = vweird.f32 %v1857_v48 }
 0x41e   :  { %v1597_v35 = vpop.f32.mrf.mxu3  ;;  %v2745_v13 = vor.u32 1.1754944e-38, %v2744_v4  ;;  %vm2743_vm1 = vcmp.eq.f32.partialorder %v2742_v7, 8.507059e+37 }
 0x41f   :  { %v2721_v53 = vmul.f32 %v3390_v46, %v2720_v51  ;;  %v1598_v55 = vadd.f32 %v4491_v41, %v1597_v35 }
 0x421   :  { %v3392_v56 = vpop.eup %3391  ;;  %v2722_v58 = vadd.f32 %v3390_v46, %v2721_v53  ;;  %v3135_v60 = vmul.f32 -1.442695, %v1598_v55 }
 0x422   :  { %v3394_v61 = vpop.eup %3393  ;;  %v1858_v63 = vadd.f32 1.0, %v3392_v56 }
 0x423   :  { %v2726_v0 = vsel %vm2725_vm13, %v3390_v46, %v2722_v58  ;;  %v2734_v2 = vmul.f32 %v3394_v61, %v1857_v48  ;;  %3395 = vpow2.f32 %v3135_v60  ;;  %vm2739_vm15 = vweird.f32 %v3394_v61 }
 0x424   :  { %v2731_v3 = vsel %vm2728_vm14, %v2730_v62, %v2726_v0  ;;  %3397 = vrcp.f32 %v1858_v63  ;;  %vm2740_vm3 = vmor %vm2738_vm2, %vm2739_vm15  ;;  %v2759_v20 = vand.u32 2147483648, %v1858_v63  ;;  %v2757_v24 = vand.u32 2147483647, %v1858_v63 }
 0x425   :  { %2880 = vst.msk [vmem:[%s4539_s9 + $0x1c8] sm:$0xff] %vm165_vm0, %v2731_v3  ;;  %v2735_v54 = vsub.f32 1.0, %v2734_v2  ;;  %vm2753_vm5 = vweird.f32 %v1858_v63 }
 0x426   :  { %v1599_v5 = vpop.f32.mrf.mxu3  ;;  %v2760_v21 = vor.u32 1.1754944e-38, %v2759_v20  ;;  %vm2758_vm7 = vcmp.eq.f32.partialorder %v2757_v24, 8.507059e+37 }
 0x427   :  { %v2736_v6 = vmul.f32 %v3394_v61, %v2735_v54  ;;  %v1600_v8 = vadd.f32 %v4491_v41, %v1599_v5 }
 0x429   :  { %v3396_v9 = vpop.eup %3395  ;;  %v2737_v10 = vadd.f32 %v3394_v61, %v2736_v6  ;;  %v3136_v11 = vmul.f32 -1.442695, %v1600_v8 }
 0x42a   :  { %v3398_v12 = vpop.eup %3397  ;;  %v1859_v14 = vadd.f32 1.0, %v3396_v9 }
 0x42b   :  { %v2741_v16 = vsel %vm2740_vm3, %v3394_v61, %v2737_v10  ;;  %v2749_v17 = vmul.f32 %v3398_v12, %v1858_v63  ;;  %3399 = vpow2.f32 %v3136_v11  ;;  %vm2754_vm4 = vweird.f32 %v3398_v12 }
 0x42c   :  { %v2746_v18 = vsel %vm2743_vm1, %v2745_v13, %v2741_v16  ;;  %3401 = vrcp.f32 %v1859_v14  ;;  %vm2755_vm6 = vmor %vm2753_vm5, %vm2754_vm4  ;;  %v2774_v34 = vand.u32 2147483648, %v1859_v14  ;;  %v2772_v30 = vand.u32 2147483647, %v1859_v14 }
 0x42d   :  { %2881 = vst.msk [vmem:[%s4539_s9 + $0x1d0] sm:$0xff] %vm165_vm0, %v2746_v18  ;;  %v2750_v19 = vsub.f32 1.0, %v2749_v17  ;;  %vm2768_vm9 = vweird.f32 %v1859_v14 }
 0x42e   :  { %v1602_v22 = vpop.f32.mrf.mxu3  ;;  %v2775_v44 = vor.u32 1.1754944e-38, %v2774_v34  ;;  %vm2773_vm11 = vcmp.eq.f32.partialorder %v2772_v30, 8.507059e+37 }
 0x42f   :  { %v2751_v23 = vmul.f32 %v3398_v12, %v2750_v19  ;;  %v1603_v25 = vadd.f32 %v4491_v41, %v1602_v22 }
 0x431   :  { %v3400_v26 = vpop.eup %3399  ;;  %v2752_v27 = vadd.f32 %v3398_v12, %v2751_v23  ;;  %v3137_v28 = vmul.f32 -1.442695, %v1603_v25 }
 0x432   :  { %v3402_v29 = vpop.eup %3401  ;;  %v1860_v31 = vadd.f32 1.0, %v3400_v26 }
 0x433   :  { %v2756_v32 = vsel %vm2755_vm6, %v3398_v12, %v2752_v27  ;;  %v2764_v59 = vmul.f32 %v3402_v29, %v1859_v14  ;;  %3403 = vpow2.f32 %v3137_v28  ;;  %vm2769_vm8 = vweird.f32 %v3402_v29 }
 0x434   :  { %v2761_v33 = vsel %vm2758_vm7, %v2760_v21, %v2756_v32  ;;  %3405 = vrcp.f32 %v1860_v31  ;;  %vm2770_vm10 = vmor %vm2768_vm9, %vm2769_vm8  ;;  %v2789_v49 = vand.u32 2147483648, %v1860_v31  ;;  %v2787_v40 = vand.u32 2147483647, %v1860_v31 }
 0x435   :  { %2882 = vst.msk [vmem:[%s4539_s9 + $0x1d8] sm:$0xff] %vm165_vm0, %v2761_v33  ;;  %v2765_v39 = vsub.f32 1.0, %v2764_v59  ;;  %vm2783_vm13 = vweird.f32 %v1860_v31 }
 0x436   :  { %v1604_v36 = vpop.f32.mrf.mxu3  ;;  %v2790_v53 = vor.u32 1.1754944e-38, %v2789_v49  ;;  %vm2788_vm15 = vcmp.eq.f32.partialorder %v2787_v40, 8.507059e+37 }
 0x437   :  { %v2766_v57 = vmul.f32 %v3402_v29, %v2765_v39  ;;  %v1605_v37 = vadd.f32 %v4491_v41, %v1604_v36 }
 0x439   :  { %v3404_v15 = vpop.eup %3403  ;;  %v2767_v38 = vadd.f32 %v3402_v29, %v2766_v57  ;;  %v3138_v42 = vmul.f32 -1.442695, %v1605_v37 }
 0x43a   :  { %v3406_v43 = vpop.eup %3405  ;;  %v1861_v45 = vadd.f32 1.0, %v3404_v15 }
 0x43b   :  { %v2771_v46 = vsel %vm2770_vm10, %v3402_v29, %v2767_v38  ;;  %v2779_v47 = vmul.f32 %v3406_v43, %v1860_v31  ;;  %3407 = vpow2.f32 %v3138_v42  ;;  %vm2784_vm12 = vweird.f32 %v3406_v43 }
 0x43c   :  { %v2776_v48 = vsel %vm2773_vm11, %v2775_v44, %v2771_v46  ;;  %3409 = vrcp.f32 %v1861_v45  ;;  %vm2785_vm14 = vmor %vm2783_vm13, %vm2784_vm12  ;;  %v2804_v61 = vand.u32 2147483648, %v1861_v45  ;;  %v2802_v63 = vand.u32 2147483647, %v1861_v45 }
 0x43d   :  { %2883 = vst.msk [vmem:[%s4539_s9 + $0x1e0] sm:$0xff] %vm165_vm0, %v2776_v48  ;;  %v2780_v41 = vsub.f32 1.0, %v2779_v47  ;;  %vm2798_vm3 = vweird.f32 %v1861_v45 }
 0x43e   :  { %v2805_v3 = vor.u32 1.1754944e-38, %v2804_v61  ;;  %vm2803_vm4 = vcmp.eq.f32.partialorder %v2802_v63, 8.507059e+37 }
 0x43f   :  { %v2781_v50 = vmul.f32 %v3406_v43, %v2780_v41 }
 0x441   :  { %v3408_v51 = vpop.eup %3407  ;;  %v2782_v52 = vadd.f32 %v3406_v43, %v2781_v50 }
 0x442   :  { %v3410_v35 = vpop.eup %3409  ;;  %v1862_v1 = vadd.f32 1.0, %v3408_v51 }
 0x443   :  { %v2786_v55 = vsel %vm2785_vm14, %v3406_v43, %v2782_v52  ;;  %v2794_v56 = vmul.f32 %v3410_v35, %v1861_v45  ;;  %vm2799_vm2 = vweird.f32 %v3410_v35 }
 0x444   :  { %v2791_v58 = vsel %vm2788_vm15, %v2790_v53, %v2786_v55  ;;  %3411 = vrcp.f32 %v1862_v1  ;;  %vm2800_vm1 = vmor %vm2798_vm3, %vm2799_vm2  ;;  %v2819_v7 = vand.u32 2147483648, %v1862_v1  ;;  %v2817_v9 = vand.u32 2147483647, %v1862_v1 }
 0x445   :  { %2884 = vst.msk [vmem:[%s4539_s9 + $0x1e8] sm:$0xff] %vm165_vm0, %v2791_v58  ;;  %v2795_v60 = vsub.f32 1.0, %v2794_v56  ;;  %vm2813_vm6 = vweird.f32 %v1862_v1 }
 0x446   :  { %v2820_v11 = vor.u32 1.1754944e-38, %v2819_v7  ;;  %vm2818_vm8 = vcmp.eq.f32.partialorder %v2817_v9, 8.507059e+37 }
 0x447   :  { %v2796_v62 = vmul.f32 %v3410_v35, %v2795_v60 }
 0x449   :  { %v2797_v0 = vadd.f32 %v3410_v35, %v2796_v62 }
 0x44a   :  { %v3412_v2 = vpop.eup %3411 }
 0x44b   :  { %v2801_v54 = vsel %vm2800_vm1, %v3410_v35, %v2797_v0  ;;  %v2809_v4 = vmul.f32 %v3412_v2, %v1862_v1  ;;  %vm2814_vm5 = vweird.f32 %v3412_v2 }
 0x44c   :  { %v2806_v5 = vsel %vm2803_vm4, %v2805_v3, %v2801_v54  ;;  %vm2815_vm7 = vmor %vm2813_vm6, %vm2814_vm5 }
 0x44d   :  { %2885 = vst.msk [vmem:[%s4539_s9 + $0x1f0] sm:$0xff] %vm165_vm0, %v2806_v5  ;;  %v2810_v6 = vsub.f32 1.0, %v2809_v4 }
 0x44f   :  { %v2811_v8 = vmul.f32 %v3412_v2, %v2810_v6 }
 0x451   :  { %v2812_v10 = vadd.f32 %v3412_v2, %v2811_v8 }
 0x453   :  { %v2816_v12 = vsel %vm2815_vm7, %v3412_v2, %v2812_v10 }
 0x454   :  { %v2821_v13 = vsel %vm2818_vm8, %v2820_v11, %v2816_v12 }
 0x455   :  { %2886 = vst.msk [vmem:[%s4539_s9 + $0x1f8] sm:$0xff] %vm165_vm0, %v2821_v13 }

</bundles_post_ra>
